<compile_context>
chip_gen: v7x
topology: tpu7x:2x2x1
jax: 0.10.0
libtpu: 0.0.40
codegen_flags: <defaults>
</compile_context>

<pallas_src>
import functools
from dataclasses import dataclass
from typing import List

import jax
import jax.numpy as jnp
from jax.experimental import pallas as pl
from jax.experimental.pallas import tpu as pltpu

EPS = 1e-5
LANE = 128

_COMPILER_PARAMS = pltpu.CompilerParams(
    dimension_semantics=("parallel",),
    vmem_limit_bytes=32 * 1024 * 1024,
)


@dataclass
class MetaLearnerConfig:
    hidden_dims: List[int]
    dropout_rate: float = 0.5
    image_features_dim: int = 256


# ----------------------------------------------------------------------------
# Helpers
# ----------------------------------------------------------------------------
def _round_up(v, m=LANE):
    return ((v + m - 1) // m) * m


def _pad_last(a, to):
    pad = to - a.shape[-1]
    if pad <= 0:
        return a
    return jnp.pad(a, [(0, 0)] * (a.ndim - 1) + [(0, pad)])


def _const_spec(a):
    """Full-array BlockSpec with a constant index_map (fetched once per call)."""
    zeros = (0,) * a.ndim
    return pl.BlockSpec(a.shape, lambda i, z=zeros: z)


# ----------------------------------------------------------------------------
# Pallas kernels
# ----------------------------------------------------------------------------
def _conv_pool_kernel(x_ref, w_ref, b_ref, o_ref, y_ref, *,
                      taps, rows, src_w, ho, wo, dst_wp):
    """conv (folded BN) + ReLU + 2x2 MaxPool for one image.

    x_ref : (rows_ext, Cin) bf16   per-image activation (already zero padded)
    w_ref : (T, Cin, Cout) bf16    BN-folded weights, one slice per tap
    b_ref : (1, Cout) f32          BN-folded bias
    o_ref : (dst_rows_ext, Cout) bf16  next conv's padded row-flattened layout
    y_ref : (rows, Cout) f32 VMEM scratch holding the pre-pool activation
    """
    # Conv taps accumulated in a local f32 value -> single MXU drain, no
    # per-tap VMEM read-modify-write of the output.
    acc = None
    for t, off in enumerate(taps):
        part = jnp.dot(x_ref[pl.ds(off, rows), :], w_ref[t],
                       preferred_element_type=jnp.float32)
        acc = part if acc is None else acc + part
    y_ref[...] = jnp.maximum(acc + b_ref[...], 0.0)

    # Zero the whole output tile once (covers the next conv's padding rows),
    # then scatter the 2x2-maxpooled rows into its interior.
    o_ref[...] = jnp.zeros_like(o_ref)
    for i in range(ho):
        r = 2 * i * src_w
        p00 = y_ref[pl.ds(r, wo, stride=2), :]
        p01 = y_ref[pl.ds(r + 1, wo, stride=2), :]
        p10 = y_ref[pl.ds(r + src_w, wo, stride=2), :]
        p11 = y_ref[pl.ds(r + src_w + 1, wo, stride=2), :]
        pooled = jnp.maximum(jnp.maximum(p00, p01), jnp.maximum(p10, p11))
        o_ref[pl.ds((i + 1) * dst_wp + 1, wo), :] = pooled.astype(o_ref.dtype)


def conv_bn_relu_pool(x, w9, b, *, taps, rows, src_w, h, w):
    """Per-image gridded conv+BN+ReLU+MaxPool producing the next conv's input."""
    n = x.shape[0]
    cout = w9.shape[-1]
    ho, wo = h // 2, w // 2
    dst_wp = wo + 2
    dst_rows = (ho + 2) * dst_wp + 2 * dst_wp + 2   # padded grid + trailing halo
    kern = functools.partial(_conv_pool_kernel, taps=taps, rows=rows,
                             src_w=src_w, ho=ho, wo=wo, dst_wp=dst_wp)
    return pl.pallas_call(
        kern,
        out_shape=jax.ShapeDtypeStruct((n, dst_rows, cout), jnp.bfloat16),
        grid=(n,),
        in_specs=[pl.BlockSpec((None,) + tuple(x.shape[1:]), lambda i: (i, 0, 0)),
                  _const_spec(w9), _const_spec(b)],
        out_specs=pl.BlockSpec((None, dst_rows, cout), lambda i: (i, 0, 0)),
        scratch_shapes=[pltpu.VMEM((rows, cout), jnp.float32)],
        compiler_params=_COMPILER_PARAMS,
    )(x, w9, b)


def _conv3_tail_kernel(x_ref, w3_ref, b3_ref, mask_ref, logits_ref,
                       wh_ref, bh_ref, w0l_ref, w0i_ref, b0_ref,
                       *rest, taps, rows, inv_hw, n_extra):
    """conv3 + BN + ReLU + avgpool + image head + concat + MLP + final Linear."""
    o_ref = rest[-1]
    wo_ref, bo_ref = rest[-3], rest[-2]
    hidden = rest[:-3]

    # conv3 (folded BN) + ReLU at every padded-grid position, local f32 acc.
    acc = None
    for t, off in enumerate(taps):
        part = jnp.dot(x_ref[pl.ds(off, rows), :], w3_ref[t],
                       preferred_element_type=jnp.float32)
        acc = part if acc is None else acc + part
    y3 = jnp.maximum(acc + b3_ref[...], 0.0)                       # (rows, 256)

    # AdaptiveAvgPool2d((1,1)): exact 0/1 bf16 mask matmul + f32 post-scale.
    pooled = jnp.dot(mask_ref[...], y3.astype(jnp.bfloat16),
                     preferred_element_type=jnp.float32) * inv_hw  # (1, 256)

    # Linear(256, d_img) + folded BN1d + ReLU.
    img = jnp.dot(pooled.astype(jnp.bfloat16), wh_ref[...],
                  preferred_element_type=jnp.float32)
    img = jnp.maximum(img + bh_ref[...], 0.0)

    # MLP layer 0: concat([logits, img]) @ W  ==  logits @ W_l + img @ W_i.
    h = jnp.dot(logits_ref[...].astype(jnp.bfloat16), w0l_ref[...],
                preferred_element_type=jnp.float32)
    h = h + jnp.dot(img.astype(jnp.bfloat16), w0i_ref[...],
                    preferred_element_type=jnp.float32)
    h = jnp.maximum(h + b0_ref[...], 0.0)        # Dropout == identity (eval)

    # Remaining hidden layers (Linear + folded BN + ReLU), all 128-lane padded.
    for i in range(n_extra):
        w_ref, b_ref = hidden[2 * i], hidden[2 * i + 1]
        h = jnp.dot(h.astype(jnp.bfloat16), w_ref[...],
                    preferred_element_type=jnp.float32)
        h = jnp.maximum(h + b_ref[...], 0.0)

    # Final Linear (columns zero-padded to 128 for a lane-dense store).
    out = jnp.dot(h.astype(jnp.bfloat16), wo_ref[...],
                  preferred_element_type=jnp.float32)
    o_ref[...] = out + bo_ref[...]


def conv3_and_tail(x, pool_mask, logits_p, kp, *, taps, rows, inv_hw):
    n = x.shape[0]
    inputs = [x, kp["conv3_w"], kp["conv3_b"], pool_mask, logits_p,
              kp["head_w"], kp["head_b"],
              kp["mlp0_wl"], kp["mlp0_wi"], kp["mlp0_b"]]
    in_specs = [pl.BlockSpec((None,) + tuple(x.shape[1:]), lambda i: (i, 0, 0)),
                _const_spec(kp["conv3_w"]), _const_spec(kp["conv3_b"]),
                _const_spec(pool_mask),
                pl.BlockSpec((None, 1, logits_p.shape[-1]), lambda i: (i, 0, 0)),
                _const_spec(kp["head_w"]), _const_spec(kp["head_b"]),
                _const_spec(kp["mlp0_wl"]), _const_spec(kp["mlp0_wi"]),
                _const_spec(kp["mlp0_b"])]
    for (w, b) in kp["mlp_rest"]:
        inputs += [w, b]
        in_specs += [_const_spec(w), _const_spec(b)]
    inputs += [kp["out_w"], kp["out_b"]]
    in_specs += [_const_spec(kp["out_w"]), _const_spec(kp["out_b"])]
    out_cols = kp["out_w"].shape[1]
    return pl.pallas_call(
        functools.partial(_conv3_tail_kernel, taps=taps, rows=rows,
                          inv_hw=inv_hw, n_extra=len(kp["mlp_rest"])),
        out_shape=jax.ShapeDtypeStruct((n, 1, out_cols), jnp.float32),
        grid=(n,),
        in_specs=in_specs,
        out_specs=pl.BlockSpec((None, 1, out_cols), lambda i: (i, 0, 0)),
        compiler_params=_COMPILER_PARAMS,
    )(*inputs)


# ----------------------------------------------------------------------------
# Parameters: raw (PyTorch-like) init + BN folding / padding / bf16 prep
# ----------------------------------------------------------------------------
def init_params(key, *, in_channels, logits_dim, num_classes, config):
    def bn(c):
        return dict(gamma=jnp.ones((c,), jnp.float32),
                    beta=jnp.zeros((c,), jnp.float32),
                    mean=jnp.zeros((c,), jnp.float32),
                    var=jnp.ones((c,), jnp.float32))

    keys = jax.random.split(key, 4 + len(config.hidden_dims) + 1)
    p = {}
    cin = in_channels
    for li, cout in enumerate((64, 128, 256)):
        w = jax.random.normal(keys[li], (3, 3, cin, cout), jnp.float32) / (9.0 * cin) ** 0.5
        p[f"conv{li + 1}"] = dict(w=w, b=jnp.zeros((cout,), jnp.float32), bn=bn(cout))
        cin = cout
    d_img = config.image_features_dim
    p["head"] = dict(w=jax.random.normal(keys[3], (256, d_img), jnp.float32) / 16.0,
                     b=jnp.zeros((d_img,), jnp.float32), bn=bn(d_img))
    d = logits_dim + d_img
    p["mlp"] = []
    for i, hdim in enumerate(config.hidden_dims):
        w = jax.random.normal(keys[4 + i], (d, hdim), jnp.float32) / d ** 0.5
        p["mlp"].append(dict(w=w, b=jnp.zeros((hdim,), jnp.float32), bn=bn(hdim)))
        d = hdim
    p["out"] = dict(w=jax.random.normal(keys[-1], (d, num_classes), jnp.float32) / d ** 0.5,
                    b=jnp.zeros((num_classes,), jnp.float32))
    p["dims"] = dict(logits_dim=logits_dim, num_classes=num_classes)
    return p


def _fold_bn(w, b, bn, eps=EPS):
    s = bn["gamma"] / jnp.sqrt(bn["var"] + eps)
    return w * s, (b - bn["mean"]) * s + bn["beta"]


def prepare_kernel_params(p):
    """Fold BN into weights/bias, pad every dim to 128 lanes, cast MXU operands to bf16."""
    assert len(p["mlp"]) >= 1
    kp = {}
    # conv1: single K=27 im2col weight; cout padded 64 -> 128 (zeros).
    w, b = _fold_bn(p["conv1"]["w"], p["conv1"]["b"], p["conv1"]["bn"])
    cin = w.shape[2]
    w, b = _pad_last(w, LANE), _pad_last(b, LANE)
    kp["conv1_w"] = w.reshape(1, 9 * cin, w.shape[3]).astype(jnp.bfloat16)
    kp["conv1_b"] = b.reshape(1, -1).astype(jnp.float32)
    # conv2: cin padded 64 -> 128 with zero rows (matches conv1's padded cout).
    w, b = _fold_bn(p["conv2"]["w"], p["conv2"]["b"], p["conv2"]["bn"])
    w = jnp.pad(w, ((0, 0), (0, 0), (0, max(0, LANE - w.shape[2])), (0, 0)))
    kp["conv2_w"] = w.reshape(9, w.shape[2], w.shape[3]).astype(jnp.bfloat16)
    kp["conv2_b"] = b.reshape(1, -1).astype(jnp.float32)
    # conv3
    w, b = _fold_bn(p["conv3"]["w"], p["conv3"]["b"], p["conv3"]["bn"])
    kp["conv3_w"] = w.reshape(9, w.shape[2], w.shape[3]).astype(jnp.bfloat16)
    kp["conv3_b"] = b.reshape(1, -1).astype(jnp.float32)
    # image head Linear + BN1d, output padded to a lane multiple.
    w, b = _fold_bn(p["head"]["w"], p["head"]["b"], p["head"]["bn"])
    d_img, d_img_p = w.shape[1], _round_up(w.shape[1])
    kp["head_w"] = _pad_last(w, d_img_p).astype(jnp.bfloat16)
    kp["head_b"] = _pad_last(b, d_img_p).reshape(1, -1).astype(jnp.float32)
    # MLP layer 0: concat([logits, img]) @ W == logits @ Wl + img @ Wi; pad
    # logits_dim / d_img / hidden dim to lane multiples (zero rows & cols).
    ld = p["dims"]["logits_dim"]
    ld_p = _round_up(ld)
    w, b = _fold_bn(p["mlp"][0]["w"], p["mlp"][0]["b"], p["mlp"][0]["bn"])
    h_p = _round_up(w.shape[1])
    kp["mlp0_wl"] = jnp.pad(w[:ld], ((0, ld_p - ld), (0, h_p - w.shape[1]))).astype(jnp.bfloat16)
    kp["mlp0_wi"] = jnp.pad(w[ld:], ((0, d_img_p - d_img), (0, h_p - w.shape[1]))).astype(jnp.bfloat16)
    kp["mlp0_b"] = _pad_last(b, h_p).reshape(1, -1).astype(jnp.float32)
    prev_p = h_p
    kp["mlp_rest"] = []
    for layer in p["mlp"][1:]:
        w, b = _fold_bn(layer["w"], layer["b"], layer["bn"])
        hp_ = _round_up(w.shape[1])
        w = jnp.pad(w, ((0, prev_p - w.shape[0]), (0, hp_ - w.shape[1])))
        kp["mlp_rest"].append((w.astype(jnp.bfloat16),
                               _pad_last(b, hp_).reshape(1, -1).astype(jnp.float32)))
        prev_p = hp_
    # final Linear: rows padded to the last hidden's padded size, cols -> 128.
    w, b = p["out"]["w"], p["out"]["b"]
    nc_p = _round_up(w.shape[1])
    w = jnp.pad(w, ((0, prev_p - w.shape[0]), (0, nc_p - w.shape[1])))
    kp["out_w"] = w.astype(jnp.bfloat16)
    kp["out_b"] = _pad_last(b, nc_p).reshape(1, -1).astype(jnp.float32)
    kp["num_classes"] = p["dims"]["num_classes"]
    kp["logits_dim"] = ld
    kp["logits_dim_p"] = ld_p
    return kp


# ----------------------------------------------------------------------------
# Forward pass (mirrors CombinedMetaLearner.forward, eval mode)
# ----------------------------------------------------------------------------
def combined_meta_learner_forward(kp, logits_features, images_nchw):
    n, _, h1, w1 = images_nchw.shape
    assert h1 % 4 == 0 and w1 % 4 == 0, "two MaxPool2d(2) stages need /4 dims"
    x = jnp.transpose(images_nchw, (0, 2, 3, 1)).astype(jnp.float32)   # NHWC
    cin = x.shape[-1]

    # K=27 im2col for conv1 (cheap at cin=3); column order (dy, dx, c) matches
    # the (3,3,cin,cout) weight reshape.
    xp = jnp.pad(x, ((0, 0), (1, 1), (1, 1), (0, 0)))
    patches = jnp.concatenate(
        [xp[:, dy:dy + h1, dx:dx + w1, :] for dy in range(3) for dx in range(3)],
        axis=-1)
    x27 = patches.reshape(n, h1 * w1, 9 * cin).astype(jnp.bfloat16)

    # conv1 + BN + ReLU + MaxPool2d(2) -> conv2's padded row-flattened layout.
    a2 = conv_bn_relu_pool(x27, kp["conv1_w"], kp["conv1_b"],
                           taps=(0,), rows=h1 * w1, src_w=w1, h=h1, w=w1)

    # conv2 + BN + ReLU + MaxPool2d(2) -> conv3's padded layout.
    h2, w2 = h1 // 2, w1 // 2
    wp2 = w2 + 2
    taps2 = tuple(dy * wp2 + dx for dy in range(3) for dx in range(3))
    a3 = conv_bn_relu_pool(a2, kp["conv2_w"], kp["conv2_b"],
                           taps=taps2, rows=(h2 + 2) * wp2, src_w=wp2, h=h2, w=w2)

    # conv3 + BN + ReLU + AdaptiveAvgPool + head + concat + MLP + final Linear.
    h3, w3 = h2 // 2, w2 // 2
    hp3, wp3 = h3 + 2, w3 + 2
    taps3 = tuple(dy * wp3 + dx for dy in range(3) for dx in range(3))
    q = jnp.arange(hp3 * wp3)
    pool_mask = (((q // wp3) < h3) & ((q % wp3) < w3)).astype(jnp.bfloat16)[None, :]
    ld, ld_p = kp["logits_dim"], kp["logits_dim_p"]
    lf = jnp.pad(logits_features.astype(jnp.float32), ((0, 0), (0, ld_p - ld)))
    lf = lf[:, None, :]                                        # (n, 1, ld_p)
    out = conv3_and_tail(a3, pool_mask, lf, kp,
                         taps=taps3, rows=hp3 * wp3, inv_hw=1.0 / float(h3 * w3))
    return out[:, 0, :kp["num_classes"]]


# ----------------------------------------------------------------------------
if __name__ == "__main__":
    batch, in_channels, spatial = 2, 3, 16
    logits_dim, num_classes = 8, 10
    config = MetaLearnerConfig(hidden_dims=[64, 32], dropout_rate=0.5,
                               image_features_dim=128)

    key = jax.random.PRNGKey(0)
    k_img, k_logits, k_params = jax.random.split(key, 3)

    images = jax.random.normal(k_img, (batch, in_channels, spatial, spatial),
                               jnp.float32)                    # NCHW like PyTorch
    logits_features = jax.random.normal(k_logits, (batch, logits_dim), jnp.float32)

    raw = init_params(k_params, in_channels=in_channels, logits_dim=logits_dim,
                      num_classes=num_classes, config=config)
    kp = prepare_kernel_params(raw)

    fwd = jax.jit(lambda lf, im: combined_meta_learner_forward(kp, lf, im))
    out = jax.block_until_ready(fwd(logits_features, images))
    assert out.shape == (batch, num_classes)
    assert out.dtype == jnp.float32
    assert bool(jnp.all(jnp.isfinite(out)))
    print("KERNEL_OK")
</pallas_src>

<mosaic_0001>
module attributes {stable_mosaic.version = 11 : i64} {
  func.func @_conv_pool_kernel(%arg0: i32, %arg1: memref<1x256x27xbf16, #tpu.memory_space<vmem>>, %arg2: memref<1x27x128xbf16, #tpu.memory_space<vmem>>, %arg3: memref<1x128xf32, #tpu.memory_space<vmem>>, %arg4: memref<1x122x128xbf16, #tpu.memory_space<vmem>>, %arg5: memref<256x128xf32, #tpu.memory_space<vmem>>) attributes {dimension_semantics = [#tpu.dimension_semantics<parallel>], iteration_bounds = array<i64: 2>, scalar_prefetch = 0 : i64, scratch_operands = 1 : i64, tpu.core_type = #tpu.core_type<tc>, window_params = [{transform_indices = @transform_0, window_bounds = array<i64: 1, 256, 27>}, {pipeline_mode = #tpu.pipeline_mode<synchronous>, transform_indices = @transform_1, window_bounds = array<i64: 1, 27, 128>}, {pipeline_mode = #tpu.pipeline_mode<synchronous>, transform_indices = @transform_2, window_bounds = array<i64: 1, 128>}, {transform_indices = @transform_3, window_bounds = array<i64: 1, 122, 128>}]} {
    %c0 = arith.constant 0 : index
    %c0_0 = arith.constant 0 : index
    %c0_1 = arith.constant 0 : index
    %0 = vector.load %arg1[%c0, %c0_0, %c0_1] : memref<1x256x27xbf16, #tpu.memory_space<vmem>>, vector<1x256x27xbf16>
    %1 = vector.shape_cast %0 : vector<1x256x27xbf16> to vector<256x27xbf16>
    %c0_2 = arith.constant 0 : index
    %c0_3 = arith.constant 0 : index
    %c0_4 = arith.constant 0 : index
    %2 = vector.load %arg2[%c0_2, %c0_3, %c0_4] : memref<1x27x128xbf16, #tpu.memory_space<vmem>>, vector<1x27x128xbf16>
    %3 = vector.shape_cast %2 : vector<1x27x128xbf16> to vector<27x128xbf16>
    %cst = arith.constant dense<0.000000e+00> : vector<256x128xf32>
    %4 = tpu.matmul %1, %3, %cst {dimension_numbers = #tpu.dot_dimension_numbers<[1], [0], [0], [1], [0, 0, 1, 1], [], []>} : vector<256x27xbf16>, vector<27x128xbf16>, vector<256x128xf32> -> vector<256x128xf32>
    %c0_5 = arith.constant 0 : index
    %c0_6 = arith.constant 0 : index
    %5 = vector.load %arg3[%c0_5, %c0_6] : memref<1x128xf32, #tpu.memory_space<vmem>>, vector<1x128xf32>
    %6 = vector.broadcast %5 : vector<1x128xf32> to vector<256x128xf32>
    %7 = arith.addf %4, %6 : vector<256x128xf32>
    %cst_7 = arith.constant 0.000000e+00 : f32
    %8 = vector.broadcast %cst_7 : f32 to vector<256x128xf32>
    %9 = arith.maximumf %7, %8 : vector<256x128xf32>
    %c0_8 = arith.constant 0 : index
    %c0_9 = arith.constant 0 : index
    %10 = vector.load %arg5[%c0_8, %c0_9] : memref<256x128xf32, #tpu.memory_space<vmem>>, vector<256x128xf32>
    tpu.vector_store %arg5[%c0_8, %c0_9], %9 {strides = array<i32>} : memref<256x128xf32, #tpu.memory_space<vmem>>, vector<256x128xf32>,
    %cst_10 = arith.constant 0.000000e+00 : bf16
    %11 = vector.broadcast %cst_10 : bf16 to vector<122x128xbf16>
    %c0_11 = arith.constant 0 : index
    %c0_12 = arith.constant 0 : index
    %c0_13 = arith.constant 0 : index
    %12 = vector.load %arg4[%c0_11, %c0_12, %c0_13] : memref<1x122x128xbf16, #tpu.memory_space<vmem>>, vector<1x122x128xbf16>
    %13 = vector.shape_cast %12 : vector<1x122x128xbf16> to vector<122x128xbf16>
    %14 = vector.shape_cast %11 : vector<122x128xbf16> to vector<1x122x128xbf16>
    tpu.vector_store %arg4[%c0_11, %c0_12, %c0_13], %14 {strides = array<i32>} : memref<1x122x128xbf16, #tpu.memory_space<vmem>>, vector<1x122x128xbf16>,
    %c0_14 = arith.constant 0 : index
    %c0_15 = arith.constant 0 : index
    %15 = tpu.strided_load %arg5[%c0_14, %c0_15] {strides = array<i32: 2, 1>} : memref<256x128xf32, #tpu.memory_space<vmem>>, vector<8x128xf32>
    %c1 = arith.constant 1 : index
    %c0_16 = arith.constant 0 : index
    %16 = tpu.strided_load %arg5[%c1, %c0_16] {strides = array<i32: 2, 1>} : memref<256x128xf32, #tpu.memory_space<vmem>>, vector<8x128xf32>
    %c16 = arith.constant 16 : index
    %c0_17 = arith.constant 0 : index
    %17 = tpu.strided_load %arg5[%c16, %c0_17] {strides = array<i32: 2, 1>} : memref<256x128xf32, #tpu.memory_space<vmem>>, vector<8x128xf32>
    %c17 = arith.constant 17 : index
    %c0_18 = arith.constant 0 : index
    %18 = tpu.strided_load %arg5[%c17, %c0_18] {strides = array<i32: 2, 1>} : memref<256x128xf32, #tpu.memory_space<vmem>>, vector<8x128xf32>
    %19 = arith.maximumf %15, %16 : vector<8x128xf32>
    %20 = arith.maximumf %17, %18 : vector<8x128xf32>
    %21 = arith.maximumf %19, %20 : vector<8x128xf32>
    %22 = arith.truncf %21 : vector<8x128xf32> to vector<8x128xbf16>
    %c0_19 = arith.constant 0 : index
    %c11 = arith.constant 11 : index
    %c0_20 = arith.constant 0 : index
    %23 = vector.load %arg4[%c0_19, %c11, %c0_20] : memref<1x122x128xbf16, #tpu.memory_space<vmem>>, vector<1x8x128xbf16>
    %24 = vector.shape_cast %23 : vector<1x8x128xbf16> to vector<8x128xbf16>
    %25 = vector.shape_cast %22 : vector<8x128xbf16> to vector<1x8x128xbf16>
    tpu.vector_store %arg4[%c0_19, %c11, %c0_20], %25 {strides = array<i32>} : memref<1x122x128xbf16, #tpu.memory_space<vmem>>, vector<1x8x128xbf16>,
    %c32 = arith.constant 32 : index
    %c0_21 = arith.constant 0 : index
    %26 = tpu.strided_load %arg5[%c32, %c0_21] {strides = array<i32: 2, 1>} : memref<256x128xf32, #tpu.memory_space<vmem>>, vector<8x128xf32>
    %c33 = arith.constant 33 : index
    %c0_22 = arith.constant 0 : index
    %27 = tpu.strided_load %arg5[%c33, %c0_22] {strides = array<i32: 2, 1>} : memref<256x128xf32, #tpu.memory_space<vmem>>, vector<8x128xf32>
    %c48 = arith.constant 48 : index
    %c0_23 = arith.constant 0 : index
    %28 = tpu.strided_load %arg5[%c48, %c0_23] {strides = array<i32: 2, 1>} : memref<256x128xf32, #tpu.memory_space<vmem>>, vector<8x128xf32>
    %c49 = arith.constant 49 : index
    %c0_24 = arith.constant 0 : index
    %29 = tpu.strided_load %arg5[%c49, %c0_24] {strides = array<i32: 2, 1>} : memref<256x128xf32, #tpu.memory_space<vmem>>, vector<8x128xf32>
    %30 = arith.maximumf %26, %27 : vector<8x128xf32>
    %31 = arith.maximumf %28, %29 : vector<8x128xf32>
    %32 = arith.maximumf %30, %31 : vector<8x128xf32>
    %33 = arith.truncf %32 : vector<8x128xf32> to vector<8x128xbf16>
    %c0_25 = arith.constant 0 : index
    %c21 = arith.constant 21 : index
    %c0_26 = arith.constant 0 : index
    %34 = vector.load %arg4[%c0_25, %c21, %c0_26] : memref<1x122x128xbf16, #tpu.memory_space<vmem>>, vector<1x8x128xbf16>
    %35 = vector.shape_cast %34 : vector<1x8x128xbf16> to vector<8x128xbf16>
    %36 = vector.shape_cast %33 : vector<8x128xbf16> to vector<1x8x128xbf16>
    tpu.vector_store %arg4[%c0_25, %c21, %c0_26], %36 {strides = array<i32>} : memref<1x122x128xbf16, #tpu.memory_space<vmem>>, vector<1x8x128xbf16>,
    %c64 = arith.constant 64 : index
    %c0_27 = arith.constant 0 : index
    %37 = tpu.strided_load %arg5[%c64, %c0_27] {strides = array<i32: 2, 1>} : memref<256x128xf32, #tpu.memory_space<vmem>>, vector<8x128xf32>
    %c65 = arith.constant 65 : index
    %c0_28 = arith.constant 0 : index
    %38 = tpu.strided_load %arg5[%c65, %c0_28] {strides = array<i32: 2, 1>} : memref<256x128xf32, #tpu.memory_space<vmem>>, vector<8x128xf32>
    %c80 = arith.constant 80 : index
    %c0_29 = arith.constant 0 : index
    %39 = tpu.strided_load %arg5[%c80, %c0_29] {strides = array<i32: 2, 1>} : memref<256x128xf32, #tpu.memory_space<vmem>>, vector<8x128xf32>
    %c81 = arith.constant 81 : index
    %c0_30 = arith.constant 0 : index
    %40 = tpu.strided_load %arg5[%c81, %c0_30] {strides = array<i32: 2, 1>} : memref<256x128xf32, #tpu.memory_space<vmem>>, vector<8x128xf32>
    %41 = arith.maximumf %37, %38 : vector<8x128xf32>
    %42 = arith.maximumf %39, %40 : vector<8x128xf32>
    %43 = arith.maximumf %41, %42 : vector<8x128xf32>
    %44 = arith.truncf %43 : vector<8x128xf32> to vector<8x128xbf16>
    %c0_31 = arith.constant 0 : index
    %c31 = arith.constant 31 : index
    %c0_32 = arith.constant 0 : index
    %45 = vector.load %arg4[%c0_31, %c31, %c0_32] : memref<1x122x128xbf16, #tpu.memory_space<vmem>>, vector<1x8x128xbf16>
    %46 = vector.shape_cast %45 : vector<1x8x128xbf16> to vector<8x128xbf16>
    %47 = vector.shape_cast %44 : vector<8x128xbf16> to vector<1x8x128xbf16>
    tpu.vector_store %arg4[%c0_31, %c31, %c0_32], %47 {strides = array<i32>} : memref<1x122x128xbf16, #tpu.memory_space<vmem>>, vector<1x8x128xbf16>,
    %c96 = arith.constant 96 : index
    %c0_33 = arith.constant 0 : index
    %48 = tpu.strided_load %arg5[%c96, %c0_33] {strides = array<i32: 2, 1>} : memref<256x128xf32, #tpu.memory_space<vmem>>, vector<8x128xf32>
    %c97 = arith.constant 97 : index
    %c0_34 = arith.constant 0 : index
    %49 = tpu.strided_load %arg5[%c97, %c0_34] {strides = array<i32: 2, 1>} : memref<256x128xf32, #tpu.memory_space<vmem>>, vector<8x128xf32>
    %c112 = arith.constant 112 : index
    %c0_35 = arith.constant 0 : index
    %50 = tpu.strided_load %arg5[%c112, %c0_35] {strides = array<i32: 2, 1>} : memref<256x128xf32, #tpu.memory_space<vmem>>, vector<8x128xf32>
    %c113 = arith.constant 113 : index
    %c0_36 = arith.constant 0 : index
    %51 = tpu.strided_load %arg5[%c113, %c0_36] {strides = array<i32: 2, 1>} : memref<256x128xf32, #tpu.memory_space<vmem>>, vector<8x128xf32>
    %52 = arith.maximumf %48, %49 : vector<8x128xf32>
    %53 = arith.maximumf %50, %51 : vector<8x128xf32>
    %54 = arith.maximumf %52, %53 : vector<8x128xf32>
    %55 = arith.truncf %54 : vector<8x128xf32> to vector<8x128xbf16>
    %c0_37 = arith.constant 0 : index
    %c41 = arith.constant 41 : index
    %c0_38 = arith.constant 0 : index
    %56 = vector.load %arg4[%c0_37, %c41, %c0_38] : memref<1x122x128xbf16, #tpu.memory_space<vmem>>, vector<1x8x128xbf16>
    %57 = vector.shape_cast %56 : vector<1x8x128xbf16> to vector<8x128xbf16>
    %58 = vector.shape_cast %55 : vector<8x128xbf16> to vector<1x8x128xbf16>
    tpu.vector_store %arg4[%c0_37, %c41, %c0_38], %58 {strides = array<i32>} : memref<1x122x128xbf16, #tpu.memory_space<vmem>>, vector<1x8x128xbf16>,
    %c128 = arith.constant 128 : index
    %c0_39 = arith.constant 0 : index
    %59 = tpu.strided_load %arg5[%c128, %c0_39] {strides = array<i32: 2, 1>} : memref<256x128xf32, #tpu.memory_space<vmem>>, vector<8x128xf32>
    %c129 = arith.constant 129 : index
    %c0_40 = arith.constant 0 : index
    %60 = tpu.strided_load %arg5[%c129, %c0_40] {strides = array<i32: 2, 1>} : memref<256x128xf32, #tpu.memory_space<vmem>>, vector<8x128xf32>
    %c144 = arith.constant 144 : index
    %c0_41 = arith.constant 0 : index
    %61 = tpu.strided_load %arg5[%c144, %c0_41] {strides = array<i32: 2, 1>} : memref<256x128xf32, #tpu.memory_space<vmem>>, vector<8x128xf32>
    %c145 = arith.constant 145 : index
    %c0_42 = arith.constant 0 : index
    %62 = tpu.strided_load %arg5[%c145, %c0_42] {strides = array<i32: 2, 1>} : memref<256x128xf32, #tpu.memory_space<vmem>>, vector<8x128xf32>
    %63 = arith.maximumf %59, %60 : vector<8x128xf32>
    %64 = arith.maximumf %61, %62 : vector<8x128xf32>
    %65 = arith.maximumf %63, %64 : vector<8x128xf32>
    %66 = arith.truncf %65 : vector<8x128xf32> to vector<8x128xbf16>
    %c0_43 = arith.constant 0 : index
    %c51 = arith.constant 51 : index
    %c0_44 = arith.constant 0 : index
    %67 = vector.load %arg4[%c0_43, %c51, %c0_44] : memref<1x122x128xbf16, #tpu.memory_space<vmem>>, vector<1x8x128xbf16>
    %68 = vector.shape_cast %67 : vector<1x8x128xbf16> to vector<8x128xbf16>
    %69 = vector.shape_cast %66 : vector<8x128xbf16> to vector<1x8x128xbf16>
    tpu.vector_store %arg4[%c0_43, %c51, %c0_44], %69 {strides = array<i32>} : memref<1x122x128xbf16, #tpu.memory_space<vmem>>, vector<1x8x128xbf16>,
    %c160 = arith.constant 160 : index
    %c0_45 = arith.constant 0 : index
    %70 = tpu.strided_load %arg5[%c160, %c0_45] {strides = array<i32: 2, 1>} : memref<256x128xf32, #tpu.memory_space<vmem>>, vector<8x128xf32>
    %c161 = arith.constant 161 : index
    %c0_46 = arith.constant 0 : index
    %71 = tpu.strided_load %arg5[%c161, %c0_46] {strides = array<i32: 2, 1>} : memref<256x128xf32, #tpu.memory_space<vmem>>, vector<8x128xf32>
    %c176 = arith.constant 176 : index
    %c0_47 = arith.constant 0 : index
    %72 = tpu.strided_load %arg5[%c176, %c0_47] {strides = array<i32: 2, 1>} : memref<256x128xf32, #tpu.memory_space<vmem>>, vector<8x128xf32>
    %c177 = arith.constant 177 : index
    %c0_48 = arith.constant 0 : index
    %73 = tpu.strided_load %arg5[%c177, %c0_48] {strides = array<i32: 2, 1>} : memref<256x128xf32, #tpu.memory_space<vmem>>, vector<8x128xf32>
    %74 = arith.maximumf %70, %71 : vector<8x128xf32>
    %75 = arith.maximumf %72, %73 : vector<8x128xf32>
    %76 = arith.maximumf %74, %75 : vector<8x128xf32>
    %77 = arith.truncf %76 : vector<8x128xf32> to vector<8x128xbf16>
    %c0_49 = arith.constant 0 : index
    %c61 = arith.constant 61 : index
    %c0_50 = arith.constant 0 : index
    %78 = vector.load %arg4[%c0_49, %c61, %c0_50] : memref<1x122x128xbf16, #tpu.memory_space<vmem>>, vector<1x8x128xbf16>
    %79 = vector.shape_cast %78 : vector<1x8x128xbf16> to vector<8x128xbf16>
    %80 = vector.shape_cast %77 : vector<8x128xbf16> to vector<1x8x128xbf16>
    tpu.vector_store %arg4[%c0_49, %c61, %c0_50], %80 {strides = array<i32>} : memref<1x122x128xbf16, #tpu.memory_space<vmem>>, vector<1x8x128xbf16>,
    %c192 = arith.constant 192 : index
    %c0_51 = arith.constant 0 : index
    %81 = tpu.strided_load %arg5[%c192, %c0_51] {strides = array<i32: 2, 1>} : memref<256x128xf32, #tpu.memory_space<vmem>>, vector<8x128xf32>
    %c193 = arith.constant 193 : index
    %c0_52 = arith.constant 0 : index
    %82 = tpu.strided_load %arg5[%c193, %c0_52] {strides = array<i32: 2, 1>} : memref<256x128xf32, #tpu.memory_space<vmem>>, vector<8x128xf32>
    %c208 = arith.constant 208 : index
    %c0_53 = arith.constant 0 : index
    %83 = tpu.strided_load %arg5[%c208, %c0_53] {strides = array<i32: 2, 1>} : memref<256x128xf32, #tpu.memory_space<vmem>>, vector<8x128xf32>
    %c209 = arith.constant 209 : index
    %c0_54 = arith.constant 0 : index
    %84 = tpu.strided_load %arg5[%c209, %c0_54] {strides = array<i32: 2, 1>} : memref<256x128xf32, #tpu.memory_space<vmem>>, vector<8x128xf32>
    %85 = arith.maximumf %81, %82 : vector<8x128xf32>
    %86 = arith.maximumf %83, %84 : vector<8x128xf32>
    %87 = arith.maximumf %85, %86 : vector<8x128xf32>
    %88 = arith.truncf %87 : vector<8x128xf32> to vector<8x128xbf16>
    %c0_55 = arith.constant 0 : index
    %c71 = arith.constant 71 : index
    %c0_56 = arith.constant 0 : index
    %89 = vector.load %arg4[%c0_55, %c71, %c0_56] : memref<1x122x128xbf16, #tpu.memory_space<vmem>>, vector<1x8x128xbf16>
    %90 = vector.shape_cast %89 : vector<1x8x128xbf16> to vector<8x128xbf16>
    %91 = vector.shape_cast %88 : vector<8x128xbf16> to vector<1x8x128xbf16>
    tpu.vector_store %arg4[%c0_55, %c71, %c0_56], %91 {strides = array<i32>} : memref<1x122x128xbf16, #tpu.memory_space<vmem>>, vector<1x8x128xbf16>,
    %c224 = arith.constant 224 : index
    %c0_57 = arith.constant 0 : index
    %92 = tpu.strided_load %arg5[%c224, %c0_57] {strides = array<i32: 2, 1>} : memref<256x128xf32, #tpu.memory_space<vmem>>, vector<8x128xf32>
    %c225 = arith.constant 225 : index
    %c0_58 = arith.constant 0 : index
    %93 = tpu.strided_load %arg5[%c225, %c0_58] {strides = array<i32: 2, 1>} : memref<256x128xf32, #tpu.memory_space<vmem>>, vector<8x128xf32>
    %c240 = arith.constant 240 : index
    %c0_59 = arith.constant 0 : index
    %94 = tpu.strided_load %arg5[%c240, %c0_59] {strides = array<i32: 2, 1>} : memref<256x128xf32, #tpu.memory_space<vmem>>, vector<8x128xf32>
    %c241 = arith.constant 241 : index
    %c0_60 = arith.constant 0 : index
    %95 = tpu.strided_load %arg5[%c241, %c0_60] {strides = array<i32: 2, 1>} : memref<256x128xf32, #tpu.memory_space<vmem>>, vector<8x128xf32>
    %96 = arith.maximumf %92, %93 : vector<8x128xf32>
    %97 = arith.maximumf %94, %95 : vector<8x128xf32>
    %98 = arith.maximumf %96, %97 : vector<8x128xf32>
    %99 = arith.truncf %98 : vector<8x128xf32> to vector<8x128xbf16>
    %c0_61 = arith.constant 0 : index
    %c81_62 = arith.constant 81 : index
    %c0_63 = arith.constant 0 : index
    %100 = vector.load %arg4[%c0_61, %c81_62, %c0_63] : memref<1x122x128xbf16, #tpu.memory_space<vmem>>, vector<1x8x128xbf16>
    %101 = vector.shape_cast %100 : vector<1x8x128xbf16> to vector<8x128xbf16>
    %102 = vector.shape_cast %99 : vector<8x128xbf16> to vector<1x8x128xbf16>
    tpu.vector_store %arg4[%c0_61, %c81_62, %c0_63], %102 {strides = array<i32>} : memref<1x122x128xbf16, #tpu.memory_space<vmem>>, vector<1x8x128xbf16>,
    return
  }
  func.func @transform_0(%arg0: i32) -> (i32, i32, i32) {
    %c0_i32 = arith.constant 0 : i32
    %c0_i32_0 = arith.constant 0 : i32
    %c0_i32_1 = arith.constant 0 : i32
    return %arg0, %c0_i32, %c0_i32_0 : i32, i32, i32
  }
  func.func @transform_1(%arg0: i32) -> (i32, i32, i32) {
    %c0_i32 = arith.constant 0 : i32
    %c0_i32_0 = arith.constant 0 : i32
    %c0_i32_1 = arith.constant 0 : i32
    %c0_i32_2 = arith.constant 0 : i32
    return %c0_i32, %c0_i32_0, %c0_i32_1 : i32, i32, i32
  }
  func.func @transform_2(%arg0: i32) -> (i32, i32) {
    %c0_i32 = arith.constant 0 : i32
    %c0_i32_0 = arith.constant 0 : i32
    %c0_i32_1 = arith.constant 0 : i32
    return %c0_i32, %c0_i32_0 : i32, i32
  }
  func.func @transform_3(%arg0: i32) -> (i32, i32, i32) {
    %c0_i32 = arith.constant 0 : i32
    %c0_i32_0 = arith.constant 0 : i32
    %c0_i32_1 = arith.constant 0 : i32
    return %arg0, %c0_i32, %c0_i32_0 : i32, i32, i32
  }
}

module attributes {stable_mosaic.version = 11 : i64} {
  func.func @_conv_pool_kernel(%arg0: i32, %arg1: memref<1x122x128xbf16, #tpu.memory_space<vmem>>, %arg2: memref<9x128x128xbf16, #tpu.memory_space<vmem>>, %arg3: memref<1x128xf32, #tpu.memory_space<vmem>>, %arg4: memref<1x50x128xbf16, #tpu.memory_space<vmem>>, %arg5: memref<100x128xf32, #tpu.memory_space<vmem>>) attributes {dimension_semantics = [#tpu.dimension_semantics<parallel>], iteration_bounds = array<i64: 2>, scalar_prefetch = 0 : i64, scratch_operands = 1 : i64, tpu.core_type = #tpu.core_type<tc>, window_params = [{transform_indices = @transform_0, window_bounds = array<i64: 1, 122, 128>}, {pipeline_mode = #tpu.pipeline_mode<synchronous>, transform_indices = @transform_1, window_bounds = array<i64: 9, 128, 128>}, {pipeline_mode = #tpu.pipeline_mode<synchronous>, transform_indices = @transform_2, window_bounds = array<i64: 1, 128>}, {transform_indices = @transform_3, window_bounds = array<i64: 1, 50, 128>}]} {
    %c0 = arith.constant 0 : index
    %c0_0 = arith.constant 0 : index
    %c0_1 = arith.constant 0 : index
    %0 = vector.load %arg1[%c0, %c0_0, %c0_1] : memref<1x122x128xbf16, #tpu.memory_space<vmem>>, vector<1x100x128xbf16>
    %1 = vector.shape_cast %0 : vector<1x100x128xbf16> to vector<100x128xbf16>
    %c0_2 = arith.constant 0 : index
    %c0_3 = arith.constant 0 : index
    %c0_4 = arith.constant 0 : index
    %2 = vector.load %arg2[%c0_2, %c0_3, %c0_4] : memref<9x128x128xbf16, #tpu.memory_space<vmem>>, vector<1x128x128xbf16>
    %3 = vector.shape_cast %2 : vector<1x128x128xbf16> to vector<128x128xbf16>
    %cst = arith.constant dense<0.000000e+00> : vector<100x128xf32>
    %4 = tpu.matmul %1, %3, %cst {dimension_numbers = #tpu.dot_dimension_numbers<[1], [0], [0], [1], [0, 0, 1, 1], [], []>} : vector<100x128xbf16>, vector<128x128xbf16>, vector<100x128xf32> -> vector<100x128xf32>
    %c0_5 = arith.constant 0 : index
    %c1 = arith.constant 1 : index
    %c0_6 = arith.constant 0 : index
    %5 = vector.load %arg1[%c0_5, %c1, %c0_6] : memref<1x122x128xbf16, #tpu.memory_space<vmem>>, vector<1x100x128xbf16>
    %6 = vector.shape_cast %5 : vector<1x100x128xbf16> to vector<100x128xbf16>
    %c1_7 = arith.constant 1 : index
    %c0_8 = arith.constant 0 : index
    %c0_9 = arith.constant 0 : index
    %7 = vector.load %arg2[%c1_7, %c0_8, %c0_9] : memref<9x128x128xbf16, #tpu.memory_space<vmem>>, vector<1x128x128xbf16>
    %8 = vector.shape_cast %7 : vector<1x128x128xbf16> to vector<128x128xbf16>
    %cst_10 = arith.constant dense<0.000000e+00> : vector<100x128xf32>
    %9 = tpu.matmul %6, %8, %cst_10 {dimension_numbers = #tpu.dot_dimension_numbers<[1], [0], [0], [1], [0, 0, 1, 1], [], []>} : vector<100x128xbf16>, vector<128x128xbf16>, vector<100x128xf32> -> vector<100x128xf32>
    %10 = arith.addf %4, %9 : vector<100x128xf32>
    %c0_11 = arith.constant 0 : index
    %c2 = arith.constant 2 : index
    %c0_12 = arith.constant 0 : index
    %11 = vector.load %arg1[%c0_11, %c2, %c0_12] : memref<1x122x128xbf16, #tpu.memory_space<vmem>>, vector<1x100x128xbf16>
    %12 = vector.shape_cast %11 : vector<1x100x128xbf16> to vector<100x128xbf16>
    %c2_13 = arith.constant 2 : index
    %c0_14 = arith.constant 0 : index
    %c0_15 = arith.constant 0 : index
    %13 = vector.load %arg2[%c2_13, %c0_14, %c0_15] : memref<9x128x128xbf16, #tpu.memory_space<vmem>>, vector<1x128x128xbf16>
    %14 = vector.shape_cast %13 : vector<1x128x128xbf16> to vector<128x128xbf16>
    %cst_16 = arith.constant dense<0.000000e+00> : vector<100x128xf32>
    %15 = tpu.matmul %12, %14, %cst_16 {dimension_numbers = #tpu.dot_dimension_numbers<[1], [0], [0], [1], [0, 0, 1, 1], [], []>} : vector<100x128xbf16>, vector<128x128xbf16>, vector<100x128xf32> -> vector<100x128xf32>
    %16 = arith.addf %10, %15 : vector<100x128xf32>
    %c0_17 = arith.constant 0 : index
    %c10 = arith.constant 10 : index
    %c0_18 = arith.constant 0 : index
    %17 = vector.load %arg1[%c0_17, %c10, %c0_18] : memref<1x122x128xbf16, #tpu.memory_space<vmem>>, vector<1x100x128xbf16>
    %18 = vector.shape_cast %17 : vector<1x100x128xbf16> to vector<100x128xbf16>
    %c3 = arith.constant 3 : index
    %c0_19 = arith.constant 0 : index
    %c0_20 = arith.constant 0 : index
    %19 = vector.load %arg2[%c3, %c0_19, %c0_20] : memref<9x128x128xbf16, #tpu.memory_space<vmem>>, vector<1x128x128xbf16>
    %20 = vector.shape_cast %19 : vector<1x128x128xbf16> to vector<128x128xbf16>
    %cst_21 = arith.constant dense<0.000000e+00> : vector<100x128xf32>
    %21 = tpu.matmul %18, %20, %cst_21 {dimension_numbers = #tpu.dot_dimension_numbers<[1], [0], [0], [1], [0, 0, 1, 1], [], []>} : vector<100x128xbf16>, vector<128x128xbf16>, vector<100x128xf32> -> vector<100x128xf32>
    %22 = arith.addf %16, %21 : vector<100x128xf32>
    %c0_22 = arith.constant 0 : index
    %c11 = arith.constant 11 : index
    %c0_23 = arith.constant 0 : index
    %23 = vector.load %arg1[%c0_22, %c11, %c0_23] : memref<1x122x128xbf16, #tpu.memory_space<vmem>>, vector<1x100x128xbf16>
    %24 = vector.shape_cast %23 : vector<1x100x128xbf16> to vector<100x128xbf16>
    %c4 = arith.constant 4 : index
    %c0_24 = arith.constant 0 : index
    %c0_25 = arith.constant 0 : index
    %25 = vector.load %arg2[%c4, %c0_24, %c0_25] : memref<9x128x128xbf16, #tpu.memory_space<vmem>>, vector<1x128x128xbf16>
    %26 = vector.shape_cast %25 : vector<1x128x128xbf16> to vector<128x128xbf16>
    %cst_26 = arith.constant dense<0.000000e+00> : vector<100x128xf32>
    %27 = tpu.matmul %24, %26, %cst_26 {dimension_numbers = #tpu.dot_dimension_numbers<[1], [0], [0], [1], [0, 0, 1, 1], [], []>} : vector<100x128xbf16>, vector<128x128xbf16>, vector<100x128xf32> -> vector<100x128xf32>
    %28 = arith.addf %22, %27 : vector<100x128xf32>
    %c0_27 = arith.constant 0 : index
    %c12 = arith.constant 12 : index
    %c0_28 = arith.constant 0 : index
    %29 = vector.load %arg1[%c0_27, %c12, %c0_28] : memref<1x122x128xbf16, #tpu.memory_space<vmem>>, vector<1x100x128xbf16>
    %30 = vector.shape_cast %29 : vector<1x100x128xbf16> to vector<100x128xbf16>
    %c5 = arith.constant 5 : index
    %c0_29 = arith.constant 0 : index
    %c0_30 = arith.constant 0 : index
    %31 = vector.load %arg2[%c5, %c0_29, %c0_30] : memref<9x128x128xbf16, #tpu.memory_space<vmem>>, vector<1x128x128xbf16>
    %32 = vector.shape_cast %31 : vector<1x128x128xbf16> to vector<128x128xbf16>
    %cst_31 = arith.constant dense<0.000000e+00> : vector<100x128xf32>
    %33 = tpu.matmul %30, %32, %cst_31 {dimension_numbers = #tpu.dot_dimension_numbers<[1], [0], [0], [1], [0, 0, 1, 1], [], []>} : vector<100x128xbf16>, vector<128x128xbf16>, vector<100x128xf32> -> vector<100x128xf32>
    %34 = arith.addf %28, %33 : vector<100x128xf32>
    %c0_32 = arith.constant 0 : index
    %c20 = arith.constant 20 : index
    %c0_33 = arith.constant 0 : index
    %35 = vector.load %arg1[%c0_32, %c20, %c0_33] : memref<1x122x128xbf16, #tpu.memory_space<vmem>>, vector<1x100x128xbf16>
    %36 = vector.shape_cast %35 : vector<1x100x128xbf16> to vector<100x128xbf16>
    %c6 = arith.constant 6 : index
    %c0_34 = arith.constant 0 : index
    %c0_35 = arith.constant 0 : index
    %37 = vector.load %arg2[%c6, %c0_34, %c0_35] : memref<9x128x128xbf16, #tpu.memory_space<vmem>>, vector<1x128x128xbf16>
    %38 = vector.shape_cast %37 : vector<1x128x128xbf16> to vector<128x128xbf16>
    %cst_36 = arith.constant dense<0.000000e+00> : vector<100x128xf32>
    %39 = tpu.matmul %36, %38, %cst_36 {dimension_numbers = #tpu.dot_dimension_numbers<[1], [0], [0], [1], [0, 0, 1, 1], [], []>} : vector<100x128xbf16>, vector<128x128xbf16>, vector<100x128xf32> -> vector<100x128xf32>
    %40 = arith.addf %34, %39 : vector<100x128xf32>
    %c0_37 = arith.constant 0 : index
    %c21 = arith.constant 21 : index
    %c0_38 = arith.constant 0 : index
    %41 = vector.load %arg1[%c0_37, %c21, %c0_38] : memref<1x122x128xbf16, #tpu.memory_space<vmem>>, vector<1x100x128xbf16>
    %42 = vector.shape_cast %41 : vector<1x100x128xbf16> to vector<100x128xbf16>
    %c7 = arith.constant 7 : index
    %c0_39 = arith.constant 0 : index
    %c0_40 = arith.constant 0 : index
    %43 = vector.load %arg2[%c7, %c0_39, %c0_40] : memref<9x128x128xbf16, #tpu.memory_space<vmem>>, vector<1x128x128xbf16>
    %44 = vector.shape_cast %43 : vector<1x128x128xbf16> to vector<128x128xbf16>
    %cst_41 = arith.constant dense<0.000000e+00> : vector<100x128xf32>
    %45 = tpu.matmul %42, %44, %cst_41 {dimension_numbers = #tpu.dot_dimension_numbers<[1], [0], [0], [1], [0, 0, 1, 1], [], []>} : vector<100x128xbf16>, vector<128x128xbf16>, vector<100x128xf32> -> vector<100x128xf32>
    %46 = arith.addf %40, %45 : vector<100x128xf32>
    %c0_42 = arith.constant 0 : index
    %c22 = arith.constant 22 : index
    %c0_43 = arith.constant 0 : index
    %47 = vector.load %arg1[%c0_42, %c22, %c0_43] : memref<1x122x128xbf16, #tpu.memory_space<vmem>>, vector<1x100x128xbf16>
    %48 = vector.shape_cast %47 : vector<1x100x128xbf16> to vector<100x128xbf16>
    %c8 = arith.constant 8 : index
    %c0_44 = arith.constant 0 : index
    %c0_45 = arith.constant 0 : index
    %49 = vector.load %arg2[%c8, %c0_44, %c0_45] : memref<9x128x128xbf16, #tpu.memory_space<vmem>>, vector<1x128x128xbf16>
    %50 = vector.shape_cast %49 : vector<1x128x128xbf16> to vector<128x128xbf16>
    %cst_46 = arith.constant dense<0.000000e+00> : vector<100x128xf32>
    %51 = tpu.matmul %48, %50, %cst_46 {dimension_numbers = #tpu.dot_dimension_numbers<[1], [0], [0], [1], [0, 0, 1, 1], [], []>} : vector<100x128xbf16>, vector<128x128xbf16>, vector<100x128xf32> -> vector<100x128xf32>
    %52 = arith.addf %46, %51 : vector<100x128xf32>
    %c0_47 = arith.constant 0 : index
    %c0_48 = arith.constant 0 : index
    %53 = vector.load %arg3[%c0_47, %c0_48] : memref<1x128xf32, #tpu.memory_space<vmem>>, vector<1x128xf32>
    %54 = vector.broadcast %53 : vector<1x128xf32> to vector<100x128xf32>
    %55 = arith.addf %52, %54 : vector<100x128xf32>
    %cst_49 = arith.constant 0.000000e+00 : f32
    %56 = vector.broadcast %cst_49 : f32 to vector<100x128xf32>
    %57 = arith.maximumf %55, %56 : vector<100x128xf32>
    %c0_50 = arith.constant 0 : index
    %c0_51 = arith.constant 0 : index
    %58 = vector.load %arg5[%c0_50, %c0_51] : memref<100x128xf32, #tpu.memory_space<vmem>>, vector<100x128xf32>
    tpu.vector_store %arg5[%c0_50, %c0_51], %57 {strides = array<i32>} : memref<100x128xf32, #tpu.memory_space<vmem>>, vector<100x128xf32>,
    %cst_52 = arith.constant 0.000000e+00 : bf16
    %59 = vector.broadcast %cst_52 : bf16 to vector<50x128xbf16>
    %c0_53 = arith.constant 0 : index
    %c0_54 = arith.constant 0 : index
    %c0_55 = arith.constant 0 : index
    %60 = vector.load %arg4[%c0_53, %c0_54, %c0_55] : memref<1x50x128xbf16, #tpu.memory_space<vmem>>, vector<1x50x128xbf16>
    %61 = vector.shape_cast %60 : vector<1x50x128xbf16> to vector<50x128xbf16>
    %62 = vector.shape_cast %59 : vector<50x128xbf16> to vector<1x50x128xbf16>
    tpu.vector_store %arg4[%c0_53, %c0_54, %c0_55], %62 {strides = array<i32>} : memref<1x50x128xbf16, #tpu.memory_space<vmem>>, vector<1x50x128xbf16>,
    %c0_56 = arith.constant 0 : index
    %c0_57 = arith.constant 0 : index
    %63 = tpu.strided_load %arg5[%c0_56, %c0_57] {strides = array<i32: 2, 1>} : memref<100x128xf32, #tpu.memory_space<vmem>>, vector<4x128xf32>
    %c1_58 = arith.constant 1 : index
    %c0_59 = arith.constant 0 : index
    %64 = tpu.strided_load %arg5[%c1_58, %c0_59] {strides = array<i32: 2, 1>} : memref<100x128xf32, #tpu.memory_space<vmem>>, vector<4x128xf32>
    %c10_60 = arith.constant 10 : index
    %c0_61 = arith.constant 0 : index
    %65 = tpu.strided_load %arg5[%c10_60, %c0_61] {strides = array<i32: 2, 1>} : memref<100x128xf32, #tpu.memory_space<vmem>>, vector<4x128xf32>
    %c11_62 = arith.constant 11 : index
    %c0_63 = arith.constant 0 : index
    %66 = tpu.strided_load %arg5[%c11_62, %c0_63] {strides = array<i32: 2, 1>} : memref<100x128xf32, #tpu.memory_space<vmem>>, vector<4x128xf32>
    %67 = arith.maximumf %63, %64 : vector<4x128xf32>
    %68 = arith.maximumf %65, %66 : vector<4x128xf32>
    %69 = arith.maximumf %67, %68 : vector<4x128xf32>
    %70 = arith.truncf %69 : vector<4x128xf32> to vector<4x128xbf16>
    %c0_64 = arith.constant 0 : index
    %c7_65 = arith.constant 7 : index
    %c0_66 = arith.constant 0 : index
    %71 = vector.load %arg4[%c0_64, %c7_65, %c0_66] : memref<1x50x128xbf16, #tpu.memory_space<vmem>>, vector<1x4x128xbf16>
    %72 = vector.shape_cast %71 : vector<1x4x128xbf16> to vector<4x128xbf16>
    %73 = vector.shape_cast %70 : vector<4x128xbf16> to vector<1x4x128xbf16>
    tpu.vector_store %arg4[%c0_64, %c7_65, %c0_66], %73 {strides = array<i32>} : memref<1x50x128xbf16, #tpu.memory_space<vmem>>, vector<1x4x128xbf16>,
    %c20_67 = arith.constant 20 : index
    %c0_68 = arith.constant 0 : index
    %74 = tpu.strided_load %arg5[%c20_67, %c0_68] {strides = array<i32: 2, 1>} : memref<100x128xf32, #tpu.memory_space<vmem>>, vector<4x128xf32>
    %c21_69 = arith.constant 21 : index
    %c0_70 = arith.constant 0 : index
    %75 = tpu.strided_load %arg5[%c21_69, %c0_70] {strides = array<i32: 2, 1>} : memref<100x128xf32, #tpu.memory_space<vmem>>, vector<4x128xf32>
    %c30 = arith.constant 30 : index
    %c0_71 = arith.constant 0 : index
    %76 = tpu.strided_load %arg5[%c30, %c0_71] {strides = array<i32: 2, 1>} : memref<100x128xf32, #tpu.memory_space<vmem>>, vector<4x128xf32>
    %c31 = arith.constant 31 : index
    %c0_72 = arith.constant 0 : index
    %77 = tpu.strided_load %arg5[%c31, %c0_72] {strides = array<i32: 2, 1>} : memref<100x128xf32, #tpu.memory_space<vmem>>, vector<4x128xf32>
    %78 = arith.maximumf %74, %75 : vector<4x128xf32>
    %79 = arith.maximumf %76, %77 : vector<4x128xf32>
    %80 = arith.maximumf %78, %79 : vector<4x128xf32>
    %81 = arith.truncf %80 : vector<4x128xf32> to vector<4x128xbf16>
    %c0_73 = arith.constant 0 : index
    %c13 = arith.constant 13 : index
    %c0_74 = arith.constant 0 : index
    %82 = vector.load %arg4[%c0_73, %c13, %c0_74] : memref<1x50x128xbf16, #tpu.memory_space<vmem>>, vector<1x4x128xbf16>
    %83 = vector.shape_cast %82 : vector<1x4x128xbf16> to vector<4x128xbf16>
    %84 = vector.shape_cast %81 : vector<4x128xbf16> to vector<1x4x128xbf16>
    tpu.vector_store %arg4[%c0_73, %c13, %c0_74], %84 {strides = array<i32>} : memref<1x50x128xbf16, #tpu.memory_space<vmem>>, vector<1x4x128xbf16>,
    %c40 = arith.constant 40 : index
    %c0_75 = arith.constant 0 : index
    %85 = tpu.strided_load %arg5[%c40, %c0_75] {strides = array<i32: 2, 1>} : memref<100x128xf32, #tpu.memory_space<vmem>>, vector<4x128xf32>
    %c41 = arith.constant 41 : index
    %c0_76 = arith.constant 0 : index
    %86 = tpu.strided_load %arg5[%c41, %c0_76] {strides = array<i32: 2, 1>} : memref<100x128xf32, #tpu.memory_space<vmem>>, vector<4x128xf32>
    %c50 = arith.constant 50 : index
    %c0_77 = arith.constant 0 : index
    %87 = tpu.strided_load %arg5[%c50, %c0_77] {strides = array<i32: 2, 1>} : memref<100x128xf32, #tpu.memory_space<vmem>>, vector<4x128xf32>
    %c51 = arith.constant 51 : index
    %c0_78 = arith.constant 0 : index
    %88 = tpu.strided_load %arg5[%c51, %c0_78] {strides = array<i32: 2, 1>} : memref<100x128xf32, #tpu.memory_space<vmem>>, vector<4x128xf32>
    %89 = arith.maximumf %85, %86 : vector<4x128xf32>
    %90 = arith.maximumf %87, %88 : vector<4x128xf32>
    %91 = arith.maximumf %89, %90 : vector<4x128xf32>
    %92 = arith.truncf %91 : vector<4x128xf32> to vector<4x128xbf16>
    %c0_79 = arith.constant 0 : index
    %c19 = arith.constant 19 : index
    %c0_80 = arith.constant 0 : index
    %93 = vector.load %arg4[%c0_79, %c19, %c0_80] : memref<1x50x128xbf16, #tpu.memory_space<vmem>>, vector<1x4x128xbf16>
    %94 = vector.shape_cast %93 : vector<1x4x128xbf16> to vector<4x128xbf16>
    %95 = vector.shape_cast %92 : vector<4x128xbf16> to vector<1x4x128xbf16>
    tpu.vector_store %arg4[%c0_79, %c19, %c0_80], %95 {strides = array<i32>} : memref<1x50x128xbf16, #tpu.memory_space<vmem>>, vector<1x4x128xbf16>,
    %c60 = arith.constant 60 : index
    %c0_81 = arith.constant 0 : index
    %96 = tpu.strided_load %arg5[%c60, %c0_81] {strides = array<i32: 2, 1>} : memref<100x128xf32, #tpu.memory_space<vmem>>, vector<4x128xf32>
    %c61 = arith.constant 61 : index
    %c0_82 = arith.constant 0 : index
    %97 = tpu.strided_load %arg5[%c61, %c0_82] {strides = array<i32: 2, 1>} : memref<100x128xf32, #tpu.memory_space<vmem>>, vector<4x128xf32>
    %c70 = arith.constant 70 : index
    %c0_83 = arith.constant 0 : index
    %98 = tpu.strided_load %arg5[%c70, %c0_83] {strides = array<i32: 2, 1>} : memref<100x128xf32, #tpu.memory_space<vmem>>, vector<4x128xf32>
    %c71 = arith.constant 71 : index
    %c0_84 = arith.constant 0 : index
    %99 = tpu.strided_load %arg5[%c71, %c0_84] {strides = array<i32: 2, 1>} : memref<100x128xf32, #tpu.memory_space<vmem>>, vector<4x128xf32>
    %100 = arith.maximumf %96, %97 : vector<4x128xf32>
    %101 = arith.maximumf %98, %99 : vector<4x128xf32>
    %102 = arith.maximumf %100, %101 : vector<4x128xf32>
    %103 = arith.truncf %102 : vector<4x128xf32> to vector<4x128xbf16>
    %c0_85 = arith.constant 0 : index
    %c25 = arith.constant 25 : index
    %c0_86 = arith.constant 0 : index
    %104 = vector.load %arg4[%c0_85, %c25, %c0_86] : memref<1x50x128xbf16, #tpu.memory_space<vmem>>, vector<1x4x128xbf16>
    %105 = vector.shape_cast %104 : vector<1x4x128xbf16> to vector<4x128xbf16>
    %106 = vector.shape_cast %103 : vector<4x128xbf16> to vector<1x4x128xbf16>
    tpu.vector_store %arg4[%c0_85, %c25, %c0_86], %106 {strides = array<i32>} : memref<1x50x128xbf16, #tpu.memory_space<vmem>>, vector<1x4x128xbf16>,
    return
  }
  func.func @transform_0(%arg0: i32) -> (i32, i32, i32) {
    %c0_i32 = arith.constant 0 : i32
    %c0_i32_0 = arith.constant 0 : i32
    %c0_i32_1 = arith.constant 0 : i32
    return %arg0, %c0_i32, %c0_i32_0 : i32, i32, i32
  }
  func.func @transform_1(%arg0: i32) -> (i32, i32, i32) {
    %c0_i32 = arith.constant 0 : i32
    %c0_i32_0 = arith.constant 0 : i32
    %c0_i32_1 = arith.constant 0 : i32
    %c0_i32_2 = arith.constant 0 : i32
    return %c0_i32, %c0_i32_0, %c0_i32_1 : i32, i32, i32
  }
  func.func @transform_2(%arg0: i32) -> (i32, i32) {
    %c0_i32 = arith.constant 0 : i32
    %c0_i32_0 = arith.constant 0 : i32
    %c0_i32_1 = arith.constant 0 : i32
    return %c0_i32, %c0_i32_0 : i32, i32
  }
  func.func @transform_3(%arg0: i32) -> (i32, i32, i32) {
    %c0_i32 = arith.constant 0 : i32
    %c0_i32_0 = arith.constant 0 : i32
    %c0_i32_1 = arith.constant 0 : i32
    return %arg0, %c0_i32, %c0_i32_0 : i32, i32, i32
  }
}

module attributes {stable_mosaic.version = 11 : i64} {
  func.func @_conv3_tail_kernel(%arg0: i32, %arg1: memref<1x50x128xbf16, #tpu.memory_space<vmem>>, %arg2: memref<9x128x256xbf16, #tpu.memory_space<vmem>>, %arg3: memref<1x256xf32, #tpu.memory_space<vmem>>, %arg4: memref<1x36xbf16, #tpu.memory_space<vmem>>, %arg5: memref<1x1x128xf32, #tpu.memory_space<vmem>>, %arg6: memref<256x128xbf16, #tpu.memory_space<vmem>>, %arg7: memref<1x128xf32, #tpu.memory_space<vmem>>, %arg8: memref<128x128xbf16, #tpu.memory_space<vmem>>, %arg9: memref<128x128xbf16, #tpu.memory_space<vmem>>, %arg10: memref<1x128xf32, #tpu.memory_space<vmem>>, %arg11: memref<128x128xbf16, #tpu.memory_space<vmem>>, %arg12: memref<1x128xf32, #tpu.memory_space<vmem>>, %arg13: memref<128x128xbf16, #tpu.memory_space<vmem>>, %arg14: memref<1x128xf32, #tpu.memory_space<vmem>>, %arg15: memref<1x1x128xf32, #tpu.memory_space<vmem>>) attributes {dimension_semantics = [#tpu.dimension_semantics<parallel>], iteration_bounds = array<i64: 2>, scalar_prefetch = 0 : i64, scratch_operands = 0 : i64, tpu.core_type = #tpu.core_type<tc>, window_params = [{transform_indices = @transform_0, window_bounds = array<i64: 1, 50, 128>}, {pipeline_mode = #tpu.pipeline_mode<synchronous>, transform_indices = @transform_1, window_bounds = array<i64: 9, 128, 256>}, {pipeline_mode = #tpu.pipeline_mode<synchronous>, transform_indices = @transform_2, window_bounds = array<i64: 1, 256>}, {pipeline_mode = #tpu.pipeline_mode<synchronous>, transform_indices = @transform_3, window_bounds = array<i64: 1, 36>}, {transform_indices = @transform_4, window_bounds = array<i64: 1, 1, 128>}, {pipeline_mode = #tpu.pipeline_mode<synchronous>, transform_indices = @transform_5, window_bounds = array<i64: 256, 128>}, {pipeline_mode = #tpu.pipeline_mode<synchronous>, transform_indices = @transform_6, window_bounds = array<i64: 1, 128>}, {pipeline_mode = #tpu.pipeline_mode<synchronous>, transform_indices = @transform_7, window_bounds = array<i64: 128, 128>}, {pipeline_mode = #tpu.pipeline_mode<synchronous>, transform_indices = @transform_8, window_bounds = array<i64: 128, 128>}, {pipeline_mode = #tpu.pipeline_mode<synchronous>, transform_indices = @transform_9, window_bounds = array<i64: 1, 128>}, {pipeline_mode = #tpu.pipeline_mode<synchronous>, transform_indices = @transform_10, window_bounds = array<i64: 128, 128>}, {pipeline_mode = #tpu.pipeline_mode<synchronous>, transform_indices = @transform_11, window_bounds = array<i64: 1, 128>}, {pipeline_mode = #tpu.pipeline_mode<synchronous>, transform_indices = @transform_12, window_bounds = array<i64: 128, 128>}, {pipeline_mode = #tpu.pipeline_mode<synchronous>, transform_indices = @transform_13, window_bounds = array<i64: 1, 128>}, {transform_indices = @transform_14, window_bounds = array<i64: 1, 1, 128>}]} {
    %c0 = arith.constant 0 : index
    %c0_0 = arith.constant 0 : index
    %c0_1 = arith.constant 0 : index
    %0 = vector.load %arg1[%c0, %c0_0, %c0_1] : memref<1x50x128xbf16, #tpu.memory_space<vmem>>, vector<1x36x128xbf16>
    %1 = vector.shape_cast %0 : vector<1x36x128xbf16> to vector<36x128xbf16>
    %c0_2 = arith.constant 0 : index
    %c0_3 = arith.constant 0 : index
    %c0_4 = arith.constant 0 : index
    %2 = vector.load %arg2[%c0_2, %c0_3, %c0_4] : memref<9x128x256xbf16, #tpu.memory_space<vmem>>, vector<1x128x256xbf16>
    %3 = vector.shape_cast %2 : vector<1x128x256xbf16> to vector<128x256xbf16>
    %cst = arith.constant dense<0.000000e+00> : vector<36x256xf32>
    %4 = tpu.matmul %1, %3, %cst {dimension_numbers = #tpu.dot_dimension_numbers<[1], [0], [0], [1], [0, 0, 1, 1], [], []>} : vector<36x128xbf16>, vector<128x256xbf16>, vector<36x256xf32> -> vector<36x256xf32>
    %c0_5 = arith.constant 0 : index
    %c1 = arith.constant 1 : index
    %c0_6 = arith.constant 0 : index
    %5 = vector.load %arg1[%c0_5, %c1, %c0_6] : memref<1x50x128xbf16, #tpu.memory_space<vmem>>, vector<1x36x128xbf16>
    %6 = vector.shape_cast %5 : vector<1x36x128xbf16> to vector<36x128xbf16>
    %c1_7 = arith.constant 1 : index
    %c0_8 = arith.constant 0 : index
    %c0_9 = arith.constant 0 : index
    %7 = vector.load %arg2[%c1_7, %c0_8, %c0_9] : memref<9x128x256xbf16, #tpu.memory_space<vmem>>, vector<1x128x256xbf16>
    %8 = vector.shape_cast %7 : vector<1x128x256xbf16> to vector<128x256xbf16>
    %cst_10 = arith.constant dense<0.000000e+00> : vector<36x256xf32>
    %9 = tpu.matmul %6, %8, %cst_10 {dimension_numbers = #tpu.dot_dimension_numbers<[1], [0], [0], [1], [0, 0, 1, 1], [], []>} : vector<36x128xbf16>, vector<128x256xbf16>, vector<36x256xf32> -> vector<36x256xf32>
    %10 = arith.addf %4, %9 : vector<36x256xf32>
    %c0_11 = arith.constant 0 : index
    %c2 = arith.constant 2 : index
    %c0_12 = arith.constant 0 : index
    %11 = vector.load %arg1[%c0_11, %c2, %c0_12] : memref<1x50x128xbf16, #tpu.memory_space<vmem>>, vector<1x36x128xbf16>
    %12 = vector.shape_cast %11 : vector<1x36x128xbf16> to vector<36x128xbf16>
    %c2_13 = arith.constant 2 : index
    %c0_14 = arith.constant 0 : index
    %c0_15 = arith.constant 0 : index
    %13 = vector.load %arg2[%c2_13, %c0_14, %c0_15] : memref<9x128x256xbf16, #tpu.memory_space<vmem>>, vector<1x128x256xbf16>
    %14 = vector.shape_cast %13 : vector<1x128x256xbf16> to vector<128x256xbf16>
    %cst_16 = arith.constant dense<0.000000e+00> : vector<36x256xf32>
    %15 = tpu.matmul %12, %14, %cst_16 {dimension_numbers = #tpu.dot_dimension_numbers<[1], [0], [0], [1], [0, 0, 1, 1], [], []>} : vector<36x128xbf16>, vector<128x256xbf16>, vector<36x256xf32> -> vector<36x256xf32>
    %16 = arith.addf %10, %15 : vector<36x256xf32>
    %c0_17 = arith.constant 0 : index
    %c6 = arith.constant 6 : index
    %c0_18 = arith.constant 0 : index
    %17 = vector.load %arg1[%c0_17, %c6, %c0_18] : memref<1x50x128xbf16, #tpu.memory_space<vmem>>, vector<1x36x128xbf16>
    %18 = vector.shape_cast %17 : vector<1x36x128xbf16> to vector<36x128xbf16>
    %c3 = arith.constant 3 : index
    %c0_19 = arith.constant 0 : index
    %c0_20 = arith.constant 0 : index
    %19 = vector.load %arg2[%c3, %c0_19, %c0_20] : memref<9x128x256xbf16, #tpu.memory_space<vmem>>, vector<1x128x256xbf16>
    %20 = vector.shape_cast %19 : vector<1x128x256xbf16> to vector<128x256xbf16>
    %cst_21 = arith.constant dense<0.000000e+00> : vector<36x256xf32>
    %21 = tpu.matmul %18, %20, %cst_21 {dimension_numbers = #tpu.dot_dimension_numbers<[1], [0], [0], [1], [0, 0, 1, 1], [], []>} : vector<36x128xbf16>, vector<128x256xbf16>, vector<36x256xf32> -> vector<36x256xf32>
    %22 = arith.addf %16, %21 : vector<36x256xf32>
    %c0_22 = arith.constant 0 : index
    %c7 = arith.constant 7 : index
    %c0_23 = arith.constant 0 : index
    %23 = vector.load %arg1[%c0_22, %c7, %c0_23] : memref<1x50x128xbf16, #tpu.memory_space<vmem>>, vector<1x36x128xbf16>
    %24 = vector.shape_cast %23 : vector<1x36x128xbf16> to vector<36x128xbf16>
    %c4 = arith.constant 4 : index
    %c0_24 = arith.constant 0 : index
    %c0_25 = arith.constant 0 : index
    %25 = vector.load %arg2[%c4, %c0_24, %c0_25] : memref<9x128x256xbf16, #tpu.memory_space<vmem>>, vector<1x128x256xbf16>
    %26 = vector.shape_cast %25 : vector<1x128x256xbf16> to vector<128x256xbf16>
    %cst_26 = arith.constant dense<0.000000e+00> : vector<36x256xf32>
    %27 = tpu.matmul %24, %26, %cst_26 {dimension_numbers = #tpu.dot_dimension_numbers<[1], [0], [0], [1], [0, 0, 1, 1], [], []>} : vector<36x128xbf16>, vector<128x256xbf16>, vector<36x256xf32> -> vector<36x256xf32>
    %28 = arith.addf %22, %27 : vector<36x256xf32>
    %c0_27 = arith.constant 0 : index
    %c8 = arith.constant 8 : index
    %c0_28 = arith.constant 0 : index
    %29 = vector.load %arg1[%c0_27, %c8, %c0_28] : memref<1x50x128xbf16, #tpu.memory_space<vmem>>, vector<1x36x128xbf16>
    %30 = vector.shape_cast %29 : vector<1x36x128xbf16> to vector<36x128xbf16>
    %c5 = arith.constant 5 : index
    %c0_29 = arith.constant 0 : index
    %c0_30 = arith.constant 0 : index
    %31 = vector.load %arg2[%c5, %c0_29, %c0_30] : memref<9x128x256xbf16, #tpu.memory_space<vmem>>, vector<1x128x256xbf16>
    %32 = vector.shape_cast %31 : vector<1x128x256xbf16> to vector<128x256xbf16>
    %cst_31 = arith.constant dense<0.000000e+00> : vector<36x256xf32>
    %33 = tpu.matmul %30, %32, %cst_31 {dimension_numbers = #tpu.dot_dimension_numbers<[1], [0], [0], [1], [0, 0, 1, 1], [], []>} : vector<36x128xbf16>, vector<128x256xbf16>, vector<36x256xf32> -> vector<36x256xf32>
    %34 = arith.addf %28, %33 : vector<36x256xf32>
    %c0_32 = arith.constant 0 : index
    %c12 = arith.constant 12 : index
    %c0_33 = arith.constant 0 : index
    %35 = vector.load %arg1[%c0_32, %c12, %c0_33] : memref<1x50x128xbf16, #tpu.memory_space<vmem>>, vector<1x36x128xbf16>
    %36 = vector.shape_cast %35 : vector<1x36x128xbf16> to vector<36x128xbf16>
    %c6_34 = arith.constant 6 : index
    %c0_35 = arith.constant 0 : index
    %c0_36 = arith.constant 0 : index
    %37 = vector.load %arg2[%c6_34, %c0_35, %c0_36] : memref<9x128x256xbf16, #tpu.memory_space<vmem>>, vector<1x128x256xbf16>
    %38 = vector.shape_cast %37 : vector<1x128x256xbf16> to vector<128x256xbf16>
    %cst_37 = arith.constant dense<0.000000e+00> : vector<36x256xf32>
    %39 = tpu.matmul %36, %38, %cst_37 {dimension_numbers = #tpu.dot_dimension_numbers<[1], [0], [0], [1], [0, 0, 1, 1], [], []>} : vector<36x128xbf16>, vector<128x256xbf16>, vector<36x256xf32> -> vector<36x256xf32>
    %40 = arith.addf %34, %39 : vector<36x256xf32>
    %c0_38 = arith.constant 0 : index
    %c13 = arith.constant 13 : index
    %c0_39 = arith.constant 0 : index
    %41 = vector.load %arg1[%c0_38, %c13, %c0_39] : memref<1x50x128xbf16, #tpu.memory_space<vmem>>, vector<1x36x128xbf16>
    %42 = vector.shape_cast %41 : vector<1x36x128xbf16> to vector<36x128xbf16>
    %c7_40 = arith.constant 7 : index
    %c0_41 = arith.constant 0 : index
    %c0_42 = arith.constant 0 : index
    %43 = vector.load %arg2[%c7_40, %c0_41, %c0_42] : memref<9x128x256xbf16, #tpu.memory_space<vmem>>, vector<1x128x256xbf16>
    %44 = vector.shape_cast %43 : vector<1x128x256xbf16> to vector<128x256xbf16>
    %cst_43 = arith.constant dense<0.000000e+00> : vector<36x256xf32>
    %45 = tpu.matmul %42, %44, %cst_43 {dimension_numbers = #tpu.dot_dimension_numbers<[1], [0], [0], [1], [0, 0, 1, 1], [], []>} : vector<36x128xbf16>, vector<128x256xbf16>, vector<36x256xf32> -> vector<36x256xf32>
    %46 = arith.addf %40, %45 : vector<36x256xf32>
    %c0_44 = arith.constant 0 : index
    %c14 = arith.constant 14 : index
    %c0_45 = arith.constant 0 : index
    %47 = vector.load %arg1[%c0_44, %c14, %c0_45] : memref<1x50x128xbf16, #tpu.memory_space<vmem>>, vector<1x36x128xbf16>
    %48 = vector.shape_cast %47 : vector<1x36x128xbf16> to vector<36x128xbf16>
    %c8_46 = arith.constant 8 : index
    %c0_47 = arith.constant 0 : index
    %c0_48 = arith.constant 0 : index
    %49 = vector.load %arg2[%c8_46, %c0_47, %c0_48] : memref<9x128x256xbf16, #tpu.memory_space<vmem>>, vector<1x128x256xbf16>
    %50 = vector.shape_cast %49 : vector<1x128x256xbf16> to vector<128x256xbf16>
    %cst_49 = arith.constant dense<0.000000e+00> : vector<36x256xf32>
    %51 = tpu.matmul %48, %50, %cst_49 {dimension_numbers = #tpu.dot_dimension_numbers<[1], [0], [0], [1], [0, 0, 1, 1], [], []>} : vector<36x128xbf16>, vector<128x256xbf16>, vector<36x256xf32> -> vector<36x256xf32>
    %52 = arith.addf %46, %51 : vector<36x256xf32>
    %c0_50 = arith.constant 0 : index
    %c0_51 = arith.constant 0 : index
    %53 = vector.load %arg3[%c0_50, %c0_51] : memref<1x256xf32, #tpu.memory_space<vmem>>, vector<1x256xf32>
    %54 = vector.broadcast %53 : vector<1x256xf32> to vector<36x256xf32>
    %55 = arith.addf %52, %54 : vector<36x256xf32>
    %cst_52 = arith.constant 0.000000e+00 : f32
    %56 = vector.broadcast %cst_52 : f32 to vector<36x256xf32>
    %57 = arith.maximumf %55, %56 : vector<36x256xf32>
    %c0_53 = arith.constant 0 : index
    %c0_54 = arith.constant 0 : index
    %58 = vector.load %arg4[%c0_53, %c0_54] : memref<1x36xbf16, #tpu.memory_space<vmem>>, vector<1x36xbf16>
    %59 = arith.truncf %57 : vector<36x256xf32> to vector<36x256xbf16>
    %cst_55 = arith.constant dense<0.000000e+00> : vector<1x256xf32>
    %60 = tpu.matmul %58, %59, %cst_55 {dimension_numbers = #tpu.dot_dimension_numbers<[1], [0], [0], [1], [0, 0, 1, 1], [], []>} : vector<1x36xbf16>, vector<36x256xbf16>, vector<1x256xf32> -> vector<1x256xf32>
    %cst_56 = arith.constant 6.250000e-02 : f32
    %61 = vector.broadcast %cst_56 : f32 to vector<1x256xf32>
    %62 = arith.mulf %60, %61 : vector<1x256xf32>
    %63 = arith.truncf %62 : vector<1x256xf32> to vector<1x256xbf16>
    %c0_57 = arith.constant 0 : index
    %c0_58 = arith.constant 0 : index
    %64 = vector.load %arg6[%c0_57, %c0_58] : memref<256x128xbf16, #tpu.memory_space<vmem>>, vector<256x128xbf16>
    %cst_59 = arith.constant dense<0.000000e+00> : vector<1x128xf32>
    %65 = tpu.matmul %63, %64, %cst_59 {dimension_numbers = #tpu.dot_dimension_numbers<[1], [0], [0], [1], [0, 0, 1, 1], [], []>} : vector<1x256xbf16>, vector<256x128xbf16>, vector<1x128xf32> -> vector<1x128xf32>
    %c0_60 = arith.constant 0 : index
    %c0_61 = arith.constant 0 : index
    %66 = vector.load %arg7[%c0_60, %c0_61] : memref<1x128xf32, #tpu.memory_space<vmem>>, vector<1x128xf32>
    %67 = arith.addf %65, %66 : vector<1x128xf32>
    %cst_62 = arith.constant 0.000000e+00 : f32
    %68 = vector.broadcast %cst_62 : f32 to vector<1x128xf32>
    %69 = arith.maximumf %67, %68 : vector<1x128xf32>
    %c0_63 = arith.constant 0 : index
    %c0_64 = arith.constant 0 : index
    %c0_65 = arith.constant 0 : index
    %70 = vector.load %arg5[%c0_63, %c0_64, %c0_65] : memref<1x1x128xf32, #tpu.memory_space<vmem>>, vector<1x1x128xf32>
    %71 = vector.shape_cast %70 : vector<1x1x128xf32> to vector<1x128xf32>
    %72 = arith.truncf %71 : vector<1x128xf32> to vector<1x128xbf16>
    %c0_66 = arith.constant 0 : index
    %c0_67 = arith.constant 0 : index
    %73 = vector.load %arg8[%c0_66, %c0_67] : memref<128x128xbf16, #tpu.memory_space<vmem>>, vector<128x128xbf16>
    %cst_68 = arith.constant dense<0.000000e+00> : vector<1x128xf32>
    %74 = tpu.matmul %72, %73, %cst_68 {dimension_numbers = #tpu.dot_dimension_numbers<[1], [0], [0], [1], [0, 0, 1, 1], [], []>} : vector<1x128xbf16>, vector<128x128xbf16>, vector<1x128xf32> -> vector<1x128xf32>
    %75 = arith.truncf %69 : vector<1x128xf32> to vector<1x128xbf16>
    %c0_69 = arith.constant 0 : index
    %c0_70 = arith.constant 0 : index
    %76 = vector.load %arg9[%c0_69, %c0_70] : memref<128x128xbf16, #tpu.memory_space<vmem>>, vector<128x128xbf16>
    %cst_71 = arith.constant dense<0.000000e+00> : vector<1x128xf32>
    %77 = tpu.matmul %75, %76, %cst_71 {dimension_numbers = #tpu.dot_dimension_numbers<[1], [0], [0], [1], [0, 0, 1, 1], [], []>} : vector<1x128xbf16>, vector<128x128xbf16>, vector<1x128xf32> -> vector<1x128xf32>
    %78 = arith.addf %74, %77 : vector<1x128xf32>
    %c0_72 = arith.constant 0 : index
    %c0_73 = arith.constant 0 : index
    %79 = vector.load %arg10[%c0_72, %c0_73] : memref<1x128xf32, #tpu.memory_space<vmem>>, vector<1x128xf32>
    %80 = arith.addf %78, %79 : vector<1x128xf32>
    %cst_74 = arith.constant 0.000000e+00 : f32
    %81 = vector.broadcast %cst_74 : f32 to vector<1x128xf32>
    %82 = arith.maximumf %80, %81 : vector<1x128xf32>
    %83 = arith.truncf %82 : vector<1x128xf32> to vector<1x128xbf16>
    %c0_75 = arith.constant 0 : index
    %c0_76 = arith.constant 0 : index
    %84 = vector.load %arg11[%c0_75, %c0_76] : memref<128x128xbf16, #tpu.memory_space<vmem>>, vector<128x128xbf16>
    %cst_77 = arith.constant dense<0.000000e+00> : vector<1x128xf32>
    %85 = tpu.matmul %83, %84, %cst_77 {dimension_numbers = #tpu.dot_dimension_numbers<[1], [0], [0], [1], [0, 0, 1, 1], [], []>} : vector<1x128xbf16>, vector<128x128xbf16>, vector<1x128xf32> -> vector<1x128xf32>
    %c0_78 = arith.constant 0 : index
    %c0_79 = arith.constant 0 : index
    %86 = vector.load %arg12[%c0_78, %c0_79] : memref<1x128xf32, #tpu.memory_space<vmem>>, vector<1x128xf32>
    %87 = arith.addf %85, %86 : vector<1x128xf32>
    %cst_80 = arith.constant 0.000000e+00 : f32
    %88 = vector.broadcast %cst_80 : f32 to vector<1x128xf32>
    %89 = arith.maximumf %87, %88 : vector<1x128xf32>
    %90 = arith.truncf %89 : vector<1x128xf32> to vector<1x128xbf16>
    %c0_81 = arith.constant 0 : index
    %c0_82 = arith.constant 0 : index
    %91 = vector.load %arg13[%c0_81, %c0_82] : memref<128x128xbf16, #tpu.memory_space<vmem>>, vector<128x128xbf16>
    %cst_83 = arith.constant dense<0.000000e+00> : vector<1x128xf32>
    %92 = tpu.matmul %90, %91, %cst_83 {dimension_numbers = #tpu.dot_dimension_numbers<[1], [0], [0], [1], [0, 0, 1, 1], [], []>} : vector<1x128xbf16>, vector<128x128xbf16>, vector<1x128xf32> -> vector<1x128xf32>
    %c0_84 = arith.constant 0 : index
    %c0_85 = arith.constant 0 : index
    %93 = vector.load %arg14[%c0_84, %c0_85] : memref<1x128xf32, #tpu.memory_space<vmem>>, vector<1x128xf32>
    %94 = arith.addf %92, %93 : vector<1x128xf32>
    %c0_86 = arith.constant 0 : index
    %c0_87 = arith.constant 0 : index
    %c0_88 = arith.constant 0 : index
    %95 = vector.load %arg15[%c0_86, %c0_87, %c0_88] : memref<1x1x128xf32, #tpu.memory_space<vmem>>, vector<1x1x128xf32>
    %96 = vector.shape_cast %95 : vector<1x1x128xf32> to vector<1x128xf32>
    %97 = vector.shape_cast %94 : vector<1x128xf32> to vector<1x1x128xf32>
    tpu.vector_store %arg15[%c0_86, %c0_87, %c0_88], %97 {strides = array<i32>} : memref<1x1x128xf32, #tpu.memory_space<vmem>>, vector<1x1x128xf32>,
    return
  }
  func.func @transform_0(%arg0: i32) -> (i32, i32, i32) {
    %c0_i32 = arith.constant 0 : i32
    %c0_i32_0 = arith.constant 0 : i32
    %c0_i32_1 = arith.constant 0 : i32
    return %arg0, %c0_i32, %c0_i32_0 : i32, i32, i32
  }
  func.func @transform_1(%arg0: i32) -> (i32, i32, i32) {
    %c0_i32 = arith.constant 0 : i32
    %c0_i32_0 = arith.constant 0 : i32
    %c0_i32_1 = arith.constant 0 : i32
    %c0_i32_2 = arith.constant 0 : i32
    return %c0_i32, %c0_i32_0, %c0_i32_1 : i32, i32, i32
  }
  func.func @transform_2(%arg0: i32) -> (i32, i32) {
    %c0_i32 = arith.constant 0 : i32
    %c0_i32_0 = arith.constant 0 : i32
    %c0_i32_1 = arith.constant 0 : i32
    return %c0_i32, %c0_i32_0 : i32, i32
  }
  func.func @transform_3(%arg0: i32) -> (i32, i32) {
    %c0_i32 = arith.constant 0 : i32
    %c0_i32_0 = arith.constant 0 : i32
    %c0_i32_1 = arith.constant 0 : i32
    return %c0_i32, %c0_i32_0 : i32, i32
  }
  func.func @transform_4(%arg0: i32) -> (i32, i32, i32) {
    %c0_i32 = arith.constant 0 : i32
    %c0_i32_0 = arith.constant 0 : i32
    %c0_i32_1 = arith.constant 0 : i32
    return %arg0, %c0_i32, %c0_i32_0 : i32, i32, i32
  }
  func.func @transform_5(%arg0: i32) -> (i32, i32) {
    %c0_i32 = arith.constant 0 : i32
    %c0_i32_0 = arith.constant 0 : i32
    %c0_i32_1 = arith.constant 0 : i32
    return %c0_i32, %c0_i32_0 : i32, i32
  }
  func.func @transform_6(%arg0: i32) -> (i32, i32) {
    %c0_i32 = arith.constant 0 : i32
    %c0_i32_0 = arith.constant 0 : i32
    %c0_i32_1 = arith.constant 0 : i32
    return %c0_i32, %c0_i32_0 : i32, i32
  }
  func.func @transform_7(%arg0: i32) -> (i32, i32) {
    %c0_i32 = arith.constant 0 : i32
    %c0_i32_0 = arith.constant 0 : i32
    %c0_i32_1 = arith.constant 0 : i32
    return %c0_i32, %c0_i32_0 : i32, i32
  }
  func.func @transform_8(%arg0: i32) -> (i32, i32) {
    %c0_i32 = arith.constant 0 : i32
    %c0_i32_0 = arith.constant 0 : i32
    %c0_i32_1 = arith.constant 0 : i32
    return %c0_i32, %c0_i32_0 : i32, i32
  }
  func.func @transform_9(%arg0: i32) -> (i32, i32) {
    %c0_i32 = arith.constant 0 : i32
    %c0_i32_0 = arith.constant 0 : i32
    %c0_i32_1 = arith.constant 0 : i32
    return %c0_i32, %c0_i32_0 : i32, i32
  }
  func.func @transform_10(%arg0: i32) -> (i32, i32) {
    %c0_i32 = arith.constant 0 : i32
    %c0_i32_0 = arith.constant 0 : i32
    %c0_i32_1 = arith.constant 0 : i32
    return %c0_i32, %c0_i32_0 : i32, i32
  }
  func.func @transform_11(%arg0: i32) -> (i32, i32) {
    %c0_i32 = arith.constant 0 : i32
    %c0_i32_0 = arith.constant 0 : i32
    %c0_i32_1 = arith.constant 0 : i32
    return %c0_i32, %c0_i32_0 : i32, i32
  }
  func.func @transform_12(%arg0: i32) -> (i32, i32) {
    %c0_i32 = arith.constant 0 : i32
    %c0_i32_0 = arith.constant 0 : i32
    %c0_i32_1 = arith.constant 0 : i32
    return %c0_i32, %c0_i32_0 : i32, i32
  }
  func.func @transform_13(%arg0: i32) -> (i32, i32) {
    %c0_i32 = arith.constant 0 : i32
    %c0_i32_0 = arith.constant 0 : i32
    %c0_i32_1 = arith.constant 0 : i32
    return %c0_i32, %c0_i32_0 : i32, i32
  }
  func.func @transform_14(%arg0: i32) -> (i32, i32, i32) {
    %c0_i32 = arith.constant 0 : i32
    %c0_i32_0 = arith.constant 0 : i32
    %c0_i32_1 = arith.constant 0 : i32
    return %arg0, %c0_i32, %c0_i32_0 : i32, i32, i32
  }
}

</mosaic_0001>

<bundles_post_ra>
// kernel: _lambda_.3
= control target key start
LH: loop header
LB: loop body
LE: loop exit
PB: predicated region body
PF: predicated region fallthrough
CT: control target
= control target key end

     0   :  { %s1114_s12 = smov 0   ;;  %s1330_s0 = inlined_call_operand.vmem [shape: bf16[2,256,27], index: 0, kind: input, shape index: {}]   ;;  %s1331_s1 = inlined_call_operand.vmem [shape: bf16[1,27,128], index: 1, kind: input, shape index: {}]   ;;  %s1332_s2 = inlined_call_operand.vmem [shape: f32[1,128], index: 2, kind: input, shape index: {}]   ;;  %s1333_s3 = inlined_call_operand.vmem [shape: bf16[2,122,128], index: 3, kind: output, shape index: {}]  }
   0x1 LB: > { %s934_s13 = sadd.s32 4294967295, %s1090_s12   ;;  %p938_p0 = scmp.ge.s32.totalorder %s1090_s12, 1  ;;  %s1090_s12 = sphi %s1114_s12, %s13_s12  }
   0x2   : > { %p137_p1 = scmp.lt.s32.totalorder %s1090_s12, 3 }
   0x4   : > { %p138_p2 = pnand %p938_p0, %p137_p1 }
   0x5   : > { %v1066_v0 = vld [vmem:[%s1331_s1] sm:$0xff] (!%p138_p2)   ;;  %vm355_vm0 = vcmask (!%p138_p2), 1044480   ;;  %v1067_v1 = vld [vmem:[%s1331_s1 + $0x8] sm:$0x3f] (!%p138_p2)   ;;  %vm356_vm1 = vcmask (!%p138_p2), 1045504   ;;  %p161_p3 = scmp.lt.s32.totalorder (!%p138_p2), %s934_s13, 1 }
   0x6   : > { %141 = sbr.rel (%p138_p2) target bundleno = 294 (0x126), region = 32  ;;  %1016 = vmatprep.subr.bf16.mxu0 (!%p138_p2), %v1066_v0  ;;  %1052 = vmatprep.subr.bf16.mxu1 (!%p138_p2), %v1066_v0  ;;  %v1092_v2 = vmov (!%p138_p2), 65535   ;;  %vm306_vm2 = vcmask (!%p138_p2), 220160   ;;  %v1093_v22 = vmov (!%p138_p2), 0   ;;  %v1193_v23 = vld [vmem:[%s1332_s2] ss:$0 sm:$0xff] (!%p138_p2) }
   0x7   : > { %1017 = vmatpush3.bf16.msra.mxu0 (!%p138_p2), %v1066_v0  ;;  %1054 = vmatpush3.bf16.msra.mxu1 (!%p138_p2), %v1066_v0  ;;  %v357_v3 = vsel (!%p138_p2), %vm355_vm0, 4294967295, %v1092_v2  ;;  %vm628_vm3 = vcmask (!%p138_p2), 1043457   ;;  %vm629_vm4 = vsmask.f32 (!%p138_p2), 7942  ;;  %vm634_vm5 = vcmask (!%p138_p2), 1041408  }
   0x8   : > { %v358_v4 = vsel (!%p138_p2), %vm356_vm1, %v357_v3, 0  ;;  %vm635_vm6 = vsmask.f32 (!%p138_p2), 1280  ;;  %vm666_vm7 = vcmask (!%p138_p2), 1043458   ;;  %vm667_vm8 = vsmask.f32 (!%p138_p2), 7946  ;;  %vm1223_vm9 = vmand (!%p138_p2), %vm628_vm3, %vm629_vm4 }
   0x9   : > { %v360_v5 = vand.u32 (!%p138_p2), %v1067_v1, %v358_v4  ;;  %vm672_vm10 = vcmask (!%p138_p2), 1042432   ;;  %vm1230_vm11 = vmand (!%p138_p2), %vm634_vm5, %vm635_vm6  ;;  %vm673_vm12 = vsmask.f32 (!%p138_p2), 2304  ;;  %vm704_vm15 = vcmask (!%p138_p2), 1043459  }
   0xa   : > { %vm1255_vm13 = vmand (!%p138_p2), %vm666_vm7, %vm667_vm8  ;;  %vm705_vm0 = vsmask.f32 (!%p138_p2), 7950  ;;  %vm710_vm1 = vcmask (!%p138_p2), 1043456   ;;  %vm741_vm5 = vsmask.f32 (!%p138_p2), 7938  ;;  %vm746_vm6 = vcmask (!%p138_p2), 1040384  }
   0xb   : > { %1018 = vmatprep.subr.bf16.mxu0 (!%p138_p2), %v360_v5  ;;  %1053 = vmatprep.subr.bf16.mxu1 (!%p138_p2), %v360_v5  ;;  %vm1265_vm14 = vmand (!%p138_p2), %vm672_vm10, %vm673_vm12  ;;  %vm747_vm7 = vsmask.f32 (!%p138_p2), 256 }
   0xc   : > { %1019 = vmatpush3.bf16.msra.mxu0 (!%p138_p2), %v360_v5  ;;  %1055 = vmatpush3.bf16.msra.mxu1 (!%p138_p2), %v360_v5  ;;  %vm1286_vm3 = vmand (!%p138_p2), %vm704_vm15, %vm705_vm0 }
   0xd   : > { %s1349_s13 = smov (!%p161_p3, %s934_s13), 1  ;;  %vm1312_vm8 = vmand %vm710_vm1, %vm741_vm5 }
   0xe   : > { %s988_s18 = sshll.u32 %s1349_s13, 7  ;;  %s989_s22 = sshll.u32 %s1349_s13, 6 }
   0xf   : > { %s1134_s21 = scalar_lea.vmem %s1330_s0, %s988_s18  ;;  %s1172_s25 = scalar_lea.vmem %s1333_s3, %s989_s22 }
  0x10   : > { %v1068_v6 = vld [vmem:[%s1134_s21] sm:$0xff]   ;;  %v1070_v8 = vld [vmem:[%s1134_s21 + $0x8] sm:$0xff]   ;;  %v1072_v10 = vld [vmem:[%s1134_s21 + $0x10] sm:$0xff]   ;;  %587 = vst [vmem:[%s1172_s25] sm:$0xf] %v1093_v22 }
  0x11   : > { %v1069_v7 = vld [vmem:[%s1134_s21 + $0x40] sm:$0xff]   ;;  %1020 = vmatprep.mubr.msk.bf16.mxu0 %vm306_vm2, %v1068_v6  ;;  %v1071_v9 = vld [vmem:[%s1134_s21 + $0x48] sm:$0xff]   ;;  %v1073_v11 = vld [vmem:[%s1134_s21 + $0x50] sm:$0xff]   ;;  %588 = vst [vmem:[%s1172_s25 + $0x4] sm:$0xf] %v1093_v22 }
  0x12   : > { %1036 = vmatprep.mubr.msk.bf16.mxu1 %vm306_vm2, %v1069_v7  ;;  %1021 = vmatmul.mubr.msk.bf16.vlgmr.msra.gmra.mrb[0].mxu0 %vm306_vm2, %v1070_v8  ;;  %v1074_v12 = vld [vmem:[%s1134_s21 + $0x18] sm:$0xff]   ;;  %v1076_v14 = vld [vmem:[%s1134_s21 + $0x20] sm:$0xff]   ;;  %v1078_v16 = vld [vmem:[%s1134_s21 + $0x28] sm:$0xff]   ;;  %589 = vst [vmem:[%s1172_s25 + $0x8] sm:$0xf] %v1093_v22 }
  0x13   : > { %1037 = vmatmul.mubr.msk.bf16.vlgmr.msra.gmra.mrb[0].mxu1 %vm306_vm2, %v1071_v9  ;;  %1024 = vmatprep.mubr.msk.bf16.mxu0 %vm306_vm2, %v1072_v10  ;;  %v1075_v13 = vld [vmem:[%s1134_s21 + $0x58] sm:$0xff]   ;;  %v1077_v15 = vld [vmem:[%s1134_s21 + $0x60] sm:$0xff]   ;;  %v1079_v17 = vld [vmem:[%s1134_s21 + $0x68] sm:$0xff]   ;;  %599 = vst [vmem:[%s1172_s25 + $0x30] sm:$0xf] %v1093_v22 }
  0x14   : > { %1040 = vmatprep.mubr.msk.bf16.mxu1 %vm306_vm2, %v1073_v11  ;;  %v1080_v18 = vld [vmem:[%s1134_s21 + $0x30] sm:$0xff]   ;;  %v1082_v20 = vld [vmem:[%s1134_s21 + $0x38] sm:$0xff]   ;;  %600 = vst [vmem:[%s1172_s25 + $0x34] sm:$0xf] %v1093_v22  ;;  %601 = vst [vmem:[%s1172_s25 + $0x38] sm:$0xf] %v1093_v22 }
  0x15   : > { %v1081_v19 = vld [vmem:[%s1134_s21 + $0x70] sm:$0xff]   ;;  %v1083_v21 = vld [vmem:[%s1134_s21 + $0x78] sm:$0xff]   ;;  %602 = vst [vmem:[%s1172_s25 + $0x3c] sm:$0x1] %v1093_v22  ;;  %590 = vst [vmem:[%s1172_s25 + $0xc] sm:$0xf] %v1093_v22 }
  0x16   : > { %591 = vst [vmem:[%s1172_s25 + $0x10] sm:$0xf] %v1093_v22  ;;  %592 = vst [vmem:[%s1172_s25 + $0x14] sm:$0xf] %v1093_v22 }
  0x17   : > { %593 = vst [vmem:[%s1172_s25 + $0x18] sm:$0xf] %v1093_v22  ;;  %594 = vst [vmem:[%s1172_s25 + $0x1c] sm:$0xf] %v1093_v22 }
  0x18   : > { %595 = vst [vmem:[%s1172_s25 + $0x20] sm:$0xf] %v1093_v22  ;;  %596 = vst [vmem:[%s1172_s25 + $0x24] sm:$0xf] %v1093_v22 }
  0x19   : > { %597 = vst [vmem:[%s1172_s25 + $0x28] sm:$0xf] %v1093_v22  ;;  %598 = vst [vmem:[%s1172_s25 + $0x2c] sm:$0xf] %v1093_v22 }
  0x1a   : > { %1025 = vmatmul.mubr.msk.bf16.gmra.mrb[4].mxu0 %vm306_vm2, %v1074_v12 }
  0x1b   : > { %1041 = vmatmul.mubr.msk.bf16.gmra.mrb[4].mxu1 %vm306_vm2, %v1075_v13  ;;  %1028 = vmatprep.mubr.msk.bf16.mxu0 %vm306_vm2, %v1076_v14 }
  0x1c   : > { %1044 = vmatprep.mubr.msk.bf16.mxu1 %vm306_vm2, %v1077_v15 }
  0x22   : > { %1029 = vmatmul.mubr.msk.bf16.gmra.mrb[8].mxu0 %vm306_vm2, %v1078_v16 }
  0x23   : > { %1045 = vmatmul.mubr.msk.bf16.gmra.mrb[8].mxu1 %vm306_vm2, %v1079_v17  ;;  %1032 = vmatprep.mubr.msk.bf16.mxu0 %vm306_vm2, %v1080_v18 }
  0x24   : > { %1048 = vmatprep.mubr.msk.bf16.mxu1 %vm306_vm2, %v1081_v19 }
  0x2a   : > { %1033 = vmatmul.mubr.msk.bf16.gmra.mrb[12].mxu0 %vm306_vm2, %v1082_v20 }
  0x2b   : > { %1049 = vmatmul.mubr.msk.bf16.gmra.mrb[12].mxu1 %vm306_vm2, %v1083_v21  ;;  %vm711_vm2 = vsmask.f32 3328 }
  0x2c   : > { %vm1292_vm4 = vmand %vm710_vm1, %vm711_vm2 }
  0xe5   : > { %v1022_v24 = vpop.f32.mrb[0].mxu0 }
  0xe6   : > { %v405_v25 = vadd.f32 %v1022_v24, %v1193_v23  ;;  %v1038_v26 = vpop.f32.mrb[0].mxu1  ;;  %v396_v27 = vpop.f32.mrb[1].mxu0 }
  0xe7   : > { %v469_v28 = vadd.f32 %v1038_v26, %v1193_v23  ;;  %v397_v29 = vadd.f32 %v1193_v23, %v396_v27  ;;  %v460_v30 = vpop.f32.mrb[1].mxu1  ;;  %v1023_v31 = vpop.f32.mrb[2].mxu0 }
  0xe8   : > { %v525_v32 = vmax.f32 %v405_v25, 0.0  ;;  %v461_v33 = vadd.f32 %v1193_v23, %v460_v30  ;;  %v408_v34 = vadd.f32 %v1023_v31, %v1193_v23  ;;  %v1039_v35 = vpop.f32.mrb[2].mxu1  ;;  %v399_v36 = vpop.f32.mrb[3].mxu0 }
  0xe9   : > { %v541_v37 = vmax.f32 %v469_v28, 0.0  ;;  %v523_v38 = vmax.f32 %v397_v29, 0.0  ;;  %v472_v39 = vadd.f32 %v1039_v35, %v1193_v23  ;;  %v400_v40 = vadd.f32 %v1193_v23, %v399_v36  ;;  %v463_v41 = vpop.f32.mrb[3].mxu1 }
  0xea   : > { %557 = vst [vmem:[#allocation2 + $0x10] sm:$0xff] %v525_v32  ;;  %v539_v42 = vmax.f32 %v461_v33, 0.0  ;;  %v526_v43 = vmax.f32 %v408_v34, 0.0  ;;  %v464_v44 = vadd.f32 %v1193_v23, %v463_v41 }
  0xeb   : > { %573 = vst [vmem:[#allocation2 + $0x90] sm:$0xff] %v541_v37  ;;  %555 = vst [vmem:[#allocation2] sm:$0xff] %v523_v38  ;;  %v542_v45 = vmax.f32 %v472_v39, 0.0  ;;  %v524_v46 = vmax.f32 %v400_v40, 0.0 }
  0xec   : > { %571 = vst [vmem:[#allocation2 + $0x80] sm:$0xff] %v539_v42  ;;  %558 = vst [vmem:[#allocation2 + $0x18] sm:$0xff] %v526_v43  ;;  %v540_v47 = vmax.f32 %v464_v44, 0.0 }
  0xed   : > { %574 = vst [vmem:[#allocation2 + $0x98] sm:$0xff] %v542_v45  ;;  %556 = vst [vmem:[#allocation2 + $0x8] sm:$0xff] %v524_v46  ;;  %v1026_v48 = vpop.f32.mrb[4].mxu0 }
  0xee   : > { %572 = vst [vmem:[#allocation2 + $0x88] sm:$0xff] %v540_v47  ;;  %v421_v49 = vadd.f32 %v1026_v48, %v1193_v23  ;;  %v1042_v50 = vpop.f32.mrb[4].mxu1  ;;  %v412_v51 = vpop.f32.mrb[5].mxu0 }
  0xef   : > { %v485_v52 = vadd.f32 %v1042_v50, %v1193_v23  ;;  %v413_v53 = vadd.f32 %v1193_v23, %v412_v51  ;;  %v476_v54 = vpop.f32.mrb[5].mxu1  ;;  %v1027_v55 = vpop.f32.mrb[6].mxu0 }
  0xf0   : > { %v529_v56 = vmax.f32 %v421_v49, 0.0  ;;  %v477_v57 = vadd.f32 %v1193_v23, %v476_v54  ;;  %v424_v58 = vadd.f32 %v1027_v55, %v1193_v23  ;;  %v1043_v59 = vpop.f32.mrb[6].mxu1  ;;  %v415_v60 = vpop.f32.mrb[7].mxu0  ;;  %v631_v54 = vld [vmem:[%s1172_s25 + $0x4] sm:$0xe] }
  0xf1   : > { %v545_v61 = vmax.f32 %v485_v52, 0.0  ;;  %v527_v62 = vmax.f32 %v413_v53, 0.0  ;;  %v488_v63 = vadd.f32 %v1043_v59, %v1193_v23  ;;  %v416_v0 = vadd.f32 %v1193_v23, %v415_v60  ;;  %v479_v1 = vpop.f32.mrb[7].mxu1  ;;  %v778_v55 = vld [vmem:[%s1172_s25 + $0x18] sm:$0xe] }
  0xf2   : > { %561 = vst [vmem:[#allocation2 + $0x30] sm:$0xff] %v529_v56  ;;  %v543_v2 = vmax.f32 %v477_v57, 0.0  ;;  %v530_v3 = vmax.f32 %v424_v58, 0.0  ;;  %v480_v4 = vadd.f32 %v1193_v23, %v479_v1 }
  0xf3   : > { %v607_v5 = vld [vmem:[#allocation2 + $0x10] ss:$2 sm:$0xff]  ;;  %v609_v6 = vld [vmem:[#allocation2 + $0x11] ss:$2 sm:$0xff]  ;;  %577 = vst [vmem:[#allocation2 + $0xb0] sm:$0xff] %v545_v61  ;;  %559 = vst [vmem:[#allocation2 + $0x20] sm:$0xff] %v527_v62 }
  0xf4   : > { %v546_v7 = vmax.f32 %v488_v63, 0.0  ;;  %v528_v8 = vmax.f32 %v416_v0, 0.0  ;;  %v611_v9 = vmax.f32 %v607_v5, %v609_v6  ;;  %v757_v10 = vld [vmem:[#allocation2 + $0x90] ss:$2 sm:$0xff]  ;;  %v759_v11 = vld [vmem:[#allocation2 + $0x91] ss:$2 sm:$0xff] }
  0xf5   : > { %v603_v12 = vld [vmem:[#allocation2] ss:$2 sm:$0xff]  ;;  %575 = vst [vmem:[#allocation2 + $0xa0] sm:$0xff] %v543_v2  ;;  %562 = vst [vmem:[#allocation2 + $0x38] sm:$0xff] %v530_v3  ;;  %v761_v13 = vmax.f32 %v757_v10, %v759_v11  ;;  %v605_v14 = vld [vmem:[#allocation2 + $0x1] ss:$2 sm:$0xff] }
  0xf6   : > { %v753_v15 = vld [vmem:[#allocation2 + $0x80] ss:$2 sm:$0xff]  ;;  %v755_v16 = vld [vmem:[#allocation2 + $0x81] ss:$2 sm:$0xff]  ;;  %578 = vst [vmem:[#allocation2 + $0xb8] sm:$0xff] %v546_v7  ;;  %560 = vst [vmem:[#allocation2 + $0x28] sm:$0xff] %v528_v8  ;;  %v610_v17 = vmax.f32 %v603_v12, %v605_v14 }
  0xf7   : > { %v760_v18 = vmax.f32 %v753_v15, %v755_v16  ;;  %v544_v19 = vmax.f32 %v480_v4, 0.0  ;;  %v1030_v20 = vpop.f32.mrb[8].mxu0  ;;  %v1046_v21 = vpop.f32.mrb[8].mxu1  ;;  %v637_v16 = vld [vmem:[%s1172_s25 + $0x8] sm:$0x3] }
  0xf8   : > { %v437_v22 = vadd.f32 %v1030_v20, %v1193_v23  ;;  %v501_v24 = vadd.f32 %v1046_v21, %v1193_v23  ;;  %v428_v25 = vpop.f32.mrb[9].mxu0  ;;  %v492_v26 = vpop.f32.mrb[9].mxu1  ;;  %v612_v27 = vmax.f32 %v610_v17, %v611_v9  ;;  %v781_v17 = vld [vmem:[%s1172_s25 + $0x1c] sm:$0x3] }
  0xf9   : > { %v762_v28 = vmax.f32 %v760_v18, %v761_v13  ;;  %576 = vst [vmem:[#allocation2 + $0xa8] sm:$0xff] %v544_v19  ;;  %v429_v29 = vadd.f32 %v1193_v23, %v428_v25  ;;  %v493_v30 = vadd.f32 %v1193_v23, %v492_v26  ;;  %v1031_v31 = vpop.f32.mrb[10].mxu0  ;;  %v1047_v32 = vpop.f32.mrb[10].mxu1 }
  0xfa   : > { %v533_v33 = vmax.f32 %v437_v22, 0.0  ;;  %v549_v34 = vmax.f32 %v501_v24, 0.0  ;;  %v440_v35 = vadd.f32 %v1031_v31, %v1193_v23  ;;  %v504_v36 = vadd.f32 %v1047_v32, %v1193_v23  ;;  %v431_v37 = vpop.f32.mrb[11].mxu0  ;;  %v495_v38 = vpop.f32.mrb[11].mxu1 }
  0xfb   : > { %v990_v39 = vpack.c.bf16 %v612_v27, %v612_v27  ;;  %v994_v40 = vpack.c.bf16 %v762_v28, %v762_v28  ;;  %v531_v41 = vmax.f32 %v429_v29, 0.0  ;;  %v547_v42 = vmax.f32 %v493_v30, 0.0 }
  0xfc   : > { %v645_v43 = vld [vmem:[#allocation2 + $0x30] ss:$2 sm:$0xff]  ;;  %v647_v44 = vld [vmem:[#allocation2 + $0x31] ss:$2 sm:$0xff]  ;;  %565 = vst [vmem:[#allocation2 + $0x50] sm:$0xff] %v533_v33  ;;  %581 = vst [vmem:[#allocation2 + $0xd0] sm:$0xff] %v549_v34  ;;  %v432_v47 = vadd.f32 %v1193_v23, %v431_v37  ;;  %v496_v48 = vadd.f32 %v1193_v23, %v495_v38 }
  0xfd   : > { %v534_v45 = vmax.f32 %v440_v35, 0.0  ;;  %v550_v46 = vmax.f32 %v504_v36, 0.0  ;;  %v618_v49 = vshrl.u32 %v990_v39, 16  ;;  %v621_v50 = vshll.u32 %v990_v39, 16  ;;  %v789_v53 = vld [vmem:[#allocation2 + $0xb0] ss:$2 sm:$0xff] }
  0xfe   : > { %v768_v51 = vshrl.u32 %v994_v40, 16  ;;  %v771_v52 = vshll.u32 %v994_v40, 16  ;;  %563 = vst [vmem:[#allocation2 + $0x40] sm:$0xff] %v531_v41  ;;  %579 = vst [vmem:[#allocation2 + $0xc0] sm:$0xff] %v547_v42  ;;  %v649_v56 = vmax.f32 %v645_v43, %v647_v44  ;;  %v791_v57 = vld [vmem:[#allocation2 + $0xb1] ss:$2 sm:$0xff] }
  0xff   : > { %v641_v58 = vld [vmem:[#allocation2 + $0x20] ss:$2 sm:$0xff]  ;;  %v643_v59 = vld [vmem:[#allocation2 + $0x21] ss:$2 sm:$0xff]  ;;  %566 = vst [vmem:[#allocation2 + $0x58] sm:$0xff] %v534_v45  ;;  %582 = vst [vmem:[#allocation2 + $0xd8] sm:$0xff] %v550_v46  ;;  %v793_v3 = vmax.f32 %v789_v53, %v791_v57 }
 0x100   : > { %v620_v60 = vrot.slane %v618_v49, 6  ;;  %v623_v61 = vrot.slane %v621_v50, 7  ;;  %v770_v62 = vrot.slane %v768_v51, 6  ;;  %v773_v63 = vrot.slane %v771_v52, 7  ;;  %v1034_v0 = vpop.f32.mrb[12].mxu0  ;;  %v1050_v1 = vpop.f32.mrb[12].mxu1 }
 0x101   : > { %v648_v4 = vmax.f32 %v641_v58, %v643_v59  ;;  %v785_v5 = vld [vmem:[#allocation2 + $0xa0] ss:$2 sm:$0xff]  ;;  %v787_v6 = vld [vmem:[#allocation2 + $0xa1] ss:$2 sm:$0xff]  ;;  %v532_v7 = vmax.f32 %v432_v47, 0.0  ;;  %v548_v8 = vmax.f32 %v496_v48, 0.0  ;;  %v453_v12 = vadd.f32 %v1034_v0, %v1193_v23 }
 0x102   : > { %v624_v9 = vor.u32 %v623_v61, %v620_v60  ;;  %v774_v10 = vor.u32 %v773_v63, %v770_v62  ;;  %v792_v11 = vmax.f32 %v785_v5, %v787_v6  ;;  %v444_v13 = vpop.f32.mrb[13].mxu0  ;;  %v508_v14 = vpop.f32.mrb[13].mxu1  ;;  %v517_v19 = vadd.f32 %v1050_v1, %v1193_v23  ;;  %v669_v53 = vld [vmem:[%s1172_s25 + $0x8] sm:$0xc]  ;;  %v675_v63 = vld [vmem:[%s1172_s25 + $0xc] sm:$0x7] }
 0x103   : > { %v650_v18 = vmax.f32 %v648_v4, %v649_v56  ;;  %564 = vst [vmem:[#allocation2 + $0x48] sm:$0xff] %v532_v7  ;;  %580 = vst [vmem:[#allocation2 + $0xc8] sm:$0xff] %v548_v8  ;;  %v445_v20 = vadd.f32 %v1193_v23, %v444_v13  ;;  %v509_v21 = vadd.f32 %v1193_v23, %v508_v14  ;;  %v1035_v22 = vpop.f32.mrb[14].mxu0  ;;  %v1051_v24 = vpop.f32.mrb[14].mxu1  ;;  %v537_v33 = vmax.f32 %v453_v12, 0.0 }
 0x104   : > { %v625_v25 = vrot.slane %v624_v9, 4  ;;  %v632_v26 = vsel %vm1223_vm9, %v624_v9, %v631_v54  ;;  %v775_v27 = vrot.slane %v774_v10, 4  ;;  %v779_v28 = vsel %vm1223_vm9, %v774_v10, %v778_v55  ;;  %v447_v29 = vpop.f32.mrb[15].mxu0  ;;  %v511_v30 = vpop.f32.mrb[15].mxu1  ;;  %v810_v5 = vld [vmem:[%s1172_s25 + $0x1c] sm:$0xc]  ;;  %vm748_vm9 = vmand %vm746_vm6, %vm747_vm7 }
 0x105   : > { %633 = vst [vmem:[%s1172_s25 + $0x4] sm:$0xe] %v632_v26  ;;  %780 = vst [vmem:[%s1172_s25 + $0x18] sm:$0xe] %v779_v28  ;;  %v991_v31 = vpack.c.bf16 %v650_v18, %v650_v18  ;;  %v794_v32 = vmax.f32 %v792_v11, %v793_v3  ;;  %v553_v34 = vmax.f32 %v517_v19, 0.0  ;;  %v456_v39 = vadd.f32 %v1035_v22, %v1193_v23 }
 0x106   : > { %v638_v35 = vsel %vm1230_vm11, %v625_v25, %v637_v16  ;;  %v782_v36 = vsel %vm1230_vm11, %v775_v27, %v781_v17  ;;  %v683_v37 = vld [vmem:[#allocation2 + $0x50] ss:$2 sm:$0xff]  ;;  %v685_v38 = vld [vmem:[#allocation2 + $0x51] ss:$2 sm:$0xff]  ;;  %569 = vst [vmem:[#allocation2 + $0x70] sm:$0xff] %v537_v33  ;;  %v520_v45 = vadd.f32 %v1051_v24, %v1193_v23  ;;  %v535_v47 = vmax.f32 %v445_v20, 0.0 }
 0x107   : > { %639 = vst [vmem:[%s1172_s25 + $0x8] sm:$0x3] %v638_v35  ;;  %783 = vst [vmem:[%s1172_s25 + $0x1c] sm:$0x3] %v782_v36  ;;  %v656_v40 = vshrl.u32 %v991_v31, 16  ;;  %v659_v41 = vshll.u32 %v991_v31, 16  ;;  %v995_v42 = vpack.c.bf16 %v794_v32, %v794_v32  ;;  %v687_v46 = vmax.f32 %v683_v37, %v685_v38 }
 0x108   : > { %v821_v43 = vld [vmem:[#allocation2 + $0xd0] ss:$2 sm:$0xff]  ;;  %v823_v44 = vld [vmem:[#allocation2 + $0xd1] ss:$2 sm:$0xff]  ;;  %585 = vst [vmem:[#allocation2 + $0xf0] sm:$0xff] %v553_v34  ;;  %v551_v48 = vmax.f32 %v509_v21, 0.0  ;;  %v448_v60 = vadd.f32 %v1193_v23, %v447_v29  ;;  %v512_v61 = vadd.f32 %v1193_v23, %v511_v30 }
 0x109   : > { %v538_v49 = vmax.f32 %v456_v39, 0.0  ;;  %v658_v50 = vrot.slane %v656_v40, 5  ;;  %v661_v51 = vrot.slane %v659_v41, 6  ;;  %v800_v54 = vshrl.u32 %v995_v42, 16  ;;  %567 = vst [vmem:[#allocation2 + $0x60] sm:$0xff] %v535_v47 }
 0x10a   : > { %v803_v55 = vshll.u32 %v995_v42, 16  ;;  %v825_v56 = vmax.f32 %v821_v43, %v823_v44  ;;  %v679_v57 = vld [vmem:[#allocation2 + $0x40] ss:$2 sm:$0xff]  ;;  %v681_v58 = vld [vmem:[#allocation2 + $0x41] ss:$2 sm:$0xff]  ;;  %583 = vst [vmem:[#allocation2 + $0xe0] sm:$0xff] %v551_v48 }
 0x10b   : > { %v817_v59 = vld [vmem:[#allocation2 + $0xc0] ss:$2 sm:$0xff]  ;;  %570 = vst [vmem:[#allocation2 + $0x78] sm:$0xff] %v538_v49  ;;  %v662_v62 = vor.u32 %v661_v51, %v658_v50  ;;  %v802_v0 = vrot.slane %v800_v54, 5  ;;  %v686_v2 = vmax.f32 %v679_v57, %v681_v58  ;;  %v819_v3 = vld [vmem:[#allocation2 + $0xc1] ss:$2 sm:$0xff] }
 0x10c   : > { %v805_v1 = vrot.slane %v803_v55, 6  ;;  %v824_v6 = vmax.f32 %v817_v59, %v819_v3  ;;  %v554_v7 = vmax.f32 %v520_v45, 0.0  ;;  %v536_v8 = vmax.f32 %v448_v60, 0.0  ;;  %v813_v13 = vld [vmem:[%s1172_s25 + $0x20] sm:$0x7] }
 0x10d   : > { %v552_v9 = vmax.f32 %v512_v61, 0.0  ;;  %v663_v23 = vrot.slane %v662_v62, 4  ;;  %v670_v10 = vsel %vm1255_vm13, %v662_v62, %v669_v53  ;;  %v688_v12 = vmax.f32 %v686_v2, %v687_v46  ;;  %v707_v24 = vld [vmem:[%s1172_s25 + $0xc] sm:$0x8]  ;;  %v842_v32 = vld [vmem:[%s1172_s25 + $0x20] sm:$0x8] }
 0x10e   : > { %v806_v11 = vor.u32 %v805_v1, %v802_v0  ;;  %671 = vst [vmem:[%s1172_s25 + $0x8] sm:$0xc] %v670_v10  ;;  %v826_v14 = vmax.f32 %v824_v6, %v825_v56  ;;  %586 = vst [vmem:[#allocation2 + $0xf8] sm:$0xff] %v554_v7  ;;  %v713_v34 = vld [vmem:[%s1172_s25 + $0x10] sm:$0xf] }
 0x10f   : > { %568 = vst [vmem:[#allocation2 + $0x68] sm:$0xff] %v536_v8  ;;  %584 = vst [vmem:[#allocation2 + $0xe8] sm:$0xff] %v552_v9  ;;  %v676_v15 = vsel %vm1265_vm14, %v663_v23, %v675_v63  ;;  %v992_v18 = vpack.c.bf16 %v688_v12, %v688_v12  ;;  %v845_v50 = vld [vmem:[%s1172_s25 + $0x24] sm:$0xf]  ;;  %v743_v62 = vld [vmem:[%s1172_s25 + $0x14] sm:$0xf] }
 0x110   : > { %v807_v16 = vrot.slane %v806_v11, 4  ;;  %v811_v17 = vsel %vm1255_vm13, %v806_v11, %v810_v5  ;;  %677 = vst [vmem:[%s1172_s25 + $0xc] sm:$0x7] %v676_v15  ;;  %v996_v19 = vpack.c.bf16 %v826_v14, %v826_v14  ;;  %v749_v2 = vld [vmem:[%s1172_s25 + $0x18] sm:$0x1] }
 0x111   : > { %812 = vst [vmem:[%s1172_s25 + $0x1c] sm:$0xc] %v811_v17  ;;  %v694_v21 = vshll.u32 %v992_v18, 16  ;;  %v697_v22 = vshrl.u32 %v992_v18, 16  ;;  %v873_v5 = vld [vmem:[%s1172_s25 + $0x28] sm:$0xf] }
 0x112   : > { %v814_v20 = vsel %vm1265_vm14, %v807_v16, %v813_v13  ;;  %v832_v26 = vshll.u32 %v996_v19, 16  ;;  %v835_v27 = vshrl.u32 %v996_v19, 16  ;;  %v721_v28 = vld [vmem:[#allocation2 + $0x70] ss:$2 sm:$0xff]  ;;  %v723_v29 = vld [vmem:[#allocation2 + $0x71] ss:$2 sm:$0xff] }
 0x113   : > { %815 = vst [vmem:[%s1172_s25 + $0x20] sm:$0x7] %v814_v20  ;;  %v696_v30 = vrot.slane %v694_v21, 5  ;;  %v699_v31 = vrot.slane %v697_v22, 4  ;;  %v725_v39 = vmax.f32 %v721_v28, %v723_v29  ;;  %v876_v6 = vld [vmem:[%s1172_s25 + $0x2c] sm:$0x1] }
 0x114   : > { %v834_v35 = vrot.slane %v832_v26, 5  ;;  %v837_v36 = vrot.slane %v835_v27, 4 }
 0x115   : > { %v700_v37 = vor.u32 %v699_v31, %v696_v30  ;;  %v708_v38 = vsel %vm1286_vm3, %v696_v30, %v707_v24  ;;  %v853_v40 = vld [vmem:[#allocation2 + $0xf0] ss:$2 sm:$0xff]  ;;  %v855_v41 = vld [vmem:[#allocation2 + $0xf1] ss:$2 sm:$0xff] }
 0x116   : > { %v717_v42 = vld [vmem:[#allocation2 + $0x60] ss:$2 sm:$0xff]  ;;  %709 = vst [vmem:[%s1172_s25 + $0xc] sm:$0x8] %v708_v38  ;;  %v838_v43 = vor.u32 %v837_v36, %v834_v35  ;;  %v843_v44 = vsel %vm1286_vm3, %v834_v35, %v842_v32  ;;  %v857_v45 = vmax.f32 %v853_v40, %v855_v41  ;;  %v719_v46 = vld [vmem:[#allocation2 + $0x61] ss:$2 sm:$0xff] }
 0x117   : > { %v849_v47 = vld [vmem:[#allocation2 + $0xe0] ss:$2 sm:$0xff]  ;;  %v851_v48 = vld [vmem:[#allocation2 + $0xe1] ss:$2 sm:$0xff]  ;;  %v701_v49 = vrot.slane %v700_v37, 4  ;;  %v724_v51 = vmax.f32 %v717_v42, %v719_v46 }
 0x118   : > { %844 = vst [vmem:[%s1172_s25 + $0x20] sm:$0x8] %v843_v44  ;;  %v856_v52 = vmax.f32 %v849_v47, %v851_v48  ;;  %v839_v53 = vrot.slane %v838_v43, 4 }
 0x119   : > { %v714_v54 = vsel %vm1292_vm4, %v701_v49, %v713_v34  ;;  %v726_v55 = vmax.f32 %v724_v51, %v725_v39 }
 0x11a   : > { %v858_v56 = vmax.f32 %v856_v52, %v857_v45  ;;  %715 = vst [vmem:[%s1172_s25 + $0x10] sm:$0xf] %v714_v54  ;;  %v846_v57 = vsel %vm1292_vm4, %v839_v53, %v845_v50 }
 0x11b   : > { %847 = vst [vmem:[%s1172_s25 + $0x24] sm:$0xf] %v846_v57  ;;  %v993_v58 = vpack.c.bf16 %v726_v55, %v726_v55 }
 0x11c   : > { %v997_v59 = vpack.c.bf16 %v858_v56, %v858_v56 }
 0x11d   : > { %v732_v60 = vshrl.u32 %v993_v58, 16  ;;  %v735_v0 = vshll.u32 %v993_v58, 16 }
 0x11e   : > { %v864_v61 = vshrl.u32 %v997_v59, 16  ;;  %v867_v4 = vshll.u32 %v997_v59, 16 }
 0x11f   : > { %v734_v63 = vrot.slane %v732_v60, 7 }
 0x120   : > { %v866_v3 = vrot.slane %v864_v61, 7 }
 0x121   : > { %v737_v7 = vor.u32 %v735_v0, %v734_v63  ;;  %v738_v8 = vrot.slane %v734_v63, 4 }
 0x122   : > { %v869_v9 = vor.u32 %v867_v4, %v866_v3  ;;  %v870_v23 = vrot.slane %v866_v3, 4 }
 0x123   : > { %v744_v10 = vsel %vm1312_vm8, %v737_v7, %v743_v62  ;;  %v750_v11 = vsel %vm748_vm9, %v738_v8, %v749_v2 }
 0x124   : > { %v874_v12 = vsel %vm1312_vm8, %v869_v9, %v873_v5  ;;  %v877_v13 = vsel %vm748_vm9, %v870_v23, %v876_v6  ;;  %745 = vst [vmem:[%s1172_s25 + $0x14] sm:$0xf] %v744_v10  ;;  %751 = vst [vmem:[%s1172_s25 + $0x18] sm:$0x1] %v750_v11 }
 0x125   : > { %875 = vst [vmem:[%s1172_s25 + $0x28] sm:$0xf] %v874_v12  ;;  %878 = vst [vmem:[%s1172_s25 + $0x2c] sm:$0x1] %v877_v13 }
 0x126 PF: > { %s13_s12 = sadd.s32 1, %s1090_s12  }
 0x127   : > { %p10_p4 = scmp.ge.s32.totalorder %s13_s12, 4  }
 0x129   :  { %12 = sbr.rel (!%p10_p4) target bundleno = 1 (0x1), region = 93 }

// kernel: _lambda_.4
= control target key start
LH: loop header
LB: loop body
LE: loop exit
PB: predicated region body
PF: predicated region fallthrough
CT: control target
= control target key end

     0   :  { %s3349_s12 = smov 0   ;;  %s4128_s0 = inlined_call_operand.vmem [shape: bf16[2,122,128], index: 0, kind: input, shape index: {}]   ;;  %s4129_s1 = inlined_call_operand.vmem [shape: bf16[9,128,128], index: 1, kind: input, shape index: {}]   ;;  %s4130_s2 = inlined_call_operand.vmem [shape: f32[1,128], index: 2, kind: input, shape index: {}]   ;;  %s4131_s3 = inlined_call_operand.vmem [shape: bf16[2,50,128], index: 3, kind: output, shape index: {}]  }
   0x1 LB: > { %s2401_s13 = sadd.s32 4294967295, %s3324_s12   ;;  %p2405_p0 = scmp.ge.s32.totalorder %s3324_s12, 1  ;;  %s3324_s12 = sphi %s3349_s12, %s13_s12  }
   0x2   : > { %p137_p1 = scmp.lt.s32.totalorder %s3324_s12, 3 }
   0x4   : > { %p138_p2 = pnand %p2405_p0, %p137_p1 }
   0x5   : > { %v3213_v0 = vld [vmem:[%s4129_s1 + $0x40] sm:$0xff] (!%p138_p2)   ;;  %v3326_v1 = vmov (!%p138_p2), 0.0   ;;  %v3214_v2 = vld [vmem:[%s4129_s1 + $0x48] sm:$0xff] (!%p138_p2)   ;;  %p161_p3 = scmp.lt.s32.totalorder (!%p138_p2), %s2401_s13, 1  ;;  %vm3327_vm0 = vmmov (!%p138_p2), 0   ;;  %v3215_v3 = vld [vmem:[%s4129_s1 + $0x50] sm:$0xff] (!%p138_p2)  }
   0x6   : > { %141 = sbr.rel (%p138_p2) target bundleno = 516 (0x204), region = 32  ;;  %2789 = vmatprep.subr.bf16.mxu0 (!%p138_p2), %v3326_v1  ;;  %3185 = vmatprep.subr.bf16.mxu1 (!%p138_p2), %v3326_v1  ;;  %v3216_v4 = vld [vmem:[%s4129_s1 + $0x58] sm:$0xff] (!%p138_p2)   ;;  %v3217_v7 = vld [vmem:[%s4129_s1 + $0x60] sm:$0xff] (!%p138_p2)   ;;  %v3218_v11 = vld [vmem:[%s4129_s1 + $0x68] sm:$0xff] (!%p138_p2)   ;;  %vm252_vm1 = vsmask.f32 (!%p138_p2), 7424 }
   0x7   : > { %2790 = vmatpush3.bf16.msra.mxu0 (!%p138_p2), %v3213_v0  ;;  %3193 = vmatpush3.bf16.msra.mxu1 (!%p138_p2), %v3213_v0  ;;  %v3219_v16 = vld [vmem:[%s4129_s1 + $0x70] sm:$0xff] (!%p138_p2)   ;;  %v3220_v22 = vld [vmem:[%s4129_s1 + $0x78] sm:$0xff] (!%p138_p2)   ;;  %v3225_v29 = vld [vmem:[%s4129_s1] sm:$0xff] (!%p138_p2)   ;;  %vm618_vm2 = vcmask (!%p138_p2), 1046528   ;;  %vm1041_vm3 = vsmask.f32 (!%p138_p2), 6400 }
   0x8   : > { %2791 = vmatprep.subr.bf16.mxu0 (!%p138_p2), %v3326_v1  ;;  %3186 = vmatprep.subr.bf16.mxu1 (!%p138_p2), %v3326_v1  ;;  %v3226_v30 = vld [vmem:[%s4129_s1 + $0x80] sm:$0xff] (!%p138_p2)   ;;  %v3227_v37 = vld [vmem:[%s4129_s1 + $0x8] sm:$0xff] (!%p138_p2)   ;;  %v3230_v44 = vld [vmem:[%s4129_s1 + $0x10] sm:$0xff] (!%p138_p2)   ;;  %vm1281_vm4 = vcmask (!%p138_p2), 1045504   ;;  %vm1749_vm5 = vsmask.f32 (!%p138_p2), 5376 }
   0x9   : > { %2805 = vmatprep.mubr.msk.bf16.mxu0 (!%p138_p2), %vm3327_vm0, %v3326_v1  ;;  %2821 = vmatprep.mubr.msk.bf16.mxu1 (!%p138_p2), %vm3327_vm0, %v3326_v1  ;;  %v3228_v38 = vld [vmem:[%s4129_s1 + $0x88] sm:$0xff] (!%p138_p2)   ;;  %v3231_v45 = vld [vmem:[%s4129_s1 + $0x90] sm:$0xff] (!%p138_p2)   ;;  %v3232_v50 = vld [vmem:[%s4129_s1 + $0x18] sm:$0xff] (!%p138_p2)   ;;  %vm1989_vm6 = vcmask (!%p138_p2), 1044480   ;;  %vm2237_vm7 = vcmask (!%p138_p2), 1043459   ;;  %vm2243_vm10 = vcmask (!%p138_p2), 1041408  }
   0xa   : > { %v3233_v52 = vld [vmem:[%s4129_s1 + $0x98] sm:$0xff] (!%p138_p2)   ;;  %v3236_v57 = vld [vmem:[%s4129_s1 + $0x20] sm:$0xff] (!%p138_p2)   ;;  %v3238_v60 = vld [vmem:[%s4129_s1 + $0x28] sm:$0xff] (!%p138_p2)   ;;  %vm2238_vm8 = vsmask.f32 (!%p138_p2), 7950  ;;  %vm2275_vm13 = vcmask (!%p138_p2), 1043458  }
   0xb   : > { %2792 = vmatpush3.bf16.msra.mxu0 (!%p138_p2), %v3214_v2  ;;  %3194 = vmatpush3.bf16.msra.mxu1 (!%p138_p2), %v3214_v2  ;;  %v3237_v58 = vld [vmem:[%s4129_s1 + $0xa0] sm:$0xff] (!%p138_p2)   ;;  %v3239_v61 = vld [vmem:[%s4129_s1 + $0xa8] sm:$0xff] (!%p138_p2)   ;;  %v3240_v2 = vld [vmem:[%s4129_s1 + $0x30] sm:$0xff] (!%p138_p2)   ;;  %vm2244_vm11 = vsmask.f32 (!%p138_p2), 1280  ;;  %vm2281_vm15 = vcmask (!%p138_p2), 1040384  }
   0xc   : > { %2793 = vmatprep.subr.bf16.mxu0 (!%p138_p2), %v3326_v1  ;;  %3187 = vmatprep.subr.bf16.mxu1 (!%p138_p2), %v3326_v1  ;;  %vm4090_vm9 = vmand (!%p138_p2), %vm2237_vm7, %vm2238_vm8  ;;  %vm2276_vm14 = vsmask.f32 (!%p138_p2), 7946  ;;  %vm2341_vm7 = vsmask.f32 (!%p138_p2), 2306 }
   0xd   : > { %s4137_s13 = smov (!%p161_p3, %s2401_s13), 1  ;;  %vm4101_vm12 = vmand %vm2243_vm10, %vm2244_vm11 }
   0xe   : > { %s2649_s20 = sshll.u32 %s4137_s13, 6 }
   0xf   : > { %s3382_s23 = scalar_lea.vmem %s4128_s0, %s2649_s20  ;;  %2794 = vmatpush3.bf16.msra.mxu0 %v3215_v3  ;;  %3195 = vmatpush3.bf16.msra.mxu1 %v3215_v3  ;;  %v3241_v3 = vld [vmem:[%s4129_s1 + $0xb0] sm:$0xff]  }
  0x10   : > { %v172_v5 = vld [vmem:[%s3382_s23] sm:$0xf]  ;;  %v3389_v6 = vld [vmem:[%s3382_s23 + $0x4] sm:$0xf]  ;;  %2795 = vmatprep.subr.bf16.mxu0 %v3326_v1  ;;  %3188 = vmatprep.subr.bf16.mxu1 %v3326_v1  ;;  %v3405_v10 = vld [vmem:[%s3382_s23 + $0x8] sm:$0xff]  }
  0x11   : > { %v3397_v8 = vcombine.low %v172_v5, %v3389_v6  ;;  %v3400_v9 = vld [vmem:[%s3382_s23 + $0x20] sm:$0xff]   ;;  %v3412_v13 = vld [vmem:[%s3382_s23 + $0x28] sm:$0xff]   ;;  %v261_v15 = vshll.u32 %v3405_v10, 16  ;;  %v3432_v24 = vld [vmem:[%s3382_s23 + $0x10] sm:$0xff]   ;;  %v265_v31 = vshrl.u32 %v3405_v10, 16 }
  0x12   : > { %v285_v14 = vshll.u32 %v3400_v9, 16  ;;  %v289_v20 = vshrl.u32 %v3400_v9, 16  ;;  %v293_v21 = vshll.u32 %v3412_v13, 16  ;;  %v3436_v28 = vld [vmem:[%s3382_s23 + $0x30] ss:$0 sps:$4 sm:$0x77]  }
  0x13   : > { %2796 = vmatpush3.bf16.msra.mxu0 %v3216_v4  ;;  %3196 = vmatpush3.bf16.msra.mxu1 %v3216_v4  ;;  %v256_v12 = vshll.u32 %v3397_v8, 16  ;;  %v254_v17 = vshrl.u32 %v3397_v8, 16  ;;  %v263_v23 = vrot.slane %v261_v15, 1  ;;  %v269_v32 = vshll.u32 %v3432_v24, 16  ;;  %v3461_v43 = vld [vmem:[%s3382_s23 + $0x18] sm:$0xff]   ;;  %v3246_v15 = vld [vmem:[%s4129_s1 + $0x100] sm:$0xff]  }
  0x14   : > { %2797 = vmatprep.subr.bf16.mxu0 %v3326_v1  ;;  %3189 = vmatprep.subr.bf16.mxu1 %v3326_v1  ;;  %v3422_v19 = vrot.slane %v285_v14, 1  ;;  %v295_v27 = vrot.slane %v293_v21, 1  ;;  %v297_v35 = vshrl.u32 %v3412_v13, 16  ;;  %v301_v36 = vshll.u32 %v3436_v28, 16  ;;  %v597_v63 = vld [vmem:[%s3382_s23] sm:$0xe] }
  0x15   : > { %v258_v18 = vrot.slane %v256_v12, 1  ;;  %v271_v39 = vrot.slane %v269_v32, 1  ;;  %v267_v40 = vor.u32 %v265_v31, %v263_v23  ;;  %v273_v48 = vshrl.u32 %v3432_v24, 16  ;;  %v3242_v5 = vld [vmem:[%s4129_s1 + $0x38] sm:$0xff]   ;;  %v3257_v31 = vld [vmem:[%s4129_s1 + $0xf0] sm:$0xff]  }
  0x16   : > { %v291_v26 = vor.u32 %v289_v20, %v3422_v19  ;;  %v299_v41 = vor.u32 %v297_v35, %v295_v27  ;;  %v303_v42 = vrot.slane %v301_v36, 1  ;;  %v277_v49 = vshll.u32 %v3461_v43, 16  ;;  %v3250_v20 = vld [vmem:[%s4129_s1 + $0x110] sm:$0xff]   ;;  %v3261_v35 = vld [vmem:[%s4129_s1 + $0x138] sm:$0xff]  }
  0x17   : > { %2798 = vmatpush3.bf16.msra.mxu0 %v3217_v7  ;;  %3197 = vmatpush3.bf16.msra.mxu1 %v3217_v7  ;;  %v259_v25 = vor.u32 %v258_v18, %v254_v17  ;;  %v272_v46 = vsel %vm252_vm1, %v267_v40, %v271_v39  ;;  %v305_v51 = vshrl.u32 %v3436_v28, 16  ;;  %v275_v53 = vor.u32 %v273_v48, %v271_v39  ;;  %v3248_v18 = vld [vmem:[%s4129_s1 + $0x108] sm:$0xff]   ;;  %v3258_v32 = vld [vmem:[%s4129_s1 + $0x130] sm:$0xff]  }
  0x18   : > { %2799 = vmatprep.subr.bf16.mxu0 %v3326_v1  ;;  %3190 = vmatprep.subr.bf16.mxu1 %v3326_v1  ;;  %v296_v34 = vsel %vm252_vm1, %v291_v26, %v295_v27  ;;  %v304_v47 = vsel %vm252_vm1, %v299_v41, %v303_v42  ;;  %v279_v54 = vrot.slane %v277_v49, 1  ;;  %v281_v59 = vshrl.u32 %v3461_v43, 16  ;;  %v3254_v26 = vld [vmem:[%s4129_s1 + $0x120] sm:$0xff]   ;;  %v3642_v39 = vld [vmem:[%s3382_s23 + $0x8] sm:$0xf]  ;;  %v3647_v41 = vld [vmem:[%s3382_s23 + $0xc] sm:$0xff]  }
  0x19   : > { %v264_v33 = vsel %vm252_vm1, %v259_v25, %v263_v23  ;;  %v307_v55 = vor.u32 %v305_v51, %v303_v42  ;;  %v2465_v4 = vcombine.low %v597_v63, %v3389_v6  ;;  %v620_v7 = vrot.slane %v3405_v10, 1  ;;  %v3245_v6 = vld [vmem:[%s4129_s1 + $0xc0] sm:$0xff]   ;;  %v3252_v23 = vld [vmem:[%s4129_s1 + $0x118] sm:$0xff]  }
  0x1a   : > { %v280_v56 = vsel %vm252_vm1, %v275_v53, %v279_v54  ;;  %v283_v62 = vor.u32 %v281_v59, %v279_v54  ;;  %v622_v17 = vrot.slane %v3432_v24, 1  ;;  %v624_v21 = vrot.slane %v3461_v43, 1  ;;  %v3253_v25 = vld [vmem:[%s4129_s1 + $0xe0] sm:$0xff]  }
  0x1b   : > { %2800 = vmatpush3.bf16.msra.mxu0 %v3218_v11  ;;  %3198 = vmatpush3.bf16.msra.mxu1 %v3218_v11  ;;  %v3243_v11 = vld [vmem:[%s4129_s1 + $0xb8] sm:$0xff]   ;;  %v619_v12 = vrot.slane %v2465_v4, 1  ;;  %v626_v27 = vrot.slane %v3400_v9, 1  ;;  %v852_v51 = vrot.slane %v3647_v41, 1  ;;  %v3265_v59 = vld [vmem:[%s4129_s1 + $0x180] sm:$0xff]  }
  0x1c   : > { %2801 = vmatprep.subr.bf16.mxu0 %v3326_v1  ;;  %3191 = vmatprep.subr.bf16.mxu1 %v3326_v1  ;;  %v288_v0 = vsel %vm252_vm1, %v283_v62, %v3422_v19  ;;  %v3249_v19 = vld [vmem:[%s4129_s1 + $0xd0] sm:$0xff]   ;;  %v3676_v62 = vld [vmem:[%s3382_s23 + $0x1c] sm:$0xff]   ;;  %vm2277_vm1 = vmand %vm2275_vm13, %vm2276_vm14 }
  0x1d   : > { %v621_v14 = vsel %vm618_vm2, %v619_v12, %v620_v7  ;;  %v1069_v4 = vshrl.u32 %v3676_v62, 16 }
  0x1f   : > { %2802 = vmatpush3.bf16.msra.mxu0 %v3219_v16  ;;  %3199 = vmatpush3.bf16.msra.mxu1 %v3219_v16  ;;  %v3247_v16 = vld [vmem:[%s4129_s1 + $0xc8] sm:$0xff]   ;;  %v1071_v12 = vrot.slane %v1069_v4, 1  ;;  %v3289_v4 = vld [vmem:[%s4129_s1 + $0x1c0] sm:$0xff]  }
  0x20   : > { %2803 = vmatprep.subr.bf16.mxu0 %v3326_v1  ;;  %3192 = vmatprep.subr.bf16.mxu1 %v3326_v1 }
  0x23   : > { %2804 = vmatpush3.bf16.msra.mxu0 %v3220_v22  ;;  %3200 = vmatpush3.bf16.msra.mxu1 %v3220_v22  ;;  %v3251_v22 = vld [vmem:[%s4129_s1 + $0xd8] sm:$0xff]  }
  0x24   : > { %2833 = vmatprep.subr.bf16.mxu1 %v3326_v1  ;;  %2877 = vmatprep.subr.bf16.mxu0 %v3326_v1 }
  0x26   : > { %2806 = vmatmul.mubr.bf16.vlgmr.msra.gmra.mrb[0].mxu0 %v264_v33  ;;  %2822 = vmatmul.mubr.bf16.vlgmr.msra.gmra.mrb[0].mxu1 %v296_v34  ;;  %v628_v33 = vrot.slane %v3412_v13, 1  ;;  %v3260_v34 = vld [vmem:[%s4129_s1 + $0xf8] sm:$0xff]  }
  0x27   : > { %2834 = vmatpush3.bf16.msra.mxu1 %v3225_v29  ;;  %2878 = vmatpush3.bf16.msra.mxu0 %v3226_v30  ;;  %v3255_v29 = vld [vmem:[%s4129_s1 + $0xe8] sm:$0xff]  }
  0x28   : > { %2835 = vmatprep.subr.bf16.mxu1 %v3326_v1  ;;  %2879 = vmatprep.subr.bf16.mxu0 %v3326_v1  ;;  %v3256_v30 = vld [vmem:[%s4129_s1 + $0x128] sm:$0xff]   ;;  %v629_v36 = vsel %vm618_vm2, %v626_v27, %v628_v33 }
  0x29   : > { %2809 = vmatprep.mubr.msk.bf16.mxu0 %vm3327_vm0, %v3326_v1  ;;  %2825 = vmatprep.mubr.msk.bf16.mxu1 %vm3327_vm0, %v3326_v1 }
  0x2b   : > { %2836 = vmatpush3.bf16.msra.mxu1 %v3227_v37  ;;  %2880 = vmatpush3.bf16.msra.mxu0 %v3228_v38  ;;  %v630_v37 = vrot.slane %v3436_v28, 1  ;;  %v788_v38 = vld [vmem:[%s3382_s23 + $0x4] sm:$0xe] }
  0x2c   : > { %2837 = vmatprep.subr.bf16.mxu1 %v3326_v1  ;;  %2881 = vmatprep.subr.bf16.mxu0 %v3326_v1  ;;  %v2490_v40 = vcombine.low %v788_v38, %v3642_v39 }
  0x2d   : > { %v631_v28 = vsel %vm618_vm2, %v628_v33, %v630_v37  ;;  %v3278_v33 = vld [vmem:[%s4129_s1 + $0x168] sm:$0xff]  }
  0x2e   : > { %2810 = vmatmul.mubr.bf16.gmra.mrb[4].mxu0 %v272_v46  ;;  %2826 = vmatmul.mubr.bf16.gmra.mrb[4].mxu1 %v304_v47  ;;  %v1046_v42 = vshll.u32 %v2490_v40, 16 }
  0x2f   : > { %2838 = vmatpush3.bf16.msra.mxu1 %v3230_v44  ;;  %2882 = vmatpush3.bf16.msra.mxu0 %v3231_v45  ;;  %v1054_v44 = vshll.u32 %v3647_v41, 16  ;;  %v3259_v45 = vld [vmem:[%s3382_s23 + $0x30] ss:$0 sps:$4 sm:$0x33]  }
  0x30   : > { %2839 = vmatprep.subr.bf16.mxu1 %v3326_v1  ;;  %2883 = vmatprep.subr.bf16.mxu0 %v3326_v1  ;;  %v1048_v47 = vrot.slane %v1046_v42, 2 }
  0x31   : > { %2813 = vmatprep.mubr.msk.bf16.mxu0 %vm3327_vm0, %v3326_v1  ;;  %2829 = vmatprep.mubr.msk.bf16.mxu1 %vm3327_vm0, %v3326_v1  ;;  %v1056_v49 = vrot.slane %v1054_v44, 2 }
  0x33   : > { %2840 = vmatpush3.bf16.msra.mxu1 %v3232_v50  ;;  %2884 = vmatpush3.bf16.msra.mxu0 %v3233_v52  ;;  %v3658_v50 = vld [vmem:[%s3382_s23 + $0x14] sm:$0xff]  }
  0x34   : > { %2841 = vmatprep.subr.bf16.mxu1 %v3326_v1  ;;  %2885 = vmatprep.subr.bf16.mxu0 %v3326_v1  ;;  %v1060_v54 = vshrl.u32 %v3658_v50, 16  ;;  %v854_v63 = vrot.slane %v3658_v50, 1 }
  0x36   : > { %2814 = vmatmul.mubr.bf16.gmra.mrb[8].mxu0 %v280_v56  ;;  %2830 = vmatmul.mubr.bf16.gmra.mrb[8].mxu1 %v307_v55  ;;  %v1063_v55 = vshll.u32 %v3658_v50, 16 }
  0x37   : > { %2842 = vmatpush3.bf16.msra.mxu1 %v3236_v57  ;;  %2886 = vmatpush3.bf16.msra.mxu0 %v3237_v58  ;;  %v3264_v58 = vld [vmem:[%s4129_s1 + $0x140] sm:$0xff]  }
  0x38   : > { %2843 = vmatprep.subr.bf16.mxu1 %v3326_v1  ;;  %2887 = vmatprep.subr.bf16.mxu0 %v3326_v1 }
  0x39   : > { %2817 = vmatprep.mubr.msk.bf16.mxu0 %vm3327_vm0, %v3326_v1  ;;  %2849 = vmatprep.mubr.msk.bf16.mxu1 %vm3327_vm0, %v3326_v1 }
  0x3b   : > { %2844 = vmatpush3.bf16.msra.mxu1 %v3238_v60  ;;  %2888 = vmatpush3.bf16.msra.mxu0 %v3239_v61  ;;  %v1062_v60 = vrot.slane %v1060_v54, 1  ;;  %v1065_v61 = vrot.slane %v1063_v55, 2 }
  0x3c   : > { %2845 = vmatprep.subr.bf16.mxu1 %v3326_v1  ;;  %2889 = vmatprep.subr.bf16.mxu0 %v3326_v1 }
  0x3e   : > { %2818 = vmatmul.mubr.bf16.gmra.mrb[12].mxu0 %v288_v0  ;;  %v1066_v0 = vor.u32 %v1065_v61, %v1062_v60  ;;  %v3288_v60 = vld [vmem:[%s3382_s23 + $0x10] sm:$0xff]  }
  0x3f   : > { %2846 = vmatpush3.bf16.msra.mxu1 %v3240_v2  ;;  %2890 = vmatpush3.bf16.msra.mxu0 %v3241_v3  ;;  %v3267_v2 = vld [vmem:[%s4129_s1 + $0x148] sm:$0xff]  }
  0x40   : > { %2847 = vmatprep.subr.bf16.mxu1 %v3326_v1  ;;  %2891 = vmatprep.subr.bf16.mxu0 %v3326_v1  ;;  %v3268_v3 = vld [vmem:[%s4129_s1 + $0x188] sm:$0xff]  }
  0x41   : > { %2893 = vmatprep.mubr.msk.bf16.mxu0 %vm3327_vm0, %v3326_v1 }
  0x43   : > { %2848 = vmatpush3.bf16.msra.mxu1 %v3242_v5  ;;  %2892 = vmatpush3.bf16.msra.mxu0 %v3243_v11  ;;  %v1072_v5 = vshll.u32 %v3676_v62, 16 }
  0x44   : > { %2921 = vmatprep.subr.bf16.mxu1 %v3326_v1  ;;  %2965 = vmatprep.subr.bf16.mxu0 %v3326_v1 }
  0x46   : > { %2850 = vmatmul.mubr.bf16.vlgmr.msra.gmra.mrb[12].mxu1 %v3397_v8  ;;  %2894 = vmatmul.mubr.bf16.vlgmr.msra.gmra.mrb[16].mxu0 %v621_v14  ;;  %v623_v8 = vsel %vm618_vm2, %v620_v7, %v622_v17  ;;  %v855_v7 = vsel %vm618_vm2, %v852_v51, %v854_v63  ;;  %v3696_v14 = vld [vmem:[%s3382_s23 + $0x24] sm:$0xff]  }
  0x47   : > { %2922 = vmatpush3.bf16.msra.mxu1 %v3245_v6  ;;  %2966 = vmatpush3.bf16.msra.mxu0 %v3246_v15  ;;  %v1074_v6 = vrot.slane %v1072_v5, 2  ;;  %v3269_v15 = vld [vmem:[%s4129_s1 + $0x150] sm:$0xff]   ;;  %v3290_v5 = vld [vmem:[%s4129_s1 + $0x200] sm:$0xff]  }
  0x48   : > { %2853 = vmatprep.mubr.msk.bf16.mxu1 %vm3327_vm0, %v3326_v1  ;;  %2897 = vmatprep.mubr.msk.bf16.mxu0 %vm3327_vm0, %v3326_v1 }
  0x49   : > { %2923 = vmatprep.subr.bf16.mxu1 %v3326_v1  ;;  %2967 = vmatprep.subr.bf16.mxu0 %v3326_v1 }
  0x4b   : > { %2924 = vmatpush3.bf16.msra.mxu1 %v3247_v16  ;;  %2968 = vmatpush3.bf16.msra.mxu0 %v3248_v18  ;;  %v3271_v16 = vld [vmem:[%s4129_s1 + $0x190] sm:$0xff]   ;;  %v1075_v18 = vor.u32 %v1074_v6, %v1071_v12  ;;  %v3292_v12 = vld [vmem:[%s4129_s1 + $0x1c8] sm:$0xff]  }
  0x4c   : > { %2925 = vmatprep.subr.bf16.mxu1 %v3326_v1  ;;  %2969 = vmatprep.subr.bf16.mxu0 %v3326_v1  ;;  %v3293_v6 = vld [vmem:[%s4129_s1 + $0x208] sm:$0xff]  }
  0x4e   : > { %2854 = vmatmul.mubr.bf16.gmra.mrb[16].mxu1 %v3405_v10  ;;  %2898 = vmatmul.mubr.bf16.gmra.mrb[20].mxu0 %v623_v8  ;;  %v625_v10 = vsel %vm618_vm2, %v622_v17, %v624_v21  ;;  %v856_v17 = vrot.slane %v3676_v62, 1  ;;  %v1078_v8 = vshrl.u32 %v3696_v14, 16 }
  0x4f   : > { %2857 = vmatprep.mubr.msk.bf16.mxu1 %vm3327_vm0, %v3326_v1  ;;  %2901 = vmatprep.mubr.msk.bf16.mxu0 %vm3327_vm0, %v3326_v1 }
  0x50   : > { %2926 = vmatpush3.bf16.msra.mxu1 %v3249_v19  ;;  %2970 = vmatpush3.bf16.msra.mxu0 %v3250_v20  ;;  %v1081_v19 = vshll.u32 %v3696_v14, 16  ;;  %v3272_v20 = vld [vmem:[%s4129_s1 + $0x158] sm:$0xff]  }
  0x51   : > { %2927 = vmatprep.subr.bf16.mxu1 %v3326_v1  ;;  %2971 = vmatprep.subr.bf16.mxu0 %v3326_v1 }
  0x54   : > { %2928 = vmatpush3.bf16.msra.mxu1 %v3251_v22  ;;  %2972 = vmatpush3.bf16.msra.mxu0 %v3252_v23  ;;  %v857_v22 = vsel %vm618_vm2, %v854_v63, %v856_v17  ;;  %v1076_v23 = vsel %vm1041_vm3, %v1066_v0, %v1075_v18  ;;  %v1283_v63 = vrot.slane %v3647_v41, 2 }
  0x55   : > { %2929 = vmatprep.subr.bf16.mxu1 %v3326_v1  ;;  %2973 = vmatprep.subr.bf16.mxu0 %v3326_v1 }
  0x56   : > { %2858 = vmatmul.mubr.bf16.gmra.mrb[20].mxu1 %v3432_v24  ;;  %2902 = vmatmul.mubr.bf16.gmra.mrb[24].mxu0 %v625_v10  ;;  %v627_v24 = vsel %vm618_vm2, %v624_v21, %v626_v27  ;;  %v3274_v21 = vld [vmem:[%s4129_s1 + $0x198] sm:$0xff]   ;;  %v1080_v10 = vrot.slane %v1078_v8, 1  ;;  %v3275_v27 = vld [vmem:[%s4129_s1 + $0x160] sm:$0xff]   ;;  %v1287_v8 = vrot.slane %v3676_v62, 2  ;;  %v3298_v62 = vld [vmem:[%s3382_s23 + $0x28] sm:$0xff]  }
  0x57   : > { %2861 = vmatprep.mubr.msk.bf16.mxu1 %vm3327_vm0, %v3326_v1  ;;  %2905 = vmatprep.mubr.msk.bf16.mxu0 %vm3327_vm0, %v3326_v1 }
  0x58   : > { %2930 = vmatpush3.bf16.msra.mxu1 %v3253_v25  ;;  %2974 = vmatpush3.bf16.msra.mxu0 %v3254_v26  ;;  %v1083_v25 = vrot.slane %v1081_v19, 2  ;;  %v3724_v26 = vld [vmem:[%s3382_s23 + $0x2c] sm:$0xff]  }
  0x59   : > { %2931 = vmatprep.subr.bf16.mxu1 %v3326_v1  ;;  %2975 = vmatprep.subr.bf16.mxu0 %v3326_v1  ;;  %v860_v42 = vrot.slane %v3724_v26, 1 }
  0x5c   : > { %2932 = vmatpush3.bf16.msra.mxu1 %v3255_v29  ;;  %2976 = vmatpush3.bf16.msra.mxu0 %v3256_v30  ;;  %v3276_v29 = vld [vmem:[%s4129_s1 + $0x1a0] sm:$0xff]   ;;  %v858_v30 = vrot.slane %v3696_v14, 1 }
  0x5d   : > { %2933 = vmatprep.subr.bf16.mxu1 %v3326_v1  ;;  %2977 = vmatprep.subr.bf16.mxu0 %v3326_v1 }
  0x5e   : > { %2862 = vmatmul.mubr.bf16.gmra.mrb[24].mxu1 %v3461_v43  ;;  %2906 = vmatmul.mubr.bf16.gmra.mrb[28].mxu0 %v627_v24  ;;  %v1051_v43 = vshrl.u32 %v3647_v41, 16  ;;  %v1084_v24 = vor.u32 %v1083_v25, %v1080_v10  ;;  %v1285_v41 = vrot.slane %v3658_v50, 2  ;;  %v3300_v10 = vld [vmem:[%s4129_s1 + $0x1e0] sm:$0xff]  }
  0x5f   : > { %2865 = vmatprep.mubr.msk.bf16.mxu1 %vm3327_vm0, %v3326_v1  ;;  %2909 = vmatprep.mubr.msk.bf16.mxu0 %vm3327_vm0, %v3326_v1  ;;  %v3301_v25 = vld [vmem:[%s4129_s1 + $0x220] sm:$0xff]  }
  0x60   : > { %2934 = vmatpush3.bf16.msra.mxu1 %v3257_v31  ;;  %2978 = vmatpush3.bf16.msra.mxu0 %v3258_v32  ;;  %v1053_v48 = vrot.slane %v1051_v43, 1  ;;  %v1087_v31 = vshrl.u32 %v3724_v26, 16  ;;  %v1090_v32 = vshll.u32 %v3724_v26, 16  ;;  %v1286_v50 = vsel %vm1281_vm4, %v1283_v63, %v1285_v41 }
  0x61   : > { %2935 = vmatprep.subr.bf16.mxu1 %v3326_v1  ;;  %2979 = vmatprep.subr.bf16.mxu0 %v3326_v1 }
  0x62   : > { %v1057_v53 = vor.u32 %v1056_v49, %v1053_v48  ;;  %v1092_v38 = vrot.slane %v1090_v32, 2  ;;  %v861_v48 = vsel %vm618_vm2, %v858_v30, %v860_v42 }
  0x64   : > { %2936 = vmatpush3.bf16.msra.mxu1 %v3260_v34  ;;  %2980 = vmatpush3.bf16.msra.mxu0 %v3261_v35  ;;  %v1067_v11 = vsel %vm1041_vm3, %v1057_v53, %v1066_v0  ;;  %v3279_v34 = vld [vmem:[%s4129_s1 + $0x1a8] sm:$0xff]   ;;  %v859_v35 = vsel %vm618_vm2, %v856_v17, %v858_v30  ;;  %v3294_v17 = vld [vmem:[%s4129_s1 + $0x1d0] sm:$0xff]  }
  0x65   : > { %3009 = vmatprep.subr.bf16.mxu1 %v3326_v1  ;;  %3053 = vmatprep.subr.bf16.mxu0 %v3326_v1  ;;  %v3303_v30 = vld [vmem:[%s4129_s1 + $0x1e8] sm:$0xff]  }
  0x66   : > { %2866 = vmatmul.mubr.bf16.gmra.mrb[28].mxu1 %v3400_v9  ;;  %2910 = vmatmul.mubr.bf16.gmra.mrb[32].mxu0 %v629_v36  ;;  %v1043_v9 = vshrl.u32 %v2490_v40, 16  ;;  %v1085_v36 = vsel %vm1041_vm3, %v1075_v18, %v1084_v24  ;;  %v3296_v18 = vld [vmem:[%s4129_s1 + $0x210] sm:$0xff]  }
  0x67   : > { %2869 = vmatprep.mubr.msk.bf16.mxu1 %vm3327_vm0, %v3326_v1  ;;  %2913 = vmatprep.mubr.msk.bf16.mxu0 %vm3327_vm0, %v3326_v1 }
  0x68   : > { %v1045_v46 = vrot.slane %v1043_v9, 1  ;;  %v3283_v9 = vld [vmem:[%s4129_s1 + $0x1b0] sm:$0xff]  }
  0x6a   : > { %v1049_v52 = vor.u32 %v1048_v47, %v1045_v46  ;;  %v3284_v46 = vld [vmem:[%s4129_s1 + $0x178] sm:$0xff]  }
  0x6b   : > { %v3285_v47 = vld [vmem:[%s4129_s1 + $0x1b8] sm:$0xff]  }
  0x6c   : > { %v1058_v57 = vsel %vm1041_vm3, %v1049_v52, %v1057_v53 }
  0x6e   : > { %2870 = vmatmul.mubr.bf16.gmra.mrb[32].mxu1 %v3412_v13  ;;  %2914 = vmatmul.mubr.bf16.gmra.mrb[36].mxu0 %v631_v28  ;;  %v851_v13 = vrot.slane %v2490_v40, 1  ;;  %v3752_v40 = vld [vmem:[%s3382_s23 + $0x34] ss:$0 sps:$4 sm:$0xff]  }
  0x6f   : > { %2873 = vmatprep.mubr.msk.bf16.mxu1 %vm3327_vm0, %v3326_v1  ;;  %2917 = vmatprep.mubr.msk.bf16.mxu0 %vm3327_vm0, %v3326_v1  ;;  %v3282_v28 = vld [vmem:[%s4129_s1 + $0x170] sm:$0xff]   ;;  %v1096_v44 = vshrl.u32 %v3752_v40, 16 }
  0x70   : > { %v853_v56 = vsel %vm618_vm2, %v851_v13, %v852_v51  ;;  %v3280_v13 = vld [vmem:[%s3382_s23 + $0x34] ss:$0 sps:$4 sm:$0x77]  }
  0x71   : > { %v1098_v51 = vrot.slane %v1096_v44, 1  ;;  %v862_v53 = vrot.slane %v3280_v13, 1  ;;  %v1683_v44 = vld [vmem:[%s3382_s23 + $0x8] sm:$0xc] }
  0x73   : > { %v863_v55 = vsel %vm618_vm2, %v860_v42, %v862_v53  ;;  %v1293_v42 = vrot.slane %v3752_v40, 2 }
  0x76   : > { %2874 = vmatmul.mubr.bf16.gmra.mrb[36].mxu1 %v3259_v45  ;;  %2918 = vmatmul.mubr.bf16.gmra.mrb[40].mxu0 %v630_v37  ;;  %v1089_v37 = vrot.slane %v1087_v31, 1  ;;  %v1099_v45 = vshll.u32 %v3752_v40, 16 }
  0x77   : > { %2937 = vmatprep.mubr.msk.bf16.mxu1 %vm3327_vm0, %v3326_v1  ;;  %2981 = vmatprep.mubr.msk.bf16.mxu0 %vm3327_vm0, %v3326_v1 }
  0x78   : > { %v1093_v43 = vor.u32 %v1092_v38, %v1089_v37  ;;  %v1101_v52 = vrot.slane %v1099_v45, 2  ;;  %v3308_v37 = vld [vmem:[%s4129_s1 + $0x1f8] sm:$0xff]   ;;  %v1684_v45 = vld [vmem:[%s3382_s23 + $0xc] sm:$0xf] }
  0x79   : > { %v3309_v38 = vld [vmem:[%s4129_s1 + $0x238] sm:$0xff]  }
  0x7a   : > { %v1094_v49 = vsel %vm1041_vm3, %v1084_v24, %v1093_v43  ;;  %v1102_v54 = vor.u32 %v1101_v52, %v1098_v51  ;;  %v3304_v24 = vld [vmem:[%s4129_s1 + $0x228] sm:$0xff]  }
  0x7e   : > { %2938 = vmatmul.mubr.bf16.vlgmr.msra.gmra.mrb[40].mxu1 %v853_v56  ;;  %2982 = vmatmul.mubr.bf16.vlgmr.msra.gmra.mrb[44].mxu0 %v1058_v57  ;;  %v1103_v56 = vsel %vm1041_vm3, %v1093_v43, %v1102_v54  ;;  %v1260_v57 = vld [vmem:[%s3382_s23 + $0x4] sm:$0xc]  ;;  %vm2311_vm3 = vcmask 1043457  }
  0x7f   : > { %3010 = vmatpush3.bf16.msra.mxu1 %v3264_v58  ;;  %3054 = vmatpush3.bf16.msra.mxu0 %v3265_v59  ;;  %v2546_v58 = vcombine.low %v1260_v57, %v3642_v39  ;;  %v3287_v59 = vld [vmem:[%s3382_s23 + $0x8] sm:$0xfc]  }
  0x80   : > { %2941 = vmatprep.mubr.msk.bf16.mxu1 %vm3327_vm0, %v3326_v1  ;;  %2985 = vmatprep.mubr.msk.bf16.mxu0 %vm3327_vm0, %v3326_v1  ;;  %v1514_v0 = vrot.slane %v3287_v59, 2  ;;  %v3313_v59 = vld [vmem:[%s3382_s23 + $0x18] sm:$0xff]  }
  0x81   : > { %3011 = vmatprep.subr.bf16.mxu1 %v3326_v1  ;;  %3055 = vmatprep.subr.bf16.mxu0 %v3326_v1  ;;  %v1282_v61 = vrot.slane %v2546_v58, 2 }
  0x83   : > { %3012 = vmatpush3.bf16.msra.mxu1 %v3267_v2  ;;  %3056 = vmatpush3.bf16.msra.mxu0 %v3268_v3  ;;  %v1515_v2 = vrot.slane %v3288_v60, 2  ;;  %v1284_v3 = vsel %vm1281_vm4, %v1282_v61, %v1283_v63 }
  0x84   : > { %3013 = vmatprep.subr.bf16.mxu1 %v3326_v1  ;;  %3057 = vmatprep.subr.bf16.mxu0 %v3326_v1 }
  0x85   : > { %v1516_v39 = vsel %vm1281_vm4, %v1514_v0, %v1515_v2 }
  0x86   : > { %2942 = vmatmul.mubr.bf16.gmra.mrb[44].mxu1 %v855_v7  ;;  %2986 = vmatmul.mubr.bf16.gmra.mrb[48].mxu0 %v1067_v11  ;;  %v3291_v7 = vld [vmem:[%s3382_s23 + $0x18] sm:$0xff]  }
  0x87   : > { %2945 = vmatprep.mubr.msk.bf16.mxu1 %vm3327_vm0, %v3326_v1  ;;  %2989 = vmatprep.mubr.msk.bf16.mxu0 %vm3327_vm0, %v3326_v1  ;;  %v1517_v11 = vrot.slane %v3291_v7, 2 }
  0x88   : > { %3014 = vmatpush3.bf16.msra.mxu1 %v3269_v15  ;;  %3058 = vmatpush3.bf16.msra.mxu0 %v3271_v16  ;;  %v3295_v16 = vld [vmem:[%s3382_s23 + $0x20] sm:$0xff]  }
  0x89   : > { %3015 = vmatprep.subr.bf16.mxu1 %v3326_v1  ;;  %3059 = vmatprep.subr.bf16.mxu0 %v3326_v1  ;;  %v1518_v15 = vsel %vm1281_vm4, %v1515_v2, %v1517_v11  ;;  %v1519_v19 = vrot.slane %v3295_v16, 2  ;;  %v1768_v2 = vshrl.u32 %v3313_v59, 16 }
  0x8c   : > { %3016 = vmatpush3.bf16.msra.mxu1 %v3272_v20  ;;  %3060 = vmatpush3.bf16.msra.mxu0 %v3274_v21  ;;  %v3297_v20 = vld [vmem:[%s4129_s1 + $0x1d8] sm:$0xff]  }
  0x8d   : > { %3017 = vmatprep.subr.bf16.mxu1 %v3326_v1  ;;  %3061 = vmatprep.subr.bf16.mxu0 %v3326_v1  ;;  %v3299_v21 = vld [vmem:[%s4129_s1 + $0x218] sm:$0xff]  }
  0x8e   : > { %2946 = vmatmul.mubr.bf16.gmra.mrb[48].mxu1 %v857_v22  ;;  %2990 = vmatmul.mubr.bf16.gmra.mrb[52].mxu0 %v1076_v23  ;;  %v1288_v22 = vsel %vm1281_vm4, %v1285_v41, %v1287_v8  ;;  %v1520_v23 = vsel %vm1281_vm4, %v1517_v11, %v1519_v19  ;;  %v3314_v41 = vld [vmem:[%s3382_s23 + $0x20] sm:$0xff]  }
  0x8f   : > { %2949 = vmatprep.mubr.msk.bf16.mxu1 %vm3327_vm0, %v3326_v1  ;;  %2993 = vmatprep.mubr.msk.bf16.mxu0 %vm3327_vm0, %v3326_v1 }
  0x90   : > { %3018 = vmatpush3.bf16.msra.mxu1 %v3275_v27  ;;  %3062 = vmatpush3.bf16.msra.mxu0 %v3276_v29  ;;  %v1289_v27 = vrot.slane %v3696_v14, 2  ;;  %v1521_v29 = vrot.slane %v3298_v62, 2  ;;  %v3302_v14 = vld [vmem:[%s3382_s23 + $0x30] sm:$0xff]  }
  0x91   : > { %3019 = vmatprep.subr.bf16.mxu1 %v3326_v1  ;;  %3063 = vmatprep.subr.bf16.mxu0 %v3326_v1 }
  0x92   : > { %v1290_v31 = vsel %vm1281_vm4, %v1287_v8, %v1289_v27  ;;  %v1522_v32 = vsel %vm1281_vm4, %v1519_v19, %v1521_v29  ;;  %v3315_v8 = vld [vmem:[%s3382_s23 + $0x28] sm:$0xff]  }
  0x94   : > { %3020 = vmatpush3.bf16.msra.mxu1 %v3278_v33  ;;  %3064 = vmatpush3.bf16.msra.mxu0 %v3279_v34  ;;  %v3306_v33 = vld [vmem:[%s4129_s1 + $0x1f0] sm:$0xff]  }
  0x95   : > { %3021 = vmatprep.subr.bf16.mxu1 %v3326_v1  ;;  %3065 = vmatprep.subr.bf16.mxu0 %v3326_v1  ;;  %v3307_v34 = vld [vmem:[%s4129_s1 + $0x230] sm:$0xff]  }
  0x96   : > { %2950 = vmatmul.mubr.bf16.gmra.mrb[52].mxu1 %v859_v35  ;;  %2994 = vmatmul.mubr.bf16.gmra.mrb[56].mxu0 %v1085_v36  ;;  %v1291_v35 = vrot.slane %v3724_v26, 2  ;;  %v1523_v36 = vrot.slane %v3302_v14, 2  ;;  %v3316_v14 = vld [vmem:[%s3382_s23 + $0x30] sm:$0xff]  }
  0x97   : > { %2953 = vmatprep.mubr.msk.bf16.mxu1 %vm3327_vm0, %v3326_v1  ;;  %2997 = vmatprep.mubr.msk.bf16.mxu0 %vm3327_vm0, %v3326_v1 }
  0x98   : > { %3022 = vmatpush3.bf16.msra.mxu1 %v3282_v28  ;;  %3066 = vmatpush3.bf16.msra.mxu0 %v3283_v9  ;;  %v1292_v28 = vsel %vm1281_vm4, %v1289_v27, %v1291_v35  ;;  %v1524_v26 = vsel %vm1281_vm4, %v1521_v29, %v1523_v36  ;;  %v3305_v9 = vld [vmem:[%s3382_s23 + $0x38] ss:$0 sps:$4 sm:$0xff]  }
  0x99   : > { %3023 = vmatprep.subr.bf16.mxu1 %v3326_v1  ;;  %3067 = vmatprep.subr.bf16.mxu0 %v3326_v1  ;;  %v1525_v43 = vrot.slane %v3305_v9, 2 }
  0x9c   : > { %3024 = vmatpush3.bf16.msra.mxu1 %v3284_v46  ;;  %3068 = vmatpush3.bf16.msra.mxu0 %v3285_v47  ;;  %v1294_v46 = vsel %vm1281_vm4, %v1291_v35, %v1293_v42  ;;  %v1526_v47 = vsel %vm1281_vm4, %v1523_v36, %v1525_v43  ;;  %v1997_v36 = vrot.slane %v3315_v8, 3  ;;  %vm2312_vm4 = vsmask.f32 3334 }
  0x9d   : > { %3097 = vmatprep.subr.bf16.mxu1 %v3326_v1  ;;  %3141 = vmatprep.subr.bf16.mxu0 %v3326_v1 }
  0x9e   : > { %2954 = vmatmul.mubr.bf16.gmra.mrb[56].mxu1 %v861_v48  ;;  %2998 = vmatmul.mubr.bf16.gmra.mrb[60].mxu0 %v1094_v49  ;;  %v2602_v48 = vcombine.low %v1683_v44, %v1684_v45  ;;  %v3311_v49 = vld [vmem:[%s3382_s23 + $0x10] sm:$0xff]  }
  0x9f   : > { %2957 = vmatprep.mubr.msk.bf16.mxu1 %vm3327_vm0, %v3326_v1  ;;  %3001 = vmatprep.mubr.msk.bf16.mxu0 %vm3327_vm0, %v3326_v1  ;;  %v1759_v51 = vshrl.u32 %v3311_v49, 16  ;;  %v1762_v52 = vshll.u32 %v3311_v49, 16  ;;  %v1991_v61 = vrot.slane %v3311_v49, 3  ;;  %v3317_v49 = vld [vmem:[%s3382_s23 + $0x38] sm:$0x1f]  }
  0xa0   : > { %v1751_v40 = vshrl.u32 %v2602_v48, 16  ;;  %v1754_v13 = vshll.u32 %v2602_v48, 16 }
  0xa1   : > { %v1761_v57 = vrot.slane %v1759_v51, 2  ;;  %v1764_v58 = vrot.slane %v1762_v52, 3  ;;  %v1999_v52 = vrot.slane %v3316_v14, 3 }
  0xa3   : > { %v1765_v0 = vor.u32 %v1764_v58, %v1761_v57 }
  0xa6   : > { %2958 = vmatmul.mubr.bf16.gmra.mrb[60].mxu1 %v863_v55  ;;  %3002 = vmatmul.mubr.bf16.gmra.mrb[64].mxu0 %v1103_v56  ;;  %v1753_v55 = vrot.slane %v1751_v40, 2  ;;  %v1756_v56 = vrot.slane %v1754_v13, 3 }
  0xa7   : > { %2961 = vmatprep.mubr.msk.bf16.mxu1 %vm3327_vm0, %v3326_v1  ;;  %3005 = vmatprep.mubr.msk.bf16.mxu0 %vm3327_vm0, %v3326_v1 }
  0xa8   : > { %v1757_v63 = vor.u32 %v1756_v56, %v1753_v55 }
  0xae   : > { %2962 = vmatmul.mubr.bf16.gmra.mrb[64].mxu1 %v862_v53  ;;  %3006 = vmatmul.mubr.bf16.gmra.mrb[68].mxu0 %v1102_v54  ;;  %v1968_v53 = vld [vmem:[%s3382_s23 + $0x8] sm:$0x8]  ;;  %s3201_s23 = smul.u32 28, %s4137_s13 }
  0xaf   : > { %3025 = vmatprep.mubr.msk.bf16.mxu1 %vm3327_vm0, %v3326_v1  ;;  %3069 = vmatprep.mubr.msk.bf16.mxu0 %vm3327_vm0, %v3326_v1  ;;  %v2633_v54 = vcombine.low %v1968_v53, %v1684_v45  ;;  %v1804_v53 = vshrl.u32 %v3317_v49, 16 }
  0xb0   : > { %s4004_s19 = scalar_lea.vmem %s4131_s3, %s3201_s23 }
  0xb1   : > { %v1990_v60 = vrot.slane %v2633_v54, 3  ;;  %v1807_v54 = vshll.u32 %v3317_v49, 16 }
  0xb6   : > { %3026 = vmatmul.mubr.bf16.vlgmr.msra.gmra.mrb[68].mxu1 %v1284_v3  ;;  %3070 = vmatmul.mubr.bf16.vlgmr.msra.gmra.mrb[72].mxu0 %v1516_v39  ;;  %v1771_v3 = vshll.u32 %v3313_v59, 16  ;;  %v1766_v39 = vsel %vm1749_vm5, %v1757_v63, %v1765_v0 }
  0xb7   : > { %3098 = vmatpush3.bf16.msra.mxu1 %v3289_v4  ;;  %3142 = vmatpush3.bf16.msra.mxu0 %v3290_v5  ;;  %v1992_v4 = vsel %vm1989_vm6, %v1990_v60, %v1991_v61  ;;  %v1770_v5 = vrot.slane %v1768_v2, 2  ;;  %v1809_v2 = vrot.slane %v1807_v54, 3 }
  0xb8   : > { %3029 = vmatprep.mubr.msk.bf16.mxu1 %vm3327_vm0, %v3326_v1  ;;  %3073 = vmatprep.mubr.msk.bf16.mxu0 %vm3327_vm0, %v3326_v1  ;;  %v1773_v7 = vrot.slane %v1771_v3, 3 }
  0xb9   : > { %3099 = vmatprep.subr.bf16.mxu1 %v3326_v1  ;;  %3143 = vmatprep.subr.bf16.mxu0 %v3326_v1 }
  0xba   : > { %v1774_v11 = vor.u32 %v1773_v7, %v1770_v5  ;;  %v2001_v5 = vrot.slane %v3317_v49, 3 }
  0xbb   : > { %3100 = vmatpush3.bf16.msra.mxu1 %v3292_v12  ;;  %3144 = vmatpush3.bf16.msra.mxu0 %v3293_v6  ;;  %v1993_v12 = vrot.slane %v3313_v59, 3  ;;  %v1777_v6 = vshrl.u32 %v3314_v41, 16 }
  0xbc   : > { %3101 = vmatprep.subr.bf16.mxu1 %v3326_v1  ;;  %3145 = vmatprep.subr.bf16.mxu0 %v3326_v1 }
  0xbd   : > { %v1994_v16 = vsel %vm1989_vm6, %v1991_v61, %v1993_v12  ;;  %v2000_v61 = vsel %vm1989_vm6, %v1997_v36, %v1999_v52 }
  0xbe   : > { %3030 = vmatmul.mubr.bf16.gmra.mrb[72].mxu1 %v1286_v50  ;;  %3074 = vmatmul.mubr.bf16.gmra.mrb[76].mxu0 %v1518_v15  ;;  %v1780_v50 = vshll.u32 %v3314_v41, 16  ;;  %v1775_v15 = vsel %vm1749_vm5, %v1765_v0, %v1774_v11  ;;  %v1806_v0 = vrot.slane %v1804_v53, 2 }
  0xbf   : > { %3033 = vmatprep.mubr.msk.bf16.mxu1 %vm3327_vm0, %v3326_v1  ;;  %3077 = vmatprep.mubr.msk.bf16.mxu0 %vm3327_vm0, %v3326_v1 }
  0xc0   : > { %3102 = vmatpush3.bf16.msra.mxu1 %v3294_v17  ;;  %3146 = vmatpush3.bf16.msra.mxu0 %v3296_v18  ;;  %v1779_v17 = vrot.slane %v1777_v6, 2  ;;  %v1782_v18 = vrot.slane %v1780_v50, 3  ;;  %v2002_v6 = vsel %vm1989_vm6, %v1999_v52, %v2001_v5 }
  0xc1   : > { %3103 = vmatprep.subr.bf16.mxu1 %v3326_v1  ;;  %3147 = vmatprep.subr.bf16.mxu0 %v3326_v1 }
  0xc2   : > { %v1783_v19 = vor.u32 %v1782_v18, %v1779_v17 }
  0xc4   : > { %3104 = vmatpush3.bf16.msra.mxu1 %v3297_v20  ;;  %3148 = vmatpush3.bf16.msra.mxu0 %v3299_v21  ;;  %v1995_v20 = vrot.slane %v3314_v41, 3  ;;  %v1786_v21 = vshrl.u32 %v3315_v8, 16 }
  0xc5   : > { %3105 = vmatprep.subr.bf16.mxu1 %v3326_v1  ;;  %3149 = vmatprep.subr.bf16.mxu0 %v3326_v1 }
  0xc6   : > { %3034 = vmatmul.mubr.bf16.gmra.mrb[76].mxu1 %v1288_v22  ;;  %3078 = vmatmul.mubr.bf16.gmra.mrb[80].mxu0 %v1520_v23  ;;  %v1789_v22 = vshll.u32 %v3315_v8, 16  ;;  %v1998_v45 = vsel %vm1989_vm6, %v1995_v20, %v1997_v36 }
  0xc7   : > { %3037 = vmatprep.mubr.msk.bf16.mxu1 %vm3327_vm0, %v3326_v1  ;;  %3081 = vmatprep.mubr.msk.bf16.mxu0 %vm3327_vm0, %v3326_v1 }
  0xc8   : > { %3106 = vmatpush3.bf16.msra.mxu1 %v3300_v10  ;;  %3150 = vmatpush3.bf16.msra.mxu0 %v3301_v25 }
  0xc9   : > { %3107 = vmatprep.subr.bf16.mxu1 %v3326_v1  ;;  %3151 = vmatprep.subr.bf16.mxu0 %v3326_v1 }
  0xcc   : > { %3108 = vmatpush3.bf16.msra.mxu1 %v3303_v30  ;;  %3152 = vmatpush3.bf16.msra.mxu0 %v3304_v24  ;;  %v1784_v30 = vsel %vm1749_vm5, %v1774_v11, %v1783_v19  ;;  %v1996_v24 = vsel %vm1989_vm6, %v1993_v12, %v1995_v20  ;;  %vm2340_vm6 = vcmask 1042432  }
  0xcd   : > { %3109 = vmatprep.subr.bf16.mxu1 %v3326_v1  ;;  %3153 = vmatprep.subr.bf16.mxu0 %v3326_v1  ;;  %vm2342_vm8 = vmand %vm2340_vm6, %vm2341_vm7 }
  0xce   : > { %3038 = vmatmul.mubr.bf16.gmra.mrb[80].mxu1 %v1290_v31  ;;  %3082 = vmatmul.mubr.bf16.gmra.mrb[84].mxu0 %v1522_v32  ;;  %v1788_v31 = vrot.slane %v1786_v21, 2  ;;  %v1791_v32 = vrot.slane %v1789_v22, 3 }
  0xcf   : > { %3041 = vmatprep.mubr.msk.bf16.mxu1 %vm3327_vm0, %v3326_v1  ;;  %3085 = vmatprep.mubr.msk.bf16.mxu0 %vm3327_vm0, %v3326_v1 }
  0xd0   : > { %3110 = vmatpush3.bf16.msra.mxu1 %v3306_v33  ;;  %3154 = vmatpush3.bf16.msra.mxu0 %v3307_v34  ;;  %v1792_v35 = vor.u32 %v1791_v32, %v1788_v31 }
  0xd1   : > { %3111 = vmatprep.subr.bf16.mxu1 %v3326_v1  ;;  %3155 = vmatprep.subr.bf16.mxu0 %v3326_v1 }
  0xd2   : > { %v1793_v44 = vsel %vm1749_vm5, %v1783_v19, %v1792_v35 }
  0xd4   : > { %3112 = vmatpush3.bf16.msra.mxu1 %v3308_v37  ;;  %3156 = vmatpush3.bf16.msra.mxu0 %v3309_v38  ;;  %v1795_v37 = vshrl.u32 %v3316_v14, 16  ;;  %v1798_v38 = vshll.u32 %v3316_v14, 16 }
  0xd6   : > { %3042 = vmatmul.mubr.bf16.gmra.mrb[84].mxu1 %v1292_v28  ;;  %3086 = vmatmul.mubr.bf16.gmra.mrb[88].mxu0 %v1524_v26  ;;  %v1800_v48 = vrot.slane %v1798_v38, 3 }
  0xd7   : > { %3045 = vmatprep.mubr.msk.bf16.mxu1 %vm3327_vm0, %v3326_v1  ;;  %3089 = vmatprep.mubr.msk.bf16.mxu0 %vm3327_vm0, %v3326_v1 }
  0xde   : > { %3046 = vmatmul.mubr.bf16.gmra.mrb[88].mxu1 %v1294_v46  ;;  %3090 = vmatmul.mubr.bf16.gmra.mrb[92].mxu0 %v1526_v47  ;;  %v1797_v47 = vrot.slane %v1795_v37, 2 }
  0xdf   : > { %3049 = vmatprep.mubr.msk.bf16.mxu1 %vm3327_vm0, %v3326_v1  ;;  %3093 = vmatprep.mubr.msk.bf16.mxu0 %vm3327_vm0, %v3326_v1 }
  0xe0   : > { %v1801_v51 = vor.u32 %v1800_v48, %v1797_v47 }
  0xe2   : > { %v1802_v60 = vsel %vm1749_vm5, %v1792_v35, %v1801_v51 }
  0xe6   : > { %3050 = vmatmul.mubr.bf16.gmra.mrb[92].mxu1 %v1293_v42  ;;  %3094 = vmatmul.mubr.bf16.gmra.mrb[96].mxu0 %v1525_v43 }
  0xe7   : > { %3113 = vmatprep.mubr.msk.bf16.mxu1 %vm3327_vm0, %v3326_v1  ;;  %3157 = vmatprep.mubr.msk.bf16.mxu0 %vm3327_vm0, %v3326_v1 }
  0xee   : > { %3114 = vmatmul.mubr.bf16.vlgmr.msra.gmra.mrb[96].mxu1 %v1766_v39  ;;  %3158 = vmatmul.mubr.bf16.vlgmr.msra.gmra.mrb[100].mxu0 %v1992_v4  ;;  %v1810_v4 = vor.u32 %v1809_v2, %v1806_v0 }
  0xef   : > { %3117 = vmatprep.mubr.msk.bf16.mxu1 %vm3327_vm0, %v3326_v1  ;;  %3161 = vmatprep.mubr.msk.bf16.mxu0 %vm3327_vm0, %v3326_v1 }
  0xf0   : > { %v1811_v12 = vsel %vm1749_vm5, %v1801_v51, %v1810_v4  ;;  %vm2313_vm5 = vmand %vm2311_vm3, %vm2312_vm4 }
  0xf6   : > { %3118 = vmatmul.mubr.bf16.gmra.mrb[100].mxu1 %v1775_v15  ;;  %3162 = vmatmul.mubr.bf16.gmra.mrb[104].mxu0 %v1994_v16 }
  0xf7   : > { %3121 = vmatprep.mubr.msk.bf16.mxu1 %vm3327_vm0, %v3326_v1  ;;  %3165 = vmatprep.mubr.msk.bf16.mxu0 %vm3327_vm0, %v3326_v1 }
  0xf9   : > { %v3932_v23 = vpop.f32.mrb[0].mxu0  ;;  %v3934_v62 = vpop.f32.mrb[0].mxu1 }
  0xfa   : > { %v2807_v10 = vpop.f32.mrb[1].mxu0  ;;  %v2823_v25 = vpop.f32.mrb[1].mxu1 }
  0xfb   : > { %v3936_v27 = vpop.f32.mrb[2].mxu0  ;;  %v3938_v29 = vpop.f32.mrb[2].mxu1 }
  0xfc   : > { %v2808_v33 = vpop.f32.mrb[3].mxu0  ;;  %v2824_v34 = vpop.f32.mrb[3].mxu1 }
  0xfe   : > { %3122 = vmatmul.mubr.bf16.gmra.mrb[104].mxu1 %v1784_v30  ;;  %3166 = vmatmul.mubr.bf16.gmra.mrb[108].mxu0 %v1996_v24 }
  0xff   : > { %3125 = vmatprep.mubr.msk.bf16.mxu1 %vm3327_vm0, %v3326_v1  ;;  %3169 = vmatprep.mubr.msk.bf16.mxu0 %vm3327_vm0, %v3326_v1 }
 0x101   : > { %v3947_v28 = vpop.f32.mrb[4].mxu0  ;;  %v437_v26 = vpop.f32.mrb[4].mxu1 }
 0x102   : > { %v2811_v9 = vpop.f32.mrb[5].mxu0  ;;  %v2827_v42 = vpop.f32.mrb[5].mxu1 }
 0x103   : > { %v3949_v43 = vpop.f32.mrb[6].mxu0  ;;  %v440_v46 = vpop.f32.mrb[6].mxu1 }
 0x104   : > { %v2812_v40 = vpop.f32.mrb[7].mxu0  ;;  %v2828_v13 = vpop.f32.mrb[7].mxu1 }
 0x106   : > { %3126 = vmatmul.mubr.bf16.gmra.mrb[108].mxu1 %v1793_v44  ;;  %3170 = vmatmul.mubr.bf16.gmra.mrb[112].mxu0 %v1998_v45 }
 0x107   : > { %3129 = vmatprep.mubr.msk.bf16.mxu1 %vm3327_vm0, %v3326_v1  ;;  %3173 = vmatprep.mubr.msk.bf16.mxu0 %vm3327_vm0, %v3326_v1 }
 0x109   : > { %v413_v55 = vpop.f32.mrb[8].mxu0  ;;  %v445_v56 = vpop.f32.mrb[8].mxu1 }
 0x10a   : > { %v2815_v57 = vpop.f32.mrb[9].mxu0  ;;  %v2831_v58 = vpop.f32.mrb[9].mxu1 }
 0x10b   : > { %v416_v59 = vpop.f32.mrb[10].mxu0  ;;  %v448_v63 = vpop.f32.mrb[10].mxu1 }
 0x10c   : > { %v2816_v3 = vpop.f32.mrb[11].mxu0  ;;  %v2832_v39 = vpop.f32.mrb[11].mxu1 }
 0x10e   : > { %3130 = vmatmul.mubr.bf16.gmra.mrb[112].mxu1 %v1802_v60  ;;  %3174 = vmatmul.mubr.bf16.gmra.mrb[116].mxu0 %v2000_v61 }
 0x10f   : > { %3133 = vmatprep.mubr.msk.bf16.mxu1 %vm3327_vm0, %v3326_v1  ;;  %3177 = vmatprep.mubr.msk.bf16.mxu0 %vm3327_vm0, %v3326_v1 }
 0x111   : > { %v421_v7 = vpop.f32.mrb[12].mxu0 }
 0x112   : > { %v2819_v41 = vpop.f32.mrb[13].mxu0 }
 0x113   : > { %v424_v11 = vpop.f32.mrb[14].mxu0 }
 0x114   : > { %v2820_v50 = vpop.f32.mrb[15].mxu0 }
 0x116   : > { %3134 = vmatmul.mubr.bf16.gmra.mrb[116].mxu1 %v1811_v12  ;;  %3178 = vmatmul.mubr.bf16.gmra.mrb[120].mxu0 %v2002_v6 }
 0x117   : > { %3137 = vmatprep.mubr.msk.bf16.mxu1 %vm3327_vm0, %v3326_v1  ;;  %3181 = vmatprep.mubr.msk.bf16.mxu0 %vm3327_vm0, %v3326_v1  ;;  %vm2282_vm0 = vsmask.f32 256 }
 0x118   : > { %vm2283_vm2 = vmand %vm2281_vm15, %vm2282_vm0 }
 0x119   : > { %v543_v15 = vpop.f32.mrb[12].mxu1  ;;  %v721_v16 = vpop.f32.mrb[16].mxu0 }
 0x11a   : > { %v544_v17 = vadd.f32 %v543_v15, %v3932_v23  ;;  %v2851_v18 = vpop.f32.mrb[13].mxu1  ;;  %v2895_v8 = vpop.f32.mrb[17].mxu0 }
 0x11b   : > { %v546_v19 = vpop.f32.mrb[14].mxu1  ;;  %v724_v20 = vpop.f32.mrb[18].mxu0 }
 0x11c   : > { %v3971_v21 = vadd.f32 %v721_v16, %v544_v17  ;;  %v547_v22 = vadd.f32 %v546_v19, %v3936_v27  ;;  %v2852_v10 = vpop.f32.mrb[15].mxu1  ;;  %v2896_v25 = vpop.f32.mrb[19].mxu0 }
 0x11e   : > { %v3974_v30 = vadd.f32 %v724_v20, %v547_v22  ;;  %3138 = vmatmul.mubr.bf16.gmra.mrb[120].mxu1 %v1810_v4  ;;  %3182 = vmatmul.mubr.bf16.gmra.mrb[124].mxu0 %v2001_v5 }
 0x121   : > { %v551_v24 = vpop.f32.mrb[16].mxu1  ;;  %v729_v1 = vpop.f32.mrb[20].mxu0 }
 0x122   : > { %v552_v31 = vadd.f32 %v551_v24, %v3947_v28  ;;  %v2855_v32 = vpop.f32.mrb[17].mxu1  ;;  %v2899_v23 = vpop.f32.mrb[21].mxu0 }
 0x123   : > { %v554_v14 = vpop.f32.mrb[18].mxu1  ;;  %v732_v33 = vpop.f32.mrb[22].mxu0 }
 0x124   : > { %v3977_v34 = vadd.f32 %v729_v1, %v552_v31  ;;  %v555_v35 = vadd.f32 %v554_v14, %v3949_v43  ;;  %v2856_v36 = vpop.f32.mrb[19].mxu1  ;;  %v2900_v27 = vpop.f32.mrb[23].mxu0 }
 0x126   : > { %v3980_v37 = vadd.f32 %v732_v33, %v555_v35 }
 0x129   : > { %v559_v38 = vpop.f32.mrb[20].mxu1  ;;  %v737_v26 = vpop.f32.mrb[24].mxu0 }
 0x12a   : > { %v560_v9 = vadd.f32 %v559_v38, %v413_v55  ;;  %v2859_v42 = vpop.f32.mrb[21].mxu1  ;;  %v2903_v44 = vpop.f32.mrb[25].mxu0 }
 0x12b   : > { %v562_v45 = vpop.f32.mrb[22].mxu1  ;;  %v740_v46 = vpop.f32.mrb[26].mxu0 }
 0x12c   : > { %v3982_v28 = vadd.f32 %v737_v26, %v560_v9  ;;  %v563_v47 = vadd.f32 %v562_v45, %v416_v59  ;;  %v2860_v48 = vpop.f32.mrb[23].mxu1  ;;  %v2904_v49 = vpop.f32.mrb[27].mxu0 }
 0x12e   : > { %v3984_v40 = vadd.f32 %v740_v46, %v563_v47 }
 0x131   : > { %v567_v13 = vpop.f32.mrb[24].mxu1  ;;  %v745_v43 = vpop.f32.mrb[28].mxu0 }
 0x132   : > { %v568_v51 = vadd.f32 %v567_v13, %v421_v7  ;;  %v2863_v52 = vpop.f32.mrb[25].mxu1  ;;  %v2907_v53 = vpop.f32.mrb[29].mxu0 }
 0x133   : > { %v570_v54 = vpop.f32.mrb[26].mxu1  ;;  %v748_v56 = vpop.f32.mrb[30].mxu0 }
 0x134   : > { %v3986_v57 = vadd.f32 %v745_v43, %v568_v51  ;;  %v571_v55 = vadd.f32 %v570_v54, %v424_v11  ;;  %v2864_v58 = vpop.f32.mrb[27].mxu1  ;;  %v2908_v60 = vpop.f32.mrb[31].mxu0 }
 0x136   : > { %v3988_v61 = vadd.f32 %v748_v56, %v571_v55 }
 0x139   : > { %v575_v63 = vpop.f32.mrb[28].mxu1  ;;  %v753_v59 = vpop.f32.mrb[32].mxu0 }
 0x13a   : > { %v576_v0 = vadd.f32 %v575_v63, %v3934_v62  ;;  %v2867_v2 = vpop.f32.mrb[29].mxu1  ;;  %v2911_v3 = vpop.f32.mrb[33].mxu0 }
 0x13b   : > { %v578_v39 = vpop.f32.mrb[30].mxu1  ;;  %v756_v4 = vpop.f32.mrb[34].mxu0 }
 0x13c   : > { %v3991_v5 = vadd.f32 %v753_v59, %v576_v0  ;;  %v579_v7 = vadd.f32 %v578_v39, %v3938_v29  ;;  %v2868_v41 = vpop.f32.mrb[31].mxu1  ;;  %v2912_v12 = vpop.f32.mrb[35].mxu0 }
 0x13e   : > { %v3994_v6 = vadd.f32 %v756_v4, %v579_v7 }
 0x141   : > { %v583_v11 = vpop.f32.mrb[32].mxu1  ;;  %v761_v50 = vpop.f32.mrb[36].mxu0 }
 0x142   : > { %v2871_v15 = vpop.f32.mrb[33].mxu1  ;;  %v2915_v16 = vpop.f32.mrb[37].mxu0 }
 0x143   : > { %v586_v17 = vpop.f32.mrb[34].mxu1  ;;  %v764_v18 = vpop.f32.mrb[38].mxu0 }
 0x144   : > { %v2872_v62 = vpop.f32.mrb[35].mxu1  ;;  %v2916_v8 = vpop.f32.mrb[39].mxu0 }
 0x149   : > { %v591_v19 = vpop.f32.mrb[36].mxu1  ;;  %v769_v20 = vpop.f32.mrb[40].mxu0 }
 0x14a   : > { %v2875_v22 = vpop.f32.mrb[37].mxu1  ;;  %v2919_v10 = vpop.f32.mrb[41].mxu0 }
 0x14b   : > { %v594_v25 = vpop.f32.mrb[38].mxu1  ;;  %v772_v24 = vpop.f32.mrb[42].mxu0 }
 0x14c   : > { %v2876_v29 = vpop.f32.mrb[39].mxu1  ;;  %v2920_v1 = vpop.f32.mrb[43].mxu0 }
 0x151   : > { %v953_v31 = vpop.f32.mrb[40].mxu1  ;;  %v1193_v32 = vpop.f32.mrb[44].mxu0 }
 0x152   : > { %v1007_v23 = vadd.f32 %v953_v31, %v3971_v21  ;;  %v2939_v14 = vpop.f32.mrb[41].mxu1  ;;  %v2983_v33 = vpop.f32.mrb[45].mxu0  ;;  %v3328_v21 = vmov 0  }
 0x153   : > { %v956_v35 = vpop.f32.mrb[42].mxu1  ;;  %v1196_v36 = vpop.f32.mrb[46].mxu0  ;;  %2205 = vst [vmem:[%s4004_s19] sm:$0xf] %v3328_v21  ;;  %2206 = vst [vmem:[%s4004_s19 + $0x4] sm:$0xf] %v3328_v21 }
 0x154   : > { %v3998_v27 = vadd.f32 %v1193_v32, %v1007_v23  ;;  %v1008_v38 = vadd.f32 %v956_v35, %v3974_v30  ;;  %v2940_v26 = vpop.f32.mrb[43].mxu1  ;;  %v2984_v9 = vpop.f32.mrb[47].mxu0  ;;  %2209 = vst [vmem:[%s4004_s19 + $0x10] sm:$0xf] %v3328_v21  ;;  %2210 = vst [vmem:[%s4004_s19 + $0x14] sm:$0xf] %v3328_v21 }
 0x155   : > { %2211 = vst [vmem:[%s4004_s19 + $0x18] sm:$0x1] %v3328_v21  ;;  %2207 = vst [vmem:[%s4004_s19 + $0x8] sm:$0xf] %v3328_v21 }
 0x156   : > { %2208 = vst [vmem:[%s4004_s19 + $0xc] sm:$0xf] %v3328_v21  ;;  %v4013_v30 = vadd.f32 %v1196_v36, %v1008_v38 }
 0x159   : > { %v961_v42 = vpop.f32.mrb[44].mxu1  ;;  %v1201_v44 = vpop.f32.mrb[48].mxu0 }
 0x15a   : > { %v1009_v45 = vadd.f32 %v961_v42, %v3977_v34  ;;  %v2943_v46 = vpop.f32.mrb[45].mxu1  ;;  %v2987_v47 = vpop.f32.mrb[49].mxu0 }
 0x15b   : > { %v964_v48 = vpop.f32.mrb[46].mxu1  ;;  %v1204_v49 = vpop.f32.mrb[50].mxu0 }
 0x15c   : > { %v4016_v13 = vadd.f32 %v1201_v44, %v1009_v45  ;;  %v1010_v43 = vadd.f32 %v964_v48, %v3980_v37  ;;  %v2944_v51 = vpop.f32.mrb[47].mxu1  ;;  %v2988_v52 = vpop.f32.mrb[51].mxu0 }
 0x15e   : > { %v4019_v53 = vadd.f32 %v1204_v49, %v1010_v43 }
 0x161   : > { %v969_v54 = vpop.f32.mrb[48].mxu1  ;;  %v1209_v56 = vpop.f32.mrb[52].mxu0 }
 0x162   : > { %v1011_v55 = vadd.f32 %v969_v54, %v3982_v28  ;;  %v2947_v58 = vpop.f32.mrb[49].mxu1  ;;  %v2991_v60 = vpop.f32.mrb[53].mxu0 }
 0x163   : > { %v972_v63 = vpop.f32.mrb[50].mxu1  ;;  %v1212_v34 = vpop.f32.mrb[54].mxu0 }
 0x164   : > { %v4022_v59 = vadd.f32 %v1209_v56, %v1011_v55  ;;  %v1012_v0 = vadd.f32 %v972_v63, %v3984_v40  ;;  %v2948_v2 = vpop.f32.mrb[51].mxu1  ;;  %v2992_v3 = vpop.f32.mrb[55].mxu0 }
 0x166   : > { %v4025_v39 = vadd.f32 %v1212_v34, %v1012_v0 }
 0x169   : > { %v977_v37 = vpop.f32.mrb[52].mxu1  ;;  %v1217_v4 = vpop.f32.mrb[56].mxu0 }
 0x16a   : > { %v1013_v7 = vadd.f32 %v977_v37, %v3986_v57  ;;  %v2951_v41 = vpop.f32.mrb[53].mxu1  ;;  %v2995_v12 = vpop.f32.mrb[57].mxu0 }
 0x16b   : > { %v980_v11 = vpop.f32.mrb[54].mxu1  ;;  %v1220_v28 = vpop.f32.mrb[58].mxu0 }
 0x16c   : > { %v4028_v50 = vadd.f32 %v1217_v4, %v1013_v7  ;;  %v1014_v15 = vadd.f32 %v980_v11, %v3988_v61  ;;  %v2952_v16 = vpop.f32.mrb[55].mxu1  ;;  %v2996_v17 = vpop.f32.mrb[59].mxu0 }
 0x16e   : > { %v4031_v18 = vadd.f32 %v1220_v28, %v1014_v15 }
 0x171   : > { %v985_v40 = vpop.f32.mrb[56].mxu1  ;;  %v1225_v62 = vpop.f32.mrb[60].mxu0 }
 0x172   : > { %v1015_v8 = vadd.f32 %v985_v40, %v3991_v5  ;;  %v2955_v19 = vpop.f32.mrb[57].mxu1  ;;  %v2999_v20 = vpop.f32.mrb[61].mxu0 }
 0x173   : > { %v988_v22 = vpop.f32.mrb[58].mxu1  ;;  %v1228_v57 = vpop.f32.mrb[62].mxu0 }
 0x174   : > { %v4034_v10 = vadd.f32 %v1225_v62, %v1015_v8  ;;  %v1016_v25 = vadd.f32 %v988_v22, %v3994_v6  ;;  %v2956_v24 = vpop.f32.mrb[59].mxu1  ;;  %v3000_v29 = vpop.f32.mrb[63].mxu0 }
 0x176   : > { %v4037_v1 = vadd.f32 %v1228_v57, %v1016_v25 }
 0x179   : > { %v993_v61 = vpop.f32.mrb[60].mxu1  ;;  %v1233_v31 = vpop.f32.mrb[64].mxu0 }
 0x17a   : > { %v2959_v32 = vpop.f32.mrb[61].mxu1  ;;  %v3003_v23 = vpop.f32.mrb[65].mxu0 }
 0x17b   : > { %v996_v14 = vpop.f32.mrb[62].mxu1  ;;  %v1236_v33 = vpop.f32.mrb[66].mxu0 }
 0x17c   : > { %v2960_v35 = vpop.f32.mrb[63].mxu1  ;;  %v3004_v5 = vpop.f32.mrb[67].mxu0 }
 0x181   : > { %v1001_v36 = vpop.f32.mrb[64].mxu1  ;;  %v1241_v38 = vpop.f32.mrb[68].mxu0 }
 0x182   : > { %v2963_v26 = vpop.f32.mrb[65].mxu1  ;;  %v3007_v9 = vpop.f32.mrb[69].mxu0 }
 0x183   : > { %v1004_v21 = vpop.f32.mrb[66].mxu1  ;;  %v1244_v42 = vpop.f32.mrb[70].mxu0 }
 0x184   : > { %v2964_v44 = vpop.f32.mrb[67].mxu1  ;;  %v3008_v6 = vpop.f32.mrb[71].mxu0 }
 0x189   : > { %v1384_v45 = vpop.f32.mrb[68].mxu1  ;;  %v1616_v46 = vpop.f32.mrb[72].mxu0 }
 0x18a   : > { %v1438_v47 = vadd.f32 %v1384_v45, %v3998_v27  ;;  %v3027_v48 = vpop.f32.mrb[69].mxu1  ;;  %v3071_v49 = vpop.f32.mrb[73].mxu0 }
 0x18b   : > { %v1387_v43 = vpop.f32.mrb[70].mxu1  ;;  %v1619_v51 = vpop.f32.mrb[74].mxu0 }
 0x18c   : > { %v4040_v52 = vadd.f32 %v1616_v46, %v1438_v47  ;;  %v1439_v54 = vadd.f32 %v1387_v43, %v4013_v30  ;;  %v3028_v56 = vpop.f32.mrb[71].mxu1  ;;  %v3072_v55 = vpop.f32.mrb[75].mxu0 }
 0x18e   : > { %v4043_v58 = vadd.f32 %v1619_v51, %v1439_v54 }
 0x191   : > { %v1392_v60 = vpop.f32.mrb[72].mxu1  ;;  %v1624_v63 = vpop.f32.mrb[76].mxu0 }
 0x192   : > { %v1440_v34 = vadd.f32 %v1392_v60, %v4016_v13  ;;  %v3031_v0 = vpop.f32.mrb[73].mxu1  ;;  %v3075_v2 = vpop.f32.mrb[77].mxu0 }
 0x193   : > { %v1395_v3 = vpop.f32.mrb[74].mxu1  ;;  %v1627_v27 = vpop.f32.mrb[78].mxu0 }
 0x194   : > { %v4046_v37 = vadd.f32 %v1624_v63, %v1440_v34  ;;  %v1441_v4 = vadd.f32 %v1395_v3, %v4019_v53  ;;  %v3032_v7 = vpop.f32.mrb[75].mxu1  ;;  %v3076_v41 = vpop.f32.mrb[79].mxu0 }
 0x196   : > { %v4049_v12 = vadd.f32 %v1627_v27, %v1441_v4  ;;  %v4073_v4 = vld [vmem:[%s4130_s2] ss:$0 sm:$0xff] }
 0x199   : > { %v1400_v30 = vpop.f32.mrb[76].mxu1  ;;  %v1632_v11 = vpop.f32.mrb[80].mxu0 }
 0x19a   : > { %v1442_v28 = vadd.f32 %v1400_v30, %v4022_v59  ;;  %v3035_v15 = vpop.f32.mrb[77].mxu1  ;;  %v3079_v16 = vpop.f32.mrb[81].mxu0 }
 0x19b   : > { %v1403_v17 = vpop.f32.mrb[78].mxu1  ;;  %v1635_v13 = vpop.f32.mrb[82].mxu0 }
 0x19c   : > { %v4052_v40 = vadd.f32 %v1632_v11, %v1442_v28  ;;  %v1443_v62 = vadd.f32 %v1403_v17, %v4025_v39  ;;  %v3036_v8 = vpop.f32.mrb[79].mxu1  ;;  %v3080_v19 = vpop.f32.mrb[83].mxu0 }
 0x19e   : > { %v4055_v20 = vadd.f32 %v1635_v13, %v1443_v62 }
 0x1a1   : > { %v1408_v53 = vpop.f32.mrb[80].mxu1  ;;  %v1640_v22 = vpop.f32.mrb[84].mxu0 }
 0x1a2   : > { %v1444_v57 = vadd.f32 %v1408_v53, %v4028_v50  ;;  %v3039_v25 = vpop.f32.mrb[81].mxu1  ;;  %v3083_v24 = vpop.f32.mrb[85].mxu0 }
 0x1a3   : > { %v1411_v29 = vpop.f32.mrb[82].mxu1  ;;  %v1643_v59 = vpop.f32.mrb[86].mxu0 }
 0x1a4   : > { %v4058_v61 = vadd.f32 %v1640_v22, %v1444_v57  ;;  %v1445_v31 = vadd.f32 %v1411_v29, %v4031_v18  ;;  %v3040_v32 = vpop.f32.mrb[83].mxu1  ;;  %v3084_v23 = vpop.f32.mrb[87].mxu0 }
 0x1a6   : > { %v4061_v14 = vadd.f32 %v1643_v59, %v1445_v31 }
 0x1a9   : > { %v1416_v39 = vpop.f32.mrb[84].mxu1  ;;  %v1648_v33 = vpop.f32.mrb[88].mxu0 }
 0x1aa   : > { %v1446_v35 = vadd.f32 %v1416_v39, %v4034_v10  ;;  %v3043_v5 = vpop.f32.mrb[85].mxu1  ;;  %v3087_v36 = vpop.f32.mrb[89].mxu0 }
 0x1ab   : > { %v1419_v38 = vpop.f32.mrb[86].mxu1  ;;  %v1651_v50 = vpop.f32.mrb[90].mxu0 }
 0x1ac   : > { %v4064_v26 = vadd.f32 %v1648_v33, %v1446_v35  ;;  %v1447_v9 = vadd.f32 %v1419_v38, %v4037_v1  ;;  %v3044_v21 = vpop.f32.mrb[87].mxu1  ;;  %v3088_v42 = vpop.f32.mrb[91].mxu0 }
 0x1ae   : > { %v4067_v44 = vadd.f32 %v1651_v50, %v1447_v9 }
 0x1b1   : > { %v1424_v18 = vpop.f32.mrb[88].mxu1  ;;  %v1656_v6 = vpop.f32.mrb[92].mxu0 }
 0x1b2   : > { %v3047_v45 = vpop.f32.mrb[89].mxu1  ;;  %v3091_v46 = vpop.f32.mrb[93].mxu0 }
 0x1b3   : > { %v1427_v47 = vpop.f32.mrb[90].mxu1  ;;  %v1659_v48 = vpop.f32.mrb[94].mxu0 }
 0x1b4   : > { %v3048_v49 = vpop.f32.mrb[91].mxu1  ;;  %v3092_v10 = vpop.f32.mrb[95].mxu0 }
 0x1b9   : > { %v1432_v43 = vpop.f32.mrb[92].mxu1  ;;  %v1664_v51 = vpop.f32.mrb[96].mxu0 }
 0x1ba   : > { %v3051_v54 = vpop.f32.mrb[93].mxu1  ;;  %v3095_v56 = vpop.f32.mrb[97].mxu0 }
 0x1bb   : > { %v1435_v55 = vpop.f32.mrb[94].mxu1  ;;  %v1667_v60 = vpop.f32.mrb[98].mxu0 }
 0x1bc   : > { %v3052_v63 = vpop.f32.mrb[95].mxu1  ;;  %v3096_v1 = vpop.f32.mrb[99].mxu0 }
 0x1c1   : > { %v1901_v34 = vpop.f32.mrb[96].mxu1  ;;  %v2092_v0 = vpop.f32.mrb[100].mxu0 }
 0x1c2   : > { %v1955_v2 = vadd.f32 %v1901_v34, %v4040_v52  ;;  %v3115_v3 = vpop.f32.mrb[97].mxu1  ;;  %v3159_v27 = vpop.f32.mrb[101].mxu0 }
 0x1c3   : > { %v1904_v7 = vpop.f32.mrb[98].mxu1  ;;  %v2095_v41 = vpop.f32.mrb[102].mxu0 }
 0x1c4   : > { %v2146_v30 = vadd.f32 %v2092_v0, %v1955_v2  ;;  %v1956_v11 = vadd.f32 %v1904_v7, %v4043_v58  ;;  %v3116_v28 = vpop.f32.mrb[99].mxu1  ;;  %v3160_v15 = vpop.f32.mrb[103].mxu0 }
 0x1c6   : > { %v2166_v16 = vadd.f32 %v4073_v4, %v2146_v30  ;;  %v2147_v17 = vadd.f32 %v2095_v41, %v1956_v11  ;;  %v2240_v11 = vld [vmem:[%s4004_s19] sm:$0x8] }
 0x1c8   : > { %v2179_v13 = vmax.f32 %v2166_v16, 0.0  ;;  %v2167_v52 = vadd.f32 %v4073_v4, %v2147_v17 }
 0x1c9   : > { %v1909_v62 = vpop.f32.mrb[100].mxu1  ;;  %v2100_v8 = vpop.f32.mrb[104].mxu0 }
 0x1ca   : > { %2192 = vst [vmem:[#allocation2] sm:$0xff] %v2179_v13  ;;  %v2180_v19 = vmax.f32 %v2167_v52, 0.0  ;;  %v1957_v53 = vadd.f32 %v1909_v62, %v4046_v37  ;;  %v3119_v22 = vpop.f32.mrb[101].mxu1  ;;  %v3163_v57 = vpop.f32.mrb[105].mxu0 }
 0x1cb   : > { %v1912_v25 = vpop.f32.mrb[102].mxu1  ;;  %v2103_v24 = vpop.f32.mrb[106].mxu0 }
 0x1cc   : > { %2193 = vst [vmem:[#allocation2 + $0x8] sm:$0xff] %v2180_v19  ;;  %v2148_v58 = vadd.f32 %v2100_v8, %v1957_v53  ;;  %v1958_v29 = vadd.f32 %v1912_v25, %v4049_v12  ;;  %v3120_v59 = vpop.f32.mrb[103].mxu1  ;;  %v3164_v31 = vpop.f32.mrb[107].mxu0 }
 0x1ce   : > { %v2168_v32 = vadd.f32 %v4073_v4, %v2148_v58  ;;  %v2149_v23 = vadd.f32 %v2103_v24, %v1958_v29 }
 0x1d0   : > { %v2181_v39 = vmax.f32 %v2168_v32, 0.0  ;;  %v2169_v33 = vadd.f32 %v4073_v4, %v2149_v23 }
 0x1d1   : > { %v1917_v5 = vpop.f32.mrb[104].mxu1  ;;  %v2108_v37 = vpop.f32.mrb[108].mxu0  ;;  %v2212_v45 = vld [vmem:[#allocation2] ss:$2 sm:$0xf] }
 0x1d2   : > { %2194 = vst [vmem:[#allocation2 + $0x10] sm:$0xff] %v2181_v39  ;;  %v2182_v35 = vmax.f32 %v2169_v33, 0.0  ;;  %v1959_v36 = vadd.f32 %v1917_v5, %v4052_v40  ;;  %v3123_v38 = vpop.f32.mrb[105].mxu1  ;;  %v3167_v50 = vpop.f32.mrb[109].mxu0 }
 0x1d3   : > { %v1920_v9 = vpop.f32.mrb[106].mxu1  ;;  %v2111_v21 = vpop.f32.mrb[110].mxu0  ;;  %v2214_v46 = vld [vmem:[#allocation2 + $0x1] ss:$2 sm:$0xf] }
 0x1d4   : > { %2195 = vst [vmem:[#allocation2 + $0x18] sm:$0xff] %v2182_v35  ;;  %v2150_v12 = vadd.f32 %v2108_v37, %v1959_v36  ;;  %v1960_v42 = vadd.f32 %v1920_v9, %v4055_v20  ;;  %v3124_v18 = vpop.f32.mrb[107].mxu1  ;;  %v3168_v6 = vpop.f32.mrb[111].mxu0  ;;  %v2219_v40 = vmax.f32 %v2212_v45, %v2214_v46 }
 0x1d6   : > { %v2170_v47 = vadd.f32 %v4073_v4, %v2150_v12  ;;  %v2151_v48 = vadd.f32 %v2111_v21, %v1960_v42 }
 0x1d8   : > { %v2171_v43 = vadd.f32 %v4073_v4, %v2151_v48  ;;  %v2183_v54 = vmax.f32 %v2170_v47, 0.0 }
 0x1d9   : > { %v2216_v49 = vld [vmem:[#allocation2 + $0xa] ss:$2 sm:$0xf]  ;;  %v2218_v10 = vld [vmem:[#allocation2 + $0xb] ss:$2 sm:$0xf] }
 0x1da   : > { %v2220_v51 = vmax.f32 %v2216_v49, %v2218_v10  ;;  %v1925_v56 = vpop.f32.mrb[108].mxu1  ;;  %v2116_v55 = vpop.f32.mrb[112].mxu0  ;;  %2196 = vst [vmem:[#allocation2 + $0x20] sm:$0xff] %v2183_v54  ;;  %v2184_v63 = vmax.f32 %v2171_v43, 0.0  ;;  %v2278_v54 = vld [vmem:[%s4004_s19 + $0x4] sm:$0xc] }
 0x1db   : > { %v1961_v60 = vadd.f32 %v1925_v56, %v4058_v61  ;;  %v3127_v1 = vpop.f32.mrb[109].mxu1  ;;  %v3171_v34 = vpop.f32.mrb[113].mxu0  ;;  %v2250_v28 = vld [vmem:[#allocation2 + $0x14] ss:$2 sm:$0xf] }
 0x1dc   : > { %v2221_v20 = vmax.f32 %v2219_v40, %v2220_v51  ;;  %v1928_v2 = vpop.f32.mrb[110].mxu1  ;;  %v2119_v3 = vpop.f32.mrb[114].mxu0  ;;  %2197 = vst [vmem:[#allocation2 + $0x28] sm:$0xff] %v2184_v63  ;;  %v2252_v17 = vld [vmem:[#allocation2 + $0x15] ss:$2 sm:$0xf] }
 0x1dd   : > { %v2152_v0 = vadd.f32 %v2116_v55, %v1961_v60  ;;  %v1962_v7 = vadd.f32 %v1928_v2, %v4061_v14  ;;  %v3128_v41 = vpop.f32.mrb[111].mxu1  ;;  %v3172_v30 = vpop.f32.mrb[115].mxu0  ;;  %v2257_v58 = vmax.f32 %v2250_v28, %v2252_v17 }
 0x1de   : > { %v2650_v27 = vpack.c.bf16 %v2221_v20, %v2221_v20 }
 0x1df   : > { %v2172_v61 = vadd.f32 %v4073_v4, %v2152_v0  ;;  %v2153_v13 = vadd.f32 %v2119_v3, %v1962_v7 }
 0x1e0   : > { %v2227_v15 = vshll.u32 %v2650_v27, 16  ;;  %v2230_v16 = vshrl.u32 %v2650_v27, 16 }
 0x1e1   : > { %v2185_v62 = vmax.f32 %v2172_v61, 0.0  ;;  %v1933_v8 = vpop.f32.mrb[112].mxu1  ;;  %v2124_v19 = vpop.f32.mrb[116].mxu0  ;;  %v2173_v22 = vadd.f32 %v4073_v4, %v2153_v13  ;;  %v2254_v29 = vld [vmem:[#allocation2 + $0x1e] ss:$2 sm:$0xf] }
 0x1e2   : > { %v2229_v14 = vrot.slane %v2227_v15, 5  ;;  %v2232_v53 = vrot.slane %v2230_v16, 4  ;;  %v1963_v57 = vadd.f32 %v1933_v8, %v4064_v26  ;;  %v3131_v25 = vpop.f32.mrb[113].mxu1  ;;  %v3175_v24 = vpop.f32.mrb[117].mxu0  ;;  %v2246_v26 = vld [vmem:[%s4004_s19 + $0x4] sm:$0x3] }
 0x1e3   : > { %v2256_v59 = vld [vmem:[#allocation2 + $0x1f] ss:$2 sm:$0xf]  ;;  %2198 = vst [vmem:[#allocation2 + $0x30] sm:$0xff] %v2185_v62  ;;  %v2186_v39 = vmax.f32 %v2173_v22, 0.0  ;;  %v1936_v33 = vpop.f32.mrb[114].mxu1 }
 0x1e4   : > { %v2233_v31 = vor.u32 %v2232_v53, %v2229_v14  ;;  %v2241_v32 = vsel %vm4090_vm9, %v2229_v14, %v2240_v11  ;;  %v2258_v23 = vmax.f32 %v2254_v29, %v2256_v59  ;;  %v2127_v35 = vpop.f32.mrb[118].mxu0  ;;  %v2154_v37 = vadd.f32 %v2124_v19, %v1963_v57  ;;  %v3132_v9 = vpop.f32.mrb[115].mxu1  ;;  %v2288_v45 = vld [vmem:[#allocation2 + $0x28] ss:$2 sm:$0xf] }
 0x1e5   : > { %2242 = vst [vmem:[%s4004_s19] sm:$0x8] %v2241_v32  ;;  %v1964_v36 = vadd.f32 %v1936_v33, %v4067_v44  ;;  %2199 = vst [vmem:[#allocation2 + $0x38] sm:$0xff] %v2186_v39  ;;  %v3176_v21 = vpop.f32.mrb[119].mxu0  ;;  %v2290_v46 = vld [vmem:[#allocation2 + $0x29] ss:$2 sm:$0xf] }
 0x1e6   : > { %v2234_v38 = vrot.slane %v2233_v31, 4  ;;  %v2259_v50 = vmax.f32 %v2257_v58, %v2258_v23  ;;  %v2174_v12 = vadd.f32 %v4073_v4, %v2154_v37  ;;  %v2295_v0 = vmax.f32 %v2288_v45, %v2290_v46  ;;  %v2314_v32 = vld [vmem:[%s4004_s19 + $0x8] sm:$0xe] }
 0x1e7   : > { %v2155_v42 = vadd.f32 %v2127_v35, %v1964_v36  ;;  %v2343_v36 = vld [vmem:[%s4004_s19 + $0xc] sm:$0x7] }
 0x1e8   : > { %v2247_v18 = vsel %vm4101_vm12, %v2234_v38, %v2246_v26  ;;  %v2651_v6 = vpack.c.bf16 %v2259_v50, %v2259_v50  ;;  %v2187_v44 = vmax.f32 %v2174_v12, 0.0 }
 0x1e9   : > { %2248 = vst [vmem:[%s4004_s19 + $0x4] sm:$0x3] %v2247_v18  ;;  %v2175_v47 = vadd.f32 %v4073_v4, %v2155_v42  ;;  %v1941_v48 = vpop.f32.mrb[116].mxu1  ;;  %v2132_v49 = vpop.f32.mrb[120].mxu0  ;;  %v2284_v4 = vld [vmem:[%s4004_s19 + $0x8] sm:$0x1] }
 0x1ea   : > { %v2265_v10 = vshrl.u32 %v2651_v6, 16  ;;  %v2268_v43 = vshll.u32 %v2651_v6, 16  ;;  %v3135_v40 = vpop.f32.mrb[117].mxu1  ;;  %v3179_v51 = vpop.f32.mrb[121].mxu0  ;;  %2200 = vst [vmem:[#allocation2 + $0x40] sm:$0xff] %v2187_v44 }
 0x1eb   : > { %v2188_v56 = vmax.f32 %v2175_v47, 0.0  ;;  %v1944_v55 = vpop.f32.mrb[118].mxu1  ;;  %v2135_v60 = vpop.f32.mrb[122].mxu0 }
 0x1ec   : > { %v2267_v20 = vrot.slane %v2265_v10, 5  ;;  %v2270_v63 = vrot.slane %v2268_v43, 6  ;;  %v3136_v1 = vpop.f32.mrb[119].mxu1  ;;  %v3180_v34 = vpop.f32.mrb[123].mxu0 }
 0x1ed   : > { %v2292_v2 = vld [vmem:[#allocation2 + $0x32] ss:$2 sm:$0xf]  ;;  %v2294_v3 = vld [vmem:[#allocation2 + $0x33] ss:$2 sm:$0xf] }
 0x1ee   : > { %2201 = vst [vmem:[#allocation2 + $0x48] sm:$0xff] %v2188_v56  ;;  %v2271_v27 = vor.u32 %v2270_v63, %v2267_v20  ;;  %v2272_v7 = vrot.slane %v2267_v20, 4  ;;  %v2296_v41 = vmax.f32 %v2292_v2, %v2294_v3 }
 0x1f0   : > { %v2279_v30 = vsel %vm2277_vm1, %v2271_v27, %v2278_v54  ;;  %v2285_v11 = vsel %vm2283_vm2, %v2272_v7, %v2284_v4  ;;  %v2297_v28 = vmax.f32 %v2295_v0, %v2296_v41 }
 0x1f1   : > { %2280 = vst [vmem:[%s4004_s19 + $0x4] sm:$0xc] %v2279_v30  ;;  %2286 = vst [vmem:[%s4004_s19 + $0x8] sm:$0x1] %v2285_v11  ;;  %v1949_v61 = vpop.f32.mrb[120].mxu1  ;;  %v2140_v15 = vpop.f32.mrb[124].mxu0 }
 0x1f2   : > { %v2652_v16 = vpack.c.bf16 %v2297_v28, %v2297_v28  ;;  %v2318_v17 = vld [vmem:[#allocation2 + $0x3c] ss:$2 sm:$0xf]  ;;  %v2320_v13 = vld [vmem:[#allocation2 + $0x3d] ss:$2 sm:$0xf] }
 0x1f3   : > { %v3139_v52 = vpop.f32.mrb[121].mxu1  ;;  %v3183_v62 = vpop.f32.mrb[125].mxu0  ;;  %v2325_v22 = vmax.f32 %v2318_v17, %v2320_v13 }
 0x1f4   : > { %v2303_v8 = vshrl.u32 %v2652_v16, 16  ;;  %v2306_v19 = vshll.u32 %v2652_v16, 16  ;;  %v1952_v53 = vpop.f32.mrb[122].mxu1  ;;  %v2143_v24 = vpop.f32.mrb[126].mxu0 }
 0x1f5   : > { %v2322_v14 = vld [vmem:[#allocation2 + $0x46] ss:$2 sm:$0xf]  ;;  %v2324_v57 = vld [vmem:[#allocation2 + $0x47] ss:$2 sm:$0xf] }
 0x1f6   : > { %v3140_v25 = vpop.f32.mrb[123].mxu1  ;;  %v2305_v58 = vrot.slane %v2303_v8, 6  ;;  %v2308_v29 = vrot.slane %v2306_v19, 7  ;;  %v2326_v59 = vmax.f32 %v2322_v14, %v2324_v57  ;;  %v3184_v31 = vpop.f32.mrb[127].mxu0 }
 0x1f8   : > { %v2309_v23 = vor.u32 %v2308_v29, %v2305_v58  ;;  %v2327_v39 = vmax.f32 %v2325_v22, %v2326_v59 }
 0x1fa   : > { %v2315_v33 = vsel %vm2313_vm5, %v2309_v23, %v2314_v32  ;;  %v2653_v35 = vpack.c.bf16 %v2327_v39, %v2327_v39 }
 0x1fb   : > { %2316 = vst [vmem:[%s4004_s19 + $0x8] sm:$0xe] %v2315_v33 }
 0x1fc   : > { %v2333_v5 = vshrl.u32 %v2653_v35, 16  ;;  %v2336_v37 = vshll.u32 %v2653_v35, 16 }
 0x1fe   : > { %v2335_v26 = vrot.slane %v2333_v5, 7 }
 0x200   : > { %v2338_v38 = vor.u32 %v2336_v37, %v2335_v26 }
 0x202   : > { %v2344_v50 = vsel %vm2342_vm8, %v2338_v38, %v2343_v36 }
 0x203   : > { %2345 = vst [vmem:[%s4004_s19 + $0xc] sm:$0x7] %v2344_v50 }
 0x204 PF: > { %s13_s12 = sadd.s32 1, %s3324_s12  }
 0x205   : > { %p10_p4 = scmp.ge.s32.totalorder %s13_s12, 4  }
 0x207   :  { %12 = sbr.rel (!%p10_p4) target bundleno = 1 (0x1), region = 85 }

// kernel: _lambda_.5
= control target key start
LH: loop header
LB: loop body
LE: loop exit
PB: predicated region body
PF: predicated region fallthrough
CT: control target
= control target key end

     0   :  { %19 = vsyncpa [#allocation3], 0  ;;  %s4859_s0 = inlined_call_operand.vmem [shape: bf16[2,50,128], index: 0, kind: input, shape index: {}]   ;;  %s4860_s1 = inlined_call_operand.vmem [shape: bf16[9,128,256], index: 1, kind: input, shape index: {}]   ;;  %s4861_s2 = inlined_call_operand.vmem [shape: f32[1,256], index: 2, kind: input, shape index: {}]   ;;  %s4862_s3 = inlined_call_operand.vmem [shape: bf16[1,36], index: 3, kind: input, shape index: {}]   ;;  %s4863_s4 = inlined_call_operand.vmem [shape: f32[2,1,128], index: 4, kind: input, shape index: {}]   ;;  %s4864_s5 = inlined_call_operand.vmem [shape: bf16[256,128], index: 5, kind: input, shape index: {}]   ;;  %s4865_s6 = inlined_call_operand.vmem [shape: f32[1,128], index: 6, kind: input, shape index: {}, may-alias: {6,9,11,13}]   ;;  %s4866_s7 = inlined_call_operand.vmem [shape: bf16[128,128], index: 7, kind: input, shape index: {}]   ;;  %s4867_s8 = inlined_call_operand.vmem [shape: bf16[128,128], index: 8, kind: input, shape index: {}]   ;;  %s4868_s9 = inlined_call_operand.vmem [shape: f32[1,128], index: 9, kind: input, shape index: {}, may-alias: {6,9,11,13}]   ;;  %s4869_s10 = inlined_call_operand.vmem [shape: bf16[128,128], index: 10, kind: input, shape index: {}]   ;;  %s4870_s11 = inlined_call_operand.vmem [shape: f32[1,128], index: 11, kind: input, shape index: {}, may-alias: {6,9,11,13}]   ;;  %s4871_s12 = inlined_call_operand.vmem [shape: bf16[128,128], index: 12, kind: input, shape index: {}]   ;;  %s4872_s13 = inlined_call_operand.vmem [shape: f32[1,128], index: 13, kind: input, shape index: {}, may-alias: {6,9,11,13}]   ;;  %s4873_s14 = inlined_call_operand.hbm [shape: f32[2,1,128], index: 14, kind: output, shape index: {}]  }
   0x1   :  { %21 = vsyncpa [#allocation3 + $0x1], 0  ;;  %s3974_s29 = smov 0   ;;  %s3976_s30 = smov 0  }
   0x2   :  { %s3978_s15 = smov 0   ;;  %s3980_s16 = smov 0  }
   0x3 LB: > { %4880 = sst [smem:[#allocation5_spill]] %s3881_s29  ;;  %s3995_s17 = sadd.s32 4294967295, %s3893_s16   ;;  %s3893_s16 = sphi %s3980_s16, %s4891_s16   ;;  %s3889_s15 = sphi %s3978_s15, %s4893_s15   ;;  %s3885_s30 = sphi %s3976_s30, %s4895_s30   ;;  %s3881_s29 = sphi %s3974_s29, %s4894_s29  }
   0x4   : > { %4881 = sst [smem:[#allocation6_spill]] %s3889_s15  ;;  %s2956_s18 = sadd.s32 4294967294, %s3893_s16  }
   0x5   : > { %4882 = sst [smem:[#allocation7_spill]] %s3893_s16  ;;  %s3999_s19 = sadd.s32 1, %s3893_s16  }
   0x6   : > { %4883 = sst [smem:[#allocation8_spill]] %s3999_s19  ;;  %s338_s20 = sadd.s32 1, %s3889_s15 }
   0x7   : > { %s335_s21 = ssub.s32 %s3893_s16, %s3999_s19  ;;  %p348_p0 = scmp.ne.s32.totalorder %s3889_s15, %s3885_s30 }
   0x8   : > { %p336_p1 = scmp.eq.s32.totalorder %s335_s21, 0  ;;  %p349_p2 = scmp.eq.s32.totalorder %s3995_s17, 1 }
   0x9   : > { %p354_p3 = scmp.ne.s32.totalorder %s3885_s30, %s3881_s29  ;;  %p355_p4 = scmp.eq.s32.totalorder %s2956_s18, 1 }
   0xa   : > { %s4010_s22 = scalar_select %p336_p1, %s3889_s15, %s338_s20  }
   0xb   : > { %p4012_p5 = por %p349_p2, %p348_p0  ;;  %p4016_p6 = por %p355_p4, %p354_p3 }
   0xc   : > { %4884 = sst [smem:[#allocation9_spill]] %s4010_s22  ;;  %p2959_p7 = scmp.ge.s32.totalorder %s3893_s16, 1 }
   0xd   : > { %s4886_s24 = scalar_select %p4016_p6, 1, 0 }
   0xe   : > { %p423_p8 = scmp.lt.s32.totalorder %s3893_s16, 3 }
   0xf   : > { %4887 = sst [smem:[#allocation10_spill]] %s4886_s24 }
  0x10   : > { %p424_p9 = pnand %p2959_p7, %p423_p8 }
  0x11   : > { %v3549_v0 = vld [vmem:[%s4860_s1 + $0x84] ss:$8 sps:$4 sm:$0xff] (!%p424_p9)   ;;  %v3895_v2 = vmov (!%p424_p9), 0   ;;  %v3553_v3 = vld [vmem:[%s4860_s1 + $0x80] ss:$8 sps:$4 sm:$0xff] (!%p424_p9)   ;;  %p471_p10 = scmp.lt.s32.totalorder (!%p424_p9), %s3995_s17, 1 }
  0x12   : > { %427 = sbr.rel (%p424_p9) target bundleno = 1621 (0x655), region = 76  ;;  %v3551_v1 = vld [vmem:[%s4860_s1 + $0x104] ss:$8 sps:$4 sm:$0xff] (!%p424_p9)   ;;  %671 = vmatprep.mubr.bf16.mxu1 (!%p424_p9), %v3895_v2  ;;  %989 = vmatprep.mubr.bf16.mxu0 (!%p424_p9), %v3895_v2  ;;  %v3554_v4 = vld [vmem:[%s4860_s1 + $0x100] ss:$8 sps:$4 sm:$0xff] (!%p424_p9)   ;;  %vm868_vm0 = vcmask (!%p424_p9), 1046528  }
  0x13   : > { %639 = vmatprep.subr.bf16.mxu1 (!%p424_p9), %v3549_v0  ;;  %957 = vmatprep.subr.bf16.mxu0 (!%p424_p9), %v3551_v1  ;;  %v3555_v5 = vld [vmem:[%s4860_s1 + $0x94] ss:$8 sps:$4 sm:$0xff] (!%p424_p9)   ;;  %v3559_v7 = vld [vmem:[%s4860_s1 + $0x90] ss:$8 sps:$4 sm:$0xff] (!%p424_p9)   ;;  %v3561_v9 = vld [vmem:[%s4860_s1 + $0xa4] ss:$8 sps:$4 sm:$0xff] (!%p424_p9)  }
  0x14   : > { %640 = vmatpush1.bf16.msra.mxu1 (!%p424_p9), %v3553_v3  ;;  %958 = vmatpush1.bf16.msra.mxu0 (!%p424_p9), %v3554_v4  ;;  %v3557_v6 = vld [vmem:[%s4860_s1 + $0x114] ss:$8 sps:$4 sm:$0xff] (!%p424_p9)   ;;  %v3560_v8 = vld [vmem:[%s4860_s1 + $0x110] ss:$8 sps:$4 sm:$0xff] (!%p424_p9)   ;;  %v3563_v10 = vld [vmem:[%s4860_s1 + $0x124] ss:$8 sps:$4 sm:$0xff] (!%p424_p9)  }
  0x15   : > { %641 = vmatprep.subr.bf16.mxu1 (!%p424_p9), %v3555_v5  ;;  %959 = vmatprep.subr.bf16.mxu0 (!%p424_p9), %v3557_v6  ;;  %v3565_v11 = vld [vmem:[%s4860_s1 + $0xa0] ss:$8 sps:$4 sm:$0xff] (!%p424_p9)   ;;  %v3567_v13 = vld [vmem:[%s4860_s1 + $0xb4] ss:$8 sps:$4 sm:$0xff] (!%p424_p9)   ;;  %v3571_v15 = vld [vmem:[%s4860_s1 + $0xb0] ss:$8 sps:$4 sm:$0xff] (!%p424_p9)  }
  0x16   : > { %v3566_v12 = vld [vmem:[%s4860_s1 + $0x120] ss:$8 sps:$4 sm:$0xff] (!%p424_p9)   ;;  %v3569_v14 = vld [vmem:[%s4860_s1 + $0x134] ss:$8 sps:$4 sm:$0xff] (!%p424_p9)   ;;  %v3572_v16 = vld [vmem:[%s4860_s1 + $0x130] ss:$8 sps:$4 sm:$0xff] (!%p424_p9)  }
  0x17   : > { %v3573_v17 = vld [vmem:[%s4860_s1 + $0xc4] ss:$8 sps:$4 sm:$0xff] (!%p424_p9)   ;;  %v3577_v19 = vld [vmem:[%s4860_s1 + $0xc0] ss:$8 sps:$4 sm:$0xff] (!%p424_p9)   ;;  %v3579_v21 = vld [vmem:[%s4860_s1 + $0xd4] ss:$8 sps:$4 sm:$0xff] (!%p424_p9)  }
  0x18   : > { %642 = vmatpush1.bf16.msra.mxu1 (!%p424_p9), %v3559_v7  ;;  %960 = vmatpush1.bf16.msra.mxu0 (!%p424_p9), %v3560_v8  ;;  %v3575_v18 = vld [vmem:[%s4860_s1 + $0x144] ss:$8 sps:$4 sm:$0xff] (!%p424_p9)   ;;  %v3578_v20 = vld [vmem:[%s4860_s1 + $0x140] ss:$8 sps:$4 sm:$0xff] (!%p424_p9)   ;;  %v3581_v22 = vld [vmem:[%s4860_s1 + $0x154] ss:$8 sps:$4 sm:$0xff] (!%p424_p9)  }
  0x19   : > { %643 = vmatprep.subr.bf16.mxu1 %v3561_v9  ;;  %961 = vmatprep.subr.bf16.mxu0 %v3563_v10  ;;  %s4080_s20 = scalar_select %p471_p10, %s3995_s17, 1  ;;  %v3583_v23 = vld [vmem:[%s4860_s1 + $0xd0] ss:$8 sps:$4 sm:$0xff]   ;;  %v3585_v25 = vld [vmem:[%s4860_s1 + $0xe4] ss:$8 sps:$4 sm:$0xff]   ;;  %vm1066_vm2 = vcmask 1044480  }
  0x1a   : > { %v3584_v24 = vld [vmem:[%s4860_s1 + $0x150] ss:$8 sps:$4 sm:$0xff]   ;;  %v3587_v26 = vld [vmem:[%s4860_s1 + $0x164] ss:$8 sps:$4 sm:$0xff]   ;;  %v3589_v27 = vld [vmem:[%s4860_s1 + $0xe0] ss:$8 sps:$4 sm:$0xff]  }
  0x1b   : > { %s3506_s22 = smul.u32 28, %s4080_s20  ;;  %v3590_v28 = vld [vmem:[%s4860_s1 + $0x160] ss:$8 sps:$4 sm:$0xff]   ;;  %v3591_v29 = vld [vmem:[%s4860_s1 + $0xf4] ss:$8 sps:$4 sm:$0xff]   ;;  %vm1627_vm3 = vcmask 1045504   ;;  %s478_s26 = scalar_lea.vmem %s4863_s4, %s4080_s20 }
  0x1c   : > { %644 = vmatpush1.bf16.msra.mxu1 %v3565_v11  ;;  %962 = vmatpush1.bf16.msra.mxu0 %v3566_v12  ;;  %v3593_v30 = vld [vmem:[%s4860_s1 + $0x174] ss:$8 sps:$4 sm:$0xff]   ;;  %v3595_v36 = vld [vmem:[%s4860_s1 + $0xf0] ss:$8 sps:$4 sm:$0xff]   ;;  %v3599_v42 = vld [vmem:[%s4860_s1 + $0x4] ss:$8 sps:$4 sm:$0xff]  }
  0x1d   : > { %645 = vmatprep.subr.bf16.mxu1 %v3567_v13  ;;  %963 = vmatprep.subr.bf16.mxu0 %v3569_v14  ;;  %s4110_s21 = scalar_lea.vmem %s4859_s0, %s3506_s22  ;;  %v3596_v38 = vld [vmem:[%s4860_s1 + $0x170] ss:$8 sps:$4 sm:$0xff]   ;;  %v3602_v45 = vld [vmem:[%s4860_s1 + $0x184] ss:$8 sps:$4 sm:$0xff]   ;;  %vm532_vm1 = vsmask.f32 7424 }
  0x1e   : > { %v480_v31 = vld [vmem:[%s4110_s21] sm:$0xf]  ;;  %v481_v32 = vld [vmem:[%s4110_s21 + $0x4] sm:$0xf]  ;;  %v4129_v34 = vld [vmem:[%s4110_s21 + $0x8] sm:$0xff]   ;;  %vm2229_vm6 = vcmask 1041408  }
  0x1f   : > { %v4126_v33 = vcombine.low %v480_v31, %v481_v32  ;;  %v847_v35 = vld [vmem:[%s4110_s21] sm:$0xe]  ;;  %v541_v41 = vshll.u32 %v4129_v34, 16  ;;  %v870_v44 = vrot.slane %v4129_v34, 1  ;;  %v3608_v52 = vld [vmem:[%s4860_s1 + $0x14] ss:$8 sps:$4 sm:$0xff]  }
  0x20   : > { %646 = vmatpush1.bf16.msra.mxu1 %v3571_v15  ;;  %964 = vmatpush1.bf16.msra.mxu0 %v3572_v16  ;;  %v3029_v37 = vcombine.low %v847_v35, %v481_v32  ;;  %v3597_v48 = vld [vmem:[%s4860_s1] ss:$8 sps:$4 sm:$0xff]   ;;  %v3611_v54 = vld [vmem:[%s4860_s1 + $0x194] ss:$8 sps:$4 sm:$0xff]   ;;  %v545_v55 = vshrl.u32 %v4129_v34, 16  ;;  %vm2225_vm7 = vcmask 293888  }
  0x21   : > { %647 = vmatprep.subr.bf16.mxu1 %v3573_v17  ;;  %965 = vmatprep.subr.bf16.mxu0 %v3575_v18  ;;  %v534_v39 = vshrl.u32 %v4126_v33, 16  ;;  %v536_v40 = vshll.u32 %v4126_v33, 16  ;;  %v543_v47 = vrot.slane %v541_v41, 1  ;;  %v3600_v49 = vld [vmem:[%s4860_s1 + $0x180] ss:$8 sps:$4 sm:$0xff]   ;;  %vm3897_vm8 = vmmov 0  }
  0x22   : > { %v869_v43 = vrot.slane %v3029_v37, 1  ;;  %v3606_v56 = vld [vmem:[%s4860_s1 + $0x10] ss:$8 sps:$4 sm:$0xff]   ;;  %v3614_v59 = vld [vmem:[%s4860_s1 + $0x24] ss:$8 sps:$4 sm:$0xff]   ;;  %s3301_s28 = sshll.u32 %s3995_s17, 4 }
  0x23   : > { %v538_v46 = vrot.slane %v536_v40, 1  ;;  %v3624_v57 = vld [vmem:[%s4110_s21 + $0x10] ss:$0 sps:$4 sm:$0x77]   ;;  %v3617_v60 = vld [vmem:[%s4860_s1 + $0x1a4] ss:$8 sps:$4 sm:$0xff]   ;;  %v547_v62 = vor.u32 %v545_v55, %v543_v47  ;;  %s4817_s22 = scalar_lea.hbm %s4873_s14, %s3301_s28 }
  0x24   : > { %648 = vmatpush1.bf16.msra.mxu1 %v3577_v19  ;;  %966 = vmatpush1.bf16.msra.mxu0 %v3578_v20  ;;  %v871_v51 = vsel %vm868_vm0, %v869_v43, %v870_v44  ;;  %v3609_v58 = vld [vmem:[%s4860_s1 + $0x190] ss:$8 sps:$4 sm:$0xff]   ;;  %v872_v61 = vrot.slane %v3624_v57, 1  ;;  %v549_v63 = vshll.u32 %v3624_v57, 16  ;;  %v3612_v1 = vld [vmem:[%s4860_s1 + $0x20] ss:$8 sps:$4 sm:$0xff]  }
  0x25   : > { %649 = vmatprep.subr.bf16.mxu1 %v3579_v21  ;;  %967 = vmatprep.subr.bf16.mxu0 %v3581_v22  ;;  %v539_v50 = vor.u32 %v538_v46, %v534_v39  ;;  %v3615_v3 = vld [vmem:[%s4860_s1 + $0x1a0] ss:$8 sps:$4 sm:$0xff]   ;;  %v3620_v5 = vld [vmem:[%s4860_s1 + $0x34] ss:$8 sps:$4 sm:$0xff]   ;;  %v553_v8 = vshrl.u32 %v3624_v57, 16  ;;  %s3898_s18 = smov [#allocation2]  }
  0x26   : > { %v551_v0 = vrot.slane %v549_v63, 1  ;;  %v873_v4 = vsel %vm868_vm0, %v870_v44, %v872_v61  ;;  %v3623_v6 = vld [vmem:[%s4860_s1 + $0x1b4] ss:$8 sps:$4 sm:$0xff]   ;;  %v3618_v9 = vld [vmem:[%s4860_s1 + $0x30] ss:$8 sps:$4 sm:$0xff]   ;;  %s3835_s25 = sshll.u32 %s3898_s18, 4  ;;  %s3836_s25 = int_to_ptr.vmem [resolvable:$false] %s3835_s25 }
  0x27   : > { %v544_v53 = vsel %vm532_vm1, %v539_v50, %v543_v47  ;;  %v3621_v10 = vld [vmem:[%s4860_s1 + $0x1b0] ss:$8 sps:$4 sm:$0xff]   ;;  %v3627_v11 = vld [vmem:[%s4860_s1 + $0x44] ss:$8 sps:$4 sm:$0xff]   ;;  %v3625_v13 = vld [vmem:[%s4860_s1 + $0x40] ss:$8 sps:$4 sm:$0xff]  }
  0x28   : > { %650 = vmatpush1.bf16.msra.mxu1 %v3583_v23  ;;  %968 = vmatpush1.bf16.msra.mxu0 %v3584_v24  ;;  %v552_v7 = vsel %vm532_vm1, %v547_v62, %v551_v0  ;;  %v3630_v12 = vld [vmem:[%s4860_s1 + $0x1c4] ss:$8 sps:$4 sm:$0xff]   ;;  %v3628_v14 = vld [vmem:[%s4860_s1 + $0x1c0] ss:$8 sps:$4 sm:$0xff]   ;;  %v555_v15 = vor.u32 %v553_v8, %v551_v0  ;;  %v3633_v18 = vld [vmem:[%s4860_s1 + $0x54] ss:$8 sps:$4 sm:$0xff]  }
  0x29   : > { %651 = vmatprep.subr.bf16.mxu1 %v3585_v25  ;;  %969 = vmatprep.subr.bf16.mxu0 %v3587_v26  ;;  %v4213_v16 = vld [vmem:[%s4110_s21 + $0x4] sm:$0xf]  ;;  %v4216_v17 = vld [vmem:[%s4110_s21 + $0x8] sm:$0xf]  ;;  %v3636_v19 = vld [vmem:[%s4860_s1 + $0x1d4] ss:$8 sps:$4 sm:$0xff]  }
  0x2a   : > { %v3130_v20 = vcombine.low %v4213_v16, %v4216_v17  ;;  %v3631_v21 = vld [vmem:[%s4860_s1 + $0x50] ss:$8 sps:$4 sm:$0xff]   ;;  %v1031_v23 = vld [vmem:[%s4110_s21 + $0xc] sm:$0xf]  ;;  %v3645_v35 = vld [vmem:[%s4860_s1 + $0x74] ss:$8 sps:$4 sm:$0xff]  }
  0x2b   : > { %v3634_v22 = vld [vmem:[%s4860_s1 + $0x1d0] ss:$8 sps:$4 sm:$0xff]   ;;  %v3639_v25 = vld [vmem:[%s4860_s1 + $0x64] ss:$8 sps:$4 sm:$0xff]   ;;  %v4258_v32 = vcombine.low %v4216_v17, %v1031_v23  ;;  %v3649_v43 = vld [vmem:[%s4860_s1 + $0x200] ss:$8 sps:$4 sm:$0xff]  }
  0x2c   : > { %652 = vmatpush1.bf16.msra.mxu1 %v3589_v27  ;;  %970 = vmatpush1.bf16.msra.mxu0 %v3590_v28  ;;  %v4234_v24 = vld [vmem:[%s4110_s21 + $0x10] sm:$0xf]  ;;  %v3642_v26 = vld [vmem:[%s4860_s1 + $0x1e4] ss:$8 sps:$4 sm:$0xff]   ;;  %v1028_v28 = vld [vmem:[%s4110_s21] sm:$0x8] }
  0x2d   : > { %653 = vmatprep.subr.bf16.mxu1 %v3591_v29  ;;  %971 = vmatprep.subr.bf16.mxu0 %v3593_v30  ;;  %v4243_v27 = vcombine.low %v1031_v23, %v4234_v24  ;;  %v3637_v29 = vld [vmem:[%s4860_s1 + $0x60] ss:$8 sps:$4 sm:$0xff]   ;;  %v4255_v31 = vcombine.low %v1028_v28, %v4213_v16  ;;  %v3643_v37 = vld [vmem:[%s4860_s1 + $0x70] ss:$8 sps:$4 sm:$0xff]   ;;  %v1068_v40 = vrot.slane %v4258_v32, 3  ;;  %v1257_v62 = vshrl.u32 %v4258_v32, 16 }
  0x2e   : > { %v3640_v30 = vld [vmem:[%s4860_s1 + $0x1e0] ss:$8 sps:$4 sm:$0xff]   ;;  %v3651_v41 = vld [vmem:[%s4860_s1 + $0x204] ss:$8 sps:$4 sm:$0xff]   ;;  %v3656_v46 = vld [vmem:[%s4860_s1 + $0x214] ss:$8 sps:$4 sm:$0xff]  }
  0x2f   : > { %v1067_v39 = vrot.slane %v4255_v31, 3  ;;  %v3654_v47 = vld [vmem:[%s4860_s1 + $0x210] ss:$8 sps:$4 sm:$0xff]   ;;  %v3670_v55 = vld [vmem:[%s4860_s1 + $0x254] ss:$8 sps:$4 sm:$0xff]   ;;  %v1629_v57 = vrot.slane %v4243_v27, 2 }
  0x30   : > { %654 = vmatpush1.bf16.msra.mxu1 %v3595_v36  ;;  %972 = vmatpush1.bf16.msra.mxu0 %v3596_v38  ;;  %v3648_v36 = vld [vmem:[%s4860_s1 + $0x1f4] ss:$8 sps:$4 sm:$0xff]   ;;  %v3646_v38 = vld [vmem:[%s4860_s1 + $0x1f0] ss:$8 sps:$4 sm:$0xff]   ;;  %v1260_v63 = vshll.u32 %v4258_v32, 16  ;;  %v1259_v8 = vrot.slane %v1257_v62, 3 }
  0x31   : > { %786 = vmatprep.subr.bf16.mxu1 %v3599_v42  ;;  %1155 = vmatprep.subr.bf16.mxu0 %v3602_v45  ;;  %v1033_v42 = vld [vmem:[%s4110_s21 + $0x14] sm:$0x1]  ;;  %v1069_v44 = vsel %vm1066_vm2, %v1067_v39, %v1068_v40  ;;  %vm1247_vm4 = vsmask.f32 4352  ;;  %v3693_v39 = vld [vmem:[%s4860_s1 + $0x2d0] ss:$8 sps:$4 sm:$0xff]  }
  0x32   : > { %v3064_v45 = vcombine.low %v4234_v24, %v1033_v42  ;;  %v3689_v32 = vld [vmem:[%s4860_s1 + $0x2b4] ss:$8 sps:$4 sm:$0xff]   ;;  %v3713_v16 = vld [vmem:[%s4860_s1 + $0x330] ss:$8 sps:$4 sm:$0xff]   ;;  %vm1825_vm5 = vsmask.f32 5376 }
  0x33   : > { %672 = vmatmul.mubr.bf16.vlgmr.msra.gmra.mrb[0].mxu1 %v544_v53  ;;  %990 = vmatmul.mubr.bf16.vlgmr.msra.gmra.mrb[0].mxu0 %v871_v51  ;;  %v3663_v51 = vld [vmem:[%s4860_s1 + $0x234] ss:$8 sps:$4 sm:$0xff]   ;;  %v3667_v53 = vld [vmem:[%s4860_s1 + $0x244] ss:$8 sps:$4 sm:$0xff]   ;;  %s3837_s24 = scalar_lea.vmem %s3836_s25, 32 }
  0x34   : > { %787 = vmatpush1.bf16.msra.mxu1 %v3597_v48  ;;  %1156 = vmatpush1.bf16.msra.mxu0 %v3600_v49  ;;  %v1070_v48 = vrot.slane %v3064_v45, 3  ;;  %v3659_v49 = vld [vmem:[%s4860_s1 + $0x224] ss:$8 sps:$4 sm:$0xff]   ;;  %v3701_v42 = vld [vmem:[%s4860_s1 + $0x2f4] ss:$8 sps:$4 sm:$0xff]  }
  0x35   : > { %788 = vmatprep.subr.bf16.mxu1 %v3608_v52  ;;  %1157 = vmatprep.subr.bf16.mxu0 %v3611_v54  ;;  %v3661_v52 = vld [vmem:[%s4860_s1 + $0x230] ss:$8 sps:$4 sm:$0xff]   ;;  %v3703_v45 = vld [vmem:[%s4860_s1 + $0x300] ss:$8 sps:$4 sm:$0xff]  }
  0x36   : > { %999 = vmatprep.mubr.bf16.mxu0 %v3895_v2  ;;  %681 = vmatprep.mubr.bf16.mxu1 %v3895_v2  ;;  %v1071_v50 = vsel %vm1066_vm2, %v1068_v40, %v1070_v48  ;;  %v3664_v54 = vld [vmem:[%s4110_s21 + $0x10] ss:$0 sps:$4 sm:$0x33]   ;;  %v3698_v40 = vld [vmem:[%s4860_s1 + $0x2e4] ss:$8 sps:$4 sm:$0xff]  }
  0x38   : > { %789 = vmatpush1.bf16.msra.mxu1 %v3606_v56  ;;  %1158 = vmatpush1.bf16.msra.mxu0 %v3609_v58  ;;  %v1602_v56 = vld [vmem:[%s4110_s21 + $0x4] sm:$0xc] }
  0x39   : > { %790 = vmatprep.subr.bf16.mxu1 %v3614_v59  ;;  %1159 = vmatprep.subr.bf16.mxu0 %v3617_v60  ;;  %v3165_v58 = vcombine.low %v1602_v56, %v4216_v17  ;;  %v3668_v59 = vld [vmem:[%s4860_s1 + $0x250] ss:$8 sps:$4 sm:$0xff]   ;;  %v1249_v60 = vshrl.u32 %v4255_v31, 16  ;;  %v3719_v17 = vld [vmem:[%s4860_s1 + $0x344] ss:$8 sps:$4 sm:$0xff]  }
  0x3a   : > { %v3732_v56 = vld [vmem:[%s4860_s1 + $0x384] ss:$8 sps:$4 sm:$0xff]  }
  0x3b   : > { %1000 = vmatmul.mubr.bf16.gmra.mrb[4].mxu0 %v873_v4  ;;  %682 = vmatmul.mubr.bf16.gmra.mrb[4].mxu1 %v552_v7  ;;  %v1628_v0 = vrot.slane %v3165_v58, 2  ;;  %v3730_v58 = vld [vmem:[%s4860_s1 + $0x380] ss:$8 sps:$4 sm:$0xff]  }
  0x3c   : > { %791 = vmatpush1.bf16.msra.mxu1 %v3612_v1  ;;  %1160 = vmatpush1.bf16.msra.mxu0 %v3615_v3  ;;  %v3673_v1 = vld [vmem:[%s4860_s1 + $0x264] ss:$8 sps:$4 sm:$0xff]   ;;  %v4333_v3 = vld [vmem:[%s4110_s21 + $0x14] sm:$0x3] }
  0x3d   : > { %792 = vmatprep.subr.bf16.mxu1 %v3620_v5  ;;  %1161 = vmatprep.subr.bf16.mxu0 %v3623_v6  ;;  %v4339_v4 = vsel %vm1627_vm3, %v1628_v0, %v1629_v57  ;;  %v1251_v5 = vrot.slane %v1249_v60, 3  ;;  %v3671_v6 = vld [vmem:[%s4860_s1 + $0x260] ss:$8 sps:$4 sm:$0xff]   ;;  %v3735_v60 = vld [vmem:[%s4860_s1 + $0x394] ss:$8 sps:$4 sm:$0xff]  }
  0x3e   : > { %1009 = vmatprep.mubr.bf16.mxu0 %v3895_v2  ;;  %691 = vmatprep.mubr.bf16.mxu1 %v3895_v2 }
  0x40   : > { %793 = vmatpush1.bf16.msra.mxu1 %v3618_v9  ;;  %1162 = vmatpush1.bf16.msra.mxu0 %v3621_v10  ;;  %v1262_v9 = vrot.slane %v1260_v63, 4  ;;  %v3097_v10 = vcombine.low %v4234_v24, %v4333_v3  ;;  %v3739_v63 = vld [vmem:[%s4860_s1 + $0x3a4] ss:$8 sps:$4 sm:$0xff]  }
  0x41   : > { %794 = vmatprep.subr.bf16.mxu1 %v3627_v11  ;;  %1163 = vmatprep.subr.bf16.mxu0 %v3630_v12  ;;  %v3676_v11 = vld [vmem:[%s4860_s1 + $0x274] ss:$8 sps:$4 sm:$0xff]   ;;  %v3674_v12 = vld [vmem:[%s4860_s1 + $0x270] ss:$8 sps:$4 sm:$0xff]  }
  0x43   : > { %1010 = vmatmul.mubr.bf16.gmra.mrb[8].mxu0 %v872_v61  ;;  %692 = vmatmul.mubr.bf16.gmra.mrb[8].mxu1 %v555_v15  ;;  %v1252_v61 = vshll.u32 %v4255_v31, 16  ;;  %v1266_v15 = vshrl.u32 %v3097_v10, 16  ;;  %v3684_v31 = vld [vmem:[%s4860_s1 + $0x2a0] ss:$8 sps:$4 sm:$0xff]  }
  0x44   : > { %795 = vmatpush1.bf16.msra.mxu1 %v3625_v13  ;;  %1164 = vmatpush1.bf16.msra.mxu0 %v3628_v14  ;;  %v1263_v14 = vor.u32 %v1262_v9, %v1259_v8  ;;  %v4505_v8 = vld [vmem:[%s4110_s21 + $0xc] sm:$0xff]   ;;  %v3748_v9 = vld [vmem:[%s4860_s1 + $0x3d4] ss:$8 sps:$4 sm:$0xff]  }
  0x45   : > { %796 = vmatprep.subr.bf16.mxu1 %v3633_v18  ;;  %1165 = vmatprep.subr.bf16.mxu0 %v3636_v19  ;;  %v1254_v7 = vrot.slane %v1252_v61, 4  ;;  %v1269_v18 = vshll.u32 %v3097_v10, 16  ;;  %v3679_v19 = vld [vmem:[%s4860_s1 + $0x284] ss:$8 sps:$4 sm:$0xff]   ;;  %v1268_v23 = vrot.slane %v1266_v15, 3 }
  0x46   : > { %818 = vmatprep.mubr.bf16.mxu1 %v3895_v2  ;;  %1187 = vmatprep.mubr.bf16.mxu0 %v3895_v2  ;;  %v3733_v61 = vld [vmem:[%s4860_s1 + $0x390] ss:$8 sps:$4 sm:$0xff]   ;;  %v3751_v15 = vld [vmem:[%s4860_s1 + $0x3e4] ss:$8 sps:$4 sm:$0xff]  }
  0x47   : > { %v1255_v13 = vor.u32 %v1254_v7, %v1251_v5  ;;  %v1271_v24 = vrot.slane %v1269_v18, 4  ;;  %v4498_v5 = vld [vmem:[%s4110_s21 + $0x8] sm:$0xf]  ;;  %v3746_v10 = vld [vmem:[%s4860_s1 + $0x3d0] ss:$8 sps:$4 sm:$0xff]  }
  0x48   : > { %797 = vmatpush1.bf16.msra.mxu1 %v3631_v21  ;;  %1166 = vmatpush1.bf16.msra.mxu0 %v3634_v22  ;;  %v3677_v22 = vld [vmem:[%s4860_s1 + $0x280] ss:$8 sps:$4 sm:$0xff]  }
  0x49   : > { %798 = vmatprep.subr.bf16.mxu1 %v3639_v25  ;;  %1167 = vmatprep.subr.bf16.mxu0 %v3642_v26  ;;  %v1264_v21 = vsel %vm1247_vm4, %v1255_v13, %v1263_v14  ;;  %v3682_v25 = vld [vmem:[%s4860_s1 + $0x294] ss:$8 sps:$4 sm:$0xff]   ;;  %v3680_v26 = vld [vmem:[%s4860_s1 + $0x290] ss:$8 sps:$4 sm:$0xff]   ;;  %v1272_v28 = vor.u32 %v1271_v24, %v1268_v23  ;;  %v1835_v13 = vshrl.u32 %v4505_v8, 16 }
  0x4a   : > { %v3749_v18 = vld [vmem:[%s4860_s1 + $0x3e0] ss:$8 sps:$4 sm:$0xff]   ;;  %v4523_v24 = vld [vmem:[%s4110_s21 + $0x14] sm:$0x1f]  }
  0x4c   : > { %799 = vmatpush1.bf16.msra.mxu1 %v3637_v29  ;;  %1168 = vmatpush1.bf16.msra.mxu0 %v3640_v30  ;;  %v3686_v29 = vld [vmem:[%s4860_s1 + $0x2a4] ss:$8 sps:$4 sm:$0xff]   ;;  %v1273_v30 = vsel %vm1247_vm4, %v1263_v14, %v1272_v28  ;;  %v1838_v14 = vshll.u32 %v4505_v8, 16 }
  0x4d   : > { %800 = vmatprep.subr.bf16.mxu1 %v3645_v35  ;;  %1169 = vmatprep.subr.bf16.mxu0 %v3648_v36  ;;  %v3687_v35 = vld [vmem:[%s4860_s1 + $0x2b0] ss:$8 sps:$4 sm:$0xff]   ;;  %v3692_v36 = vld [vmem:[%s4860_s1 + $0x2c4] ss:$8 sps:$4 sm:$0xff]  }
  0x4e   : > { %v1840_v23 = vrot.slane %v1838_v14, 3 }
  0x50   : > { %801 = vmatpush1.bf16.msra.mxu1 %v3643_v37  ;;  %1170 = vmatpush1.bf16.msra.mxu0 %v3646_v38  ;;  %v3690_v37 = vld [vmem:[%s4860_s1 + $0x2c0] ss:$8 sps:$4 sm:$0xff]   ;;  %v3695_v38 = vld [vmem:[%s4860_s1 + $0x2d4] ss:$8 sps:$4 sm:$0xff]  }
  0x51   : > { %1357 = vmatprep.subr.bf16.mxu0 %v3651_v41  ;;  %v3696_v41 = vld [vmem:[%s4860_s1 + $0x2e0] ss:$8 sps:$4 sm:$0xff]  }
  0x53   : > { %819 = vmatmul.mubr.bf16.vlgmr.msra.gmra.mrb[0].mxu1 %v4126_v33  ;;  %1188 = vmatmul.mubr.bf16.vlgmr.msra.gmra.mrb[0].mxu0 %v1069_v44  ;;  %v3657_v33 = vld [vmem:[%s4860_s1 + $0x220] ss:$8 sps:$4 sm:$0xff]   ;;  %v3705_v44 = vld [vmem:[%s4860_s1 + $0x304] ss:$8 sps:$4 sm:$0xff]  }
  0x54   : > { %1358 = vmatpush1.bf16.msra.mxu0 %v3649_v43  ;;  %828 = vmatprep.mubr.bf16.mxu1 %v3895_v2  ;;  %v3699_v43 = vld [vmem:[%s4860_s1 + $0x2f0] ss:$8 sps:$4 sm:$0xff]  }
  0x55   : > { %1359 = vmatprep.subr.bf16.mxu0 %v3656_v46  ;;  %1197 = vmatprep.mubr.bf16.mxu0 %v3895_v2  ;;  %v3708_v46 = vld [vmem:[%s4860_s1 + $0x314] ss:$8 sps:$4 sm:$0xff]  }
  0x58   : > { %1360 = vmatpush1.bf16.msra.mxu0 %v3654_v47  ;;  %v3706_v47 = vld [vmem:[%s4860_s1 + $0x310] ss:$8 sps:$4 sm:$0xff]  }
  0x59   : > { %1361 = vmatprep.subr.bf16.mxu0 %v3659_v49  ;;  %v3710_v49 = vld [vmem:[%s4860_s1 + $0x320] ss:$8 sps:$4 sm:$0xff]  }
  0x5b   : > { %829 = vmatmul.mubr.bf16.gmra.mrb[4].mxu1 %v4129_v34  ;;  %1198 = vmatmul.mubr.bf16.gmra.mrb[4].mxu0 %v1071_v50  ;;  %v3665_v34 = vld [vmem:[%s4860_s1 + $0x240] ss:$8 sps:$4 sm:$0xff]  }
  0x5c   : > { %1362 = vmatpush1.bf16.msra.mxu0 %v3657_v33  ;;  %838 = vmatprep.mubr.bf16.mxu1 %v3895_v2  ;;  %v3715_v33 = vld [vmem:[%s4860_s1 + $0x334] ss:$8 sps:$4 sm:$0xff]   ;;  %v3717_v50 = vld [vmem:[%s4860_s1 + $0x340] ss:$8 sps:$4 sm:$0xff]  }
  0x5d   : > { %1363 = vmatprep.subr.bf16.mxu0 %v3663_v51  ;;  %1207 = vmatprep.mubr.bf16.mxu0 %v3895_v2  ;;  %v3722_v51 = vld [vmem:[%s4860_s1 + $0x354] ss:$8 sps:$4 sm:$0xff]  }
  0x60   : > { %1364 = vmatpush1.bf16.msra.mxu0 %v3661_v52  ;;  %v3720_v52 = vld [vmem:[%s4860_s1 + $0x350] ss:$8 sps:$4 sm:$0xff]  }
  0x61   : > { %1365 = vmatprep.subr.bf16.mxu0 %v3667_v53  ;;  %v3725_v53 = vld [vmem:[%s4860_s1 + $0x364] ss:$8 sps:$4 sm:$0xff]  }
  0x63   : > { %839 = vmatmul.mubr.bf16.gmra.mrb[12].mxu1 %v3664_v54  ;;  %1208 = vmatmul.mubr.bf16.gmra.mrb[12].mxu0 %v1070_v48  ;;  %v3712_v48 = vld [vmem:[%s4860_s1 + $0x324] ss:$8 sps:$4 sm:$0xff]   ;;  %v3723_v54 = vld [vmem:[%s4860_s1 + $0x360] ss:$8 sps:$4 sm:$0xff]  }
  0x64   : > { %1366 = vmatpush1.bf16.msra.mxu0 %v3665_v34  ;;  %1389 = vmatprep.mubr.bf16.mxu0 %v3895_v2  ;;  %v3728_v34 = vld [vmem:[%s4860_s1 + $0x374] ss:$8 sps:$4 sm:$0xff]  }
  0x65   : > { %1367 = vmatprep.subr.bf16.mxu0 %v3670_v55  ;;  %2268 = vmatprep.mubr.bf16.mxu1 %v3895_v2  ;;  %v3726_v55 = vld [vmem:[%s4860_s1 + $0x370] ss:$8 sps:$4 sm:$0xff]  }
  0x68   : > { %1368 = vmatpush1.bf16.msra.mxu0 %v3668_v59  ;;  %v3736_v59 = vld [vmem:[%s4110_s21 + $0x14] ss:$0 sps:$4 sm:$0xff]  }
  0x69   : > { %1369 = vmatprep.subr.bf16.mxu0 %v3673_v1  ;;  %v1631_v62 = vrot.slane %v3736_v59, 2  ;;  %v3737_v1 = vld [vmem:[%s4860_s1 + $0x3a0] ss:$8 sps:$4 sm:$0xff]  }
  0x6b   : > { %v1632_v0 = vsel %vm1627_vm3, %v1629_v57, %v1631_v62  ;;  %v1787_v57 = vld [vmem:[%s4110_s21 + $0x4] sm:$0xc] }
  0x6c   : > { %1370 = vmatpush1.bf16.msra.mxu0 %v3671_v6  ;;  %v3743_v6 = vld [vmem:[%s4860_s1 + $0x3c0] ss:$8 sps:$4 sm:$0xff]   ;;  %v3199_v7 = vcombine.low %v1787_v57, %v4498_v5 }
  0x6d   : > { %1371 = vmatprep.subr.bf16.mxu0 %v3676_v11 }
  0x6e   : > { %v1827_v11 = vshrl.u32 %v3199_v7, 16 }
  0x70   : > { %1372 = vmatpush1.bf16.msra.mxu0 %v3674_v12  ;;  %v1830_v12 = vshll.u32 %v3199_v7, 16 }
  0x71   : > { %1531 = vmatprep.subr.bf16.mxu0 %v3679_v19  ;;  %v1829_v19 = vrot.slane %v1827_v11, 2 }
  0x73   : > { %1390 = vmatmul.mubr.bf16.vlgmr.msra.gmra.mrb[0].mxu0 %v1264_v21  ;;  %v1832_v21 = vrot.slane %v1830_v12, 3 }
  0x74   : > { %1532 = vmatpush1.bf16.msra.mxu0 %v3677_v22  ;;  %1399 = vmatprep.mubr.bf16.mxu0 %v3895_v2  ;;  %v1837_v22 = vrot.slane %v1835_v13, 2 }
  0x75   : > { %1533 = vmatprep.subr.bf16.mxu0 %v3682_v25  ;;  %v3754_v25 = vld [vmem:[%s4860_s1 + $0x3f4] ss:$8 sps:$4 sm:$0xff]  }
  0x78   : > { %1534 = vmatpush1.bf16.msra.mxu0 %v3680_v26  ;;  %v3752_v26 = vld [vmem:[%s4860_s1 + $0x3f0] ss:$8 sps:$4 sm:$0xff]  }
  0x79   : > { %1535 = vmatprep.subr.bf16.mxu0 %v3686_v29  ;;  %v1841_v29 = vor.u32 %v1840_v23, %v1837_v22 }
  0x7b   : > { %1400 = vmatmul.mubr.bf16.gmra.mrb[4].mxu0 %v1273_v30  ;;  %v1844_v30 = vshrl.u32 %v4523_v24, 16 }
  0x7c   : > { %1536 = vmatpush1.bf16.msra.mxu0 %v3684_v31  ;;  %1409 = vmatprep.mubr.bf16.mxu0 %v3895_v2  ;;  %v1847_v31 = vshll.u32 %v4523_v24, 16 }
  0x7d   : > { %1537 = vmatprep.subr.bf16.mxu0 %v3689_v32  ;;  %v3759_v32 = vld [vmem:[%s4860_s1 + $0x404] ss:$8 sps:$4 sm:$0xff]  }
  0x80   : > { %1538 = vmatpush1.bf16.msra.mxu0 %v3687_v35 }
  0x81   : > { %1539 = vmatprep.subr.bf16.mxu0 %v3692_v36  ;;  %v3757_v36 = vld [vmem:[%s4860_s1 + $0x400] ss:$8 sps:$4 sm:$0xff]  }
  0x83   : > { %1410 = vmatmul.mubr.bf16.gmra.mrb[16].mxu0 %v1272_v28  ;;  %v1833_v28 = vor.u32 %v1832_v21, %v1829_v19 }
  0x84   : > { %1540 = vmatpush1.bf16.msra.mxu0 %v3690_v37  ;;  %1563 = vmatprep.mubr.bf16.mxu0 %v3895_v2  ;;  %v1846_v37 = vrot.slane %v1844_v30, 2 }
  0x85   : > { %1541 = vmatprep.subr.bf16.mxu0 %v3695_v38  ;;  %v1842_v35 = vsel %vm1825_vm5, %v1833_v28, %v1841_v29  ;;  %v1849_v38 = vrot.slane %v1847_v31, 3 }
  0x88   : > { %1542 = vmatpush1.bf16.msra.mxu0 %v3693_v39  ;;  %v3762_v39 = vld [vmem:[%s4860_s1 + $0x414] ss:$8 sps:$4 sm:$0xff]  }
  0x89   : > { %1543 = vmatprep.subr.bf16.mxu0 %v3698_v40  ;;  %v3760_v40 = vld [vmem:[%s4860_s1 + $0x410] ss:$8 sps:$4 sm:$0xff]  }
  0x8c   : > { %1544 = vmatpush1.bf16.msra.mxu0 %v3696_v41  ;;  %v1850_v41 = vor.u32 %v1849_v38, %v1846_v37 }
  0x8d   : > { %1545 = vmatprep.subr.bf16.mxu0 %v3701_v42  ;;  %v3766_v42 = vld [vmem:[%s4860_s1 + $0x424] ss:$8 sps:$4 sm:$0xff]  }
  0x90   : > { %1546 = vmatpush1.bf16.msra.mxu0 %v3699_v43  ;;  %v1851_v43 = vsel %vm1825_vm5, %v1841_v29, %v1850_v41 }
  0x91   : > { %1716 = vmatprep.subr.bf16.mxu0 %v3705_v44  ;;  %v3764_v44 = vld [vmem:[%s4860_s1 + $0x420] ss:$8 sps:$4 sm:$0xff]  }
  0x93   : > { %1564 = vmatmul.mubr.bf16.vlgmr.msra.gmra.mrb[0].mxu0 %v3130_v20  ;;  %v3132_v20 = vcombine.low %v4333_v3, %v4333_v3  ;;  %v3742_v3 = vld [vmem:[%s4860_s1 + $0x3b4] ss:$8 sps:$4 sm:$0xff]  }
  0x94   : > { %1717 = vmatpush1.bf16.msra.mxu0 %v3703_v45  ;;  %1573 = vmatprep.mubr.bf16.mxu0 %v3895_v2  ;;  %v3769_v45 = vld [vmem:[%s4860_s1 + $0x434] ss:$8 sps:$4 sm:$0xff]  }
  0x95   : > { %1718 = vmatprep.subr.bf16.mxu0 %v3708_v46  ;;  %v3767_v46 = vld [vmem:[%s4860_s1 + $0x430] ss:$8 sps:$4 sm:$0xff]  }
  0x98   : > { %1719 = vmatpush1.bf16.msra.mxu0 %v3706_v47  ;;  %v3772_v47 = vld [vmem:[%s4860_s1 + $0x444] ss:$8 sps:$4 sm:$0xff]  }
  0x99   : > { %1720 = vmatprep.subr.bf16.mxu0 %v3712_v48  ;;  %v3770_v48 = vld [vmem:[%s4860_s1 + $0x440] ss:$8 sps:$4 sm:$0xff]  }
  0x9b   : > { %1574 = vmatmul.mubr.bf16.gmra.mrb[4].mxu0 %v4243_v27  ;;  %v3745_v27 = vld [vmem:[%s4860_s1 + $0x3c4] ss:$8 sps:$4 sm:$0xff]  }
  0x9c   : > { %1721 = vmatpush1.bf16.msra.mxu0 %v3710_v49  ;;  %1583 = vmatprep.mubr.bf16.mxu0 %v3895_v2  ;;  %v3775_v49 = vld [vmem:[%s4860_s1 + $0x454] ss:$8 sps:$4 sm:$0xff]  }
  0x9d   : > { %1722 = vmatprep.subr.bf16.mxu0 %v3715_v33  ;;  %v3773_v33 = vld [vmem:[%s4860_s1 + $0x450] ss:$8 sps:$4 sm:$0xff]  }
  0xa0   : > { %1723 = vmatpush1.bf16.msra.mxu0 %v3713_v16  ;;  %v3778_v16 = vld [vmem:[%s4860_s1 + $0x464] ss:$8 sps:$4 sm:$0xff]  }
  0xa1   : > { %1724 = vmatprep.subr.bf16.mxu0 %v3719_v17  ;;  %v2006_v17 = vld [vmem:[%s4110_s21 + $0x4] sm:$0x8] }
  0xa3   : > { %1584 = vmatmul.mubr.bf16.gmra.mrb[20].mxu0 %v3132_v20  ;;  %v3776_v20 = vld [vmem:[%s4860_s1 + $0x460] ss:$8 sps:$4 sm:$0xff]  }
  0xa4   : > { %1725 = vmatpush1.bf16.msra.mxu0 %v3717_v50  ;;  %1748 = vmatprep.mubr.bf16.mxu0 %v3895_v2  ;;  %v3234_v50 = vcombine.low %v2006_v17, %v4498_v5  ;;  %v2188_v17 = vlaneseq }
  0xa5   : > { %1726 = vmatprep.subr.bf16.mxu0 %v3722_v51  ;;  %v3781_v51 = vld [vmem:[%s4860_s1 + $0x474] ss:$8 sps:$4 sm:$0xff]  }
  0xa8   : > { %1727 = vmatpush1.bf16.msra.mxu0 %v3720_v52  ;;  %v3779_v52 = vld [vmem:[%s4860_s1 + $0x470] ss:$8 sps:$4 sm:$0xff]  }
  0xa9   : > { %1728 = vmatprep.subr.bf16.mxu0 %v3725_v53  ;;  %v2027_v53 = vrot.slane %v3234_v50, 3 }
  0xac   : > { %1729 = vmatpush1.bf16.msra.mxu0 %v3723_v54  ;;  %v2028_v54 = vrot.slane %v4505_v8, 3 }
  0xad   : > { %1730 = vmatprep.subr.bf16.mxu0 %v3728_v34 }
  0xae   : > { %v2029_v34 = vsel %vm1066_vm2, %v2027_v53, %v2028_v54 }
  0xb0   : > { %1731 = vmatpush1.bf16.msra.mxu0 %v3726_v55  ;;  %v2030_v55 = vrot.slane %v4523_v24, 3 }
  0xb1   : > { %1935 = vmatprep.subr.bf16.mxu0 %v3732_v56 }
  0xb2   : > { %v2031_v56 = vsel %vm1066_vm2, %v2028_v54, %v2030_v55 }
  0xb3   : > { %1749 = vmatmul.mubr.bf16.vlgmr.msra.gmra.mrb[0].mxu0 %v4339_v4  ;;  %v3740_v4 = vld [vmem:[%s4860_s1 + $0x3b0] ss:$8 sps:$4 sm:$0xff]  }
  0xb4   : > { %1936 = vmatpush1.bf16.msra.mxu0 %v3730_v58  ;;  %1758 = vmatprep.mubr.bf16.mxu0 %v3895_v2 }
  0xb5   : > { %1937 = vmatprep.subr.bf16.mxu0 %v3735_v60 }
  0xb8   : > { %1938 = vmatpush1.bf16.msra.mxu0 %v3733_v61 }
  0xb9   : > { %1939 = vmatprep.subr.bf16.mxu0 %v3739_v63 }
  0xbb   : > { %1759 = vmatmul.mubr.bf16.gmra.mrb[4].mxu0 %v1632_v0 }
  0xbc   : > { %1940 = vmatpush1.bf16.msra.mxu0 %v3737_v1  ;;  %1768 = vmatprep.mubr.bf16.mxu0 %v3895_v2 }
  0xbd   : > { %1941 = vmatprep.subr.bf16.mxu0 %v3742_v3 }
  0xc0   : > { %1942 = vmatpush1.bf16.msra.mxu0 %v3740_v4 }
  0xc1   : > { %1943 = vmatprep.subr.bf16.mxu0 %v3745_v27 }
  0xc3   : > { %1769 = vmatmul.mubr.bf16.gmra.mrb[24].mxu0 %v1631_v62 }
  0xc4   : > { %1944 = vmatpush1.bf16.msra.mxu0 %v3743_v6  ;;  %1967 = vmatprep.mubr.bf16.mxu0 %v3895_v2 }
  0xc5   : > { %1945 = vmatprep.subr.bf16.mxu0 %v3748_v9 }
  0xc8   : > { %1946 = vmatpush1.bf16.msra.mxu0 %v3746_v10 }
  0xc9   : > { %1947 = vmatprep.subr.bf16.mxu0 %v3751_v15 }
  0xcc   : > { %1948 = vmatpush1.bf16.msra.mxu0 %v3749_v18 }
  0xcd   : > { %1949 = vmatprep.subr.bf16.mxu0 %v3754_v25 }
  0xd0   : > { %1950 = vmatpush1.bf16.msra.mxu0 %v3752_v26 }
  0xd1   : > { %2115 = vmatprep.subr.bf16.mxu0 %v3759_v32 }
  0xd3   : > { %1968 = vmatmul.mubr.bf16.vlgmr.msra.gmra.mrb[0].mxu0 %v1842_v35 }
  0xd4   : > { %2116 = vmatpush1.bf16.msra.mxu0 %v3757_v36  ;;  %1977 = vmatprep.mubr.bf16.mxu0 %v3895_v2 }
  0xd5   : > { %2117 = vmatprep.subr.bf16.mxu0 %v3762_v39 }
  0xd8   : > { %2118 = vmatpush1.bf16.msra.mxu0 %v3760_v40 }
  0xd9   : > { %2119 = vmatprep.subr.bf16.mxu0 %v3766_v42 }
  0xdb   : > { %1978 = vmatmul.mubr.bf16.gmra.mrb[4].mxu0 %v1851_v43 }
  0xdc   : > { %2120 = vmatpush1.bf16.msra.mxu0 %v3764_v44  ;;  %1987 = vmatprep.mubr.bf16.mxu0 %v3895_v2 }
  0xdd   : > { %2121 = vmatprep.subr.bf16.mxu0 %v3769_v45 }
  0xe0   : > { %2122 = vmatpush1.bf16.msra.mxu0 %v3767_v46 }
  0xe1   : > { %2123 = vmatprep.subr.bf16.mxu0 %v3772_v47 }
  0xe3   : > { %1988 = vmatmul.mubr.bf16.gmra.mrb[28].mxu0 %v1850_v41 }
  0xe4   : > { %2124 = vmatpush1.bf16.msra.mxu0 %v3770_v48  ;;  %2147 = vmatprep.mubr.bf16.mxu0 %v3895_v2 }
  0xe5   : > { %2125 = vmatprep.subr.bf16.mxu0 %v3775_v49 }
  0xe8   : > { %2126 = vmatpush1.bf16.msra.mxu0 %v3773_v33 }
  0xe9   : > { %2127 = vmatprep.subr.bf16.mxu0 %v3778_v16 }
  0xec   : > { %2128 = vmatpush1.bf16.msra.mxu0 %v3776_v20  ;;  %v2189_v20 = vshrl.u32 %v2188_v17, 7  ;;  %v3790_v17 = vld [vmem:[%s4864_s5 + $0x18] sm:$0xff]  }
  0xed   : > { %2129 = vmatprep.subr.bf16.mxu0 %v3781_v51  ;;  %v2186_v51 = vld [vmem:[%s4861_s2] sm:$0x3] }
  0xee   : > { %v2190_v50 = vsub.s32 0, %v2189_v20 }
  0xf0   : > { %2130 = vmatpush1.bf16.msra.mxu0 %v3779_v52  ;;  %v2194_v52 = vsub.s32 1, %v2189_v20  ;;  %v2191_v53 = vrot.slane %v2186_v51, %v2190_v50  ;;  %v3791_v20 = vld [vmem:[%s4864_s5 + $0x60] sm:$0xff]  }
  0xf1   : > { %v3792_v50 = vld [vmem:[%s4864_s5 + $0x20] sm:$0xff]  }
  0xf3   : > { %2148 = vmatmul.mubr.bf16.vlgmr.msra.gmra.mrb[0].mxu0 %v2029_v34  ;;  %v2195_v34 = vrot.slane %v2186_v51, %v2194_v52  ;;  %v3793_v51 = vld [vmem:[%s4864_s5 + $0x68] sm:$0xff]  }
  0xf4   : > { %2157 = vmatprep.mubr.bf16.mxu0 %v3895_v2  ;;  %v3794_v52 = vld [vmem:[%s4864_s5 + $0x28] sm:$0xff]  }
  0xfb   : > { %2158 = vmatmul.mubr.bf16.gmra.mrb[4].mxu0 %v2031_v56 }
  0xfc   : > { %2167 = vmatprep.mubr.bf16.mxu0 %v3895_v2 }
 0x103   : > { %2168 = vmatmul.mubr.bf16.gmra.mrb[32].mxu0 %v2030_v55 }
 0x116   : > { %v1011_v58 = vpop.f32.mrb[8].mxu0  ;;  %v693_v59 = vpop.f32.mrb[8].mxu1 }
 0x117   : > { %v1013_v60 = vpop.f32.mrb[9].mxu0  ;;  %v695_v61 = vpop.f32.mrb[9].mxu1 }
 0x118   : > { %v1015_v62 = vpop.f32.mrb[10].mxu0  ;;  %v697_v63 = vpop.f32.mrb[10].mxu1 }
 0x119   : > { %v1016_v0 = vpop.f32.mrb[11].mxu0  ;;  %v698_v1 = vpop.f32.mrb[11].mxu1 }
 0x126   : > { %v820_v3 = vpop.f32.mrb[0].mxu1 }
 0x127   : > { %v822_v4 = vpop.f32.mrb[1].mxu1 }
 0x128   : > { %v824_v27 = vpop.f32.mrb[2].mxu1 }
 0x129   : > { %v826_v57 = vpop.f32.mrb[3].mxu1 }
 0x12e   : > { %v4594_v5 = vpop.f32.mrb[4].mxu1 }
 0x12f   : > { %v4596_v6 = vpop.f32.mrb[5].mxu1 }
 0x130   : > { %v4598_v7 = vpop.f32.mrb[6].mxu1 }
 0x131   : > { %v4600_v2 = vpop.f32.mrb[7].mxu1 }
 0x136   : > { %v840_v8 = vpop.f32.mrb[12].mxu1  ;;  %v1209_v9 = vpop.f32.mrb[12].mxu0 }
 0x137   : > { %v841_v10 = vadd.f32 %v840_v8, %v693_v59  ;;  %v842_v11 = vpop.f32.mrb[13].mxu1  ;;  %v1211_v12 = vpop.f32.mrb[13].mxu0 }
 0x138   : > { %v843_v13 = vadd.f32 %v842_v11, %v695_v61  ;;  %v1213_v14 = vpop.f32.mrb[14].mxu0  ;;  %v844_v15 = vpop.f32.mrb[14].mxu1 }
 0x139   : > { %v1026_v18 = vadd.f32 %v1011_v58, %v841_v10  ;;  %v1214_v19 = vpop.f32.mrb[15].mxu0  ;;  %v845_v21 = vpop.f32.mrb[15].mxu1 }
 0x13a   : > { %v1027_v22 = vadd.f32 %v1013_v60, %v843_v13 }
 0x13b   : > { %v1224_v23 = vadd.f32 %v1209_v9, %v1026_v18 }
 0x13c   : > { %v1225_v24 = vadd.f32 %v1211_v12, %v1027_v22 }
 0x156   : > { %v1411_v25 = vpop.f32.mrb[16].mxu0 }
 0x157   : > { %v1426_v26 = vadd.f32 %v1411_v25, %v1224_v23  ;;  %v1413_v28 = vpop.f32.mrb[17].mxu0 }
 0x158   : > { %v1427_v29 = vadd.f32 %v1413_v28, %v1225_v24  ;;  %v1415_v30 = vpop.f32.mrb[18].mxu0 }
 0x159   : > { %v1416_v31 = vpop.f32.mrb[19].mxu0 }
 0x176   : > { %v1585_v32 = vpop.f32.mrb[20].mxu0 }
 0x177   : > { %v1600_v35 = vadd.f32 %v1585_v32, %v1426_v26  ;;  %v1587_v36 = vpop.f32.mrb[21].mxu0 }
 0x178   : > { %v1601_v37 = vadd.f32 %v1587_v36, %v1427_v29  ;;  %v1589_v38 = vpop.f32.mrb[22].mxu0 }
 0x179   : > { %v1590_v39 = vpop.f32.mrb[23].mxu0 }
 0x196   : > { %v1770_v40 = vpop.f32.mrb[24].mxu0 }
 0x197   : > { %v1785_v41 = vadd.f32 %v1770_v40, %v1600_v35  ;;  %v1772_v42 = vpop.f32.mrb[25].mxu0 }
 0x198   : > { %v1786_v43 = vadd.f32 %v1772_v42, %v1601_v37  ;;  %v1774_v44 = vpop.f32.mrb[26].mxu0 }
 0x199   : > { %v1775_v45 = vpop.f32.mrb[27].mxu0 }
 0x19a   : > { %v2218_v45 = vld [vmem:[%s4862_s3] sm:$0x1] }
 0x1b6   : > { %v1989_v46 = vpop.f32.mrb[28].mxu0 }
 0x1b7   : > { %v2004_v47 = vadd.f32 %v1989_v46, %v1785_v41  ;;  %v1991_v48 = vpop.f32.mrb[29].mxu0  ;;  %v3784_v46 = vld [vmem:[%s4864_s5] sm:$0xff]  }
 0x1b8   : > { %v2005_v49 = vadd.f32 %v1991_v48, %v1786_v43  ;;  %v1993_v33 = vpop.f32.mrb[30].mxu0  ;;  %v3783_v43 = vld [vmem:[%s4864_s5 + $0x40] sm:$0xff]   ;;  %v3786_v48 = vld [vmem:[%s4864_s5 + $0x8] sm:$0xff]  }
 0x1b9   : > { %v1994_v16 = vpop.f32.mrb[31].mxu0  ;;  %v3788_v33 = vld [vmem:[%s4864_s5 + $0x10] sm:$0xff]  }
 0x1ba   : > { %v3789_v16 = vld [vmem:[%s4864_s5 + $0x58] sm:$0xff]  }
 0x1c6   : > { %v2149_v54 = vpop.f32.mrb[0].mxu0 }
 0x1c7   : > { %v3442_v55 = vadd.f32 %v2149_v54, %v820_v3  ;;  %v2151_v56 = vpop.f32.mrb[1].mxu0  ;;  %v3796_v54 = vld [vmem:[%s4864_s5 + $0x30] sm:$0xff]  }
 0x1c8   : > { %v3443_v58 = vadd.f32 %v2151_v56, %v822_v4  ;;  %v2153_v59 = vpop.f32.mrb[2].mxu0  ;;  %v3896_v56 = vmov 0.0  }
 0x1c9   : > { %v2198_v60 = vadd.f32 %v3442_v55, %v2191_v53  ;;  %v3444_v61 = vadd.f32 %v2153_v59, %v824_v27  ;;  %v2155_v62 = vpop.f32.mrb[3].mxu0  ;;  %v3798_v55 = vld [vmem:[%s4864_s5 + $0x38] sm:$0xff]  }
 0x1ca   : > { %v2199_v63 = vadd.f32 %v3443_v58, %v2195_v34  ;;  %v3445_v0 = vadd.f32 %v2155_v62, %v826_v57 }
 0x1cb   : > { %v2200_v1 = vadd.f32 %v3444_v61, %v2191_v53  ;;  %v2208_v9 = vmax.f32 %v2198_v60, 0.0 }
 0x1cc   : > { %v2201_v8 = vadd.f32 %v3445_v0, %v2195_v34  ;;  %v2209_v11 = vmax.f32 %v2199_v63, 0.0 }
 0x1cd   : > { %v2210_v10 = vmax.f32 %v2200_v1, 0.0  ;;  %v3799_v1 = vld [vmem:[%s4867_s8] sm:$0xff]  }
 0x1ce   : > { %v2211_v12 = vmax.f32 %v2201_v8, 0.0  ;;  %v2159_v13 = vpop.f32.mrb[4].mxu0 }
 0x1cf   : > { %v2219_v14 = vpack.c.bf16 %v2210_v10, %v2208_v9  ;;  %v3446_v15 = vadd.f32 %v2159_v13, %v4594_v5  ;;  %v2161_v18 = vpop.f32.mrb[5].mxu0  ;;  %v3800_v9 = vld [vmem:[%s4867_s8 + $0x8] sm:$0xff]   ;;  %v3801_v10 = vld [vmem:[%s4867_s8 + $0x10] sm:$0xff]  }
 0x1d0   : > { %v3447_v3 = vadd.f32 %v2161_v18, %v4596_v6  ;;  %v2163_v4 = vpop.f32.mrb[6].mxu0  ;;  %v2220_v19 = vpack.c.bf16 %v2211_v12, %v2209_v11  ;;  %v3802_v11 = vld [vmem:[%s4867_s8 + $0x18] sm:$0xff]   ;;  %v3803_v12 = vld [vmem:[%s4867_s8 + $0x20] sm:$0xff]   ;;  %v3804_v13 = vld [vmem:[%s4867_s8 + $0x28] sm:$0xff]  }
 0x1d1   : > { %v2202_v21 = vadd.f32 %v3446_v15, %v2191_v53  ;;  %v3448_v27 = vadd.f32 %v2163_v4, %v4598_v7  ;;  %v2165_v22 = vpop.f32.mrb[7].mxu0  ;;  %v3806_v15 = vld [vmem:[%s4867_s8 + $0x38] sm:$0xff]  }
 0x1d2   : > { %v2203_v57 = vadd.f32 %v3447_v3, %v2195_v34  ;;  %v3449_v23 = vadd.f32 %v2165_v22, %v4600_v2  ;;  %2236 = vmatprep.subr.bf16.mxu1 %v2220_v19  ;;  %v2313_v3 = vld [vmem:[%s4865_s6] sm:$0x1] }
 0x1d3   : > { %v2204_v24 = vadd.f32 %v3448_v27, %v2191_v53  ;;  %2237 = vmatpush1.bf16.msra.mxu1 %v2219_v14  ;;  %v2212_v26 = vmax.f32 %v2202_v21, 0.0  ;;  %v3805_v14 = vld [vmem:[%s4867_s8 + $0x30] sm:$0xff]  }
 0x1d4   : > { %v2205_v25 = vadd.f32 %v3449_v23, %v2195_v34  ;;  %v2213_v29 = vmax.f32 %v2203_v57, 0.0  ;;  %v3807_v23 = vld [vmem:[%s4866_s7] sm:$0xff]  }
 0x1d5   : > { %v2214_v28 = vmax.f32 %v2204_v24, 0.0 }
 0x1d6   : > { %v2215_v5 = vmax.f32 %v2205_v25, 0.0  ;;  %v2169_v30 = vpop.f32.mrb[32].mxu0  ;;  %v3808_v25 = vld [vmem:[%s4866_s7 + $0x8] sm:$0xff]  }
 0x1d7   : > { %v2221_v31 = vpack.c.bf16 %v2214_v28, %v2212_v26  ;;  %v2184_v6 = vadd.f32 %v2169_v30, %v2004_v47  ;;  %v2171_v32 = vpop.f32.mrb[33].mxu0  ;;  %v3785_v47 = vld [vmem:[%s4864_s5 + $0x48] sm:$0xff]   ;;  %v3809_v26 = vld [vmem:[%s4866_s7 + $0x10] sm:$0xff]   ;;  %v3810_v28 = vld [vmem:[%s4866_s7 + $0x18] sm:$0xff]  }
 0x1d8   : > { %v2185_v35 = vadd.f32 %v2171_v32, %v2005_v49  ;;  %v2173_v36 = vpop.f32.mrb[34].mxu0  ;;  %v2222_v37 = vpack.c.bf16 %v2215_v5, %v2213_v29  ;;  %v3787_v49 = vld [vmem:[%s4864_s5 + $0x50] sm:$0xff]   ;;  %v3811_v29 = vld [vmem:[%s4866_s7 + $0x20] sm:$0xff]   ;;  %v3812_v5 = vld [vmem:[%s4866_s7 + $0x28] sm:$0xff]  }
 0x1d9   : > { %v2206_v7 = vadd.f32 %v2191_v53, %v2184_v6  ;;  %v2174_v38 = vpop.f32.mrb[35].mxu0  ;;  %v3795_v53 = vld [vmem:[%s4864_s5 + $0x70] sm:$0xff]   ;;  %v2451_v6 = vld [vmem:[%s478_s26] sm:$0x1]  ;;  %v3816_v36 = vld [vmem:[%s4869_s10 + $0x8] sm:$0xff]   ;;  %s469_s26 = sand.u32 1, %s3885_s30  }
 0x1da   : > { %v2207_v39 = vadd.f32 %v2195_v34, %v2185_v35  ;;  %2238 = vmatprep.subr.bf16.mxu1 %v2222_v37  ;;  %v3797_v34 = vld [vmem:[%s4864_s5 + $0x78] sm:$0xff]   ;;  %v3813_v30 = vld [vmem:[%s4866_s7 + $0x30] sm:$0xff]   ;;  %v2452_v32 = vpack.c.bf16 %v2451_v6, %v2451_v6  ;;  %v3815_v35 = vld [vmem:[%s4869_s10] sm:$0xff]   ;;  %s470_s15 = scalar_lea.vmem [#allocation2], %s469_s26  ;;  %s2880_s19 = scalar_lea.sflag [#allocation3], %s469_s26 }
 0x1db   : > { %v2216_v2 = vmax.f32 %v2206_v7, 0.0  ;;  %2239 = vmatpush1.bf16.msra.mxu1 %v2221_v31  ;;  %v3814_v31 = vld [vmem:[%s4866_s7 + $0x38] sm:$0xff]   ;;  %v3817_v37 = vld [vmem:[%s4869_s10 + $0x10] sm:$0xff]   ;;  %v3819_v38 = vld [vmem:[%s4869_s10 + $0x20] sm:$0xff]   ;;  %s2892_s20 = sshll.u32 %s470_s15, 4  ;;  %s4819_s20 = int_to_ptr.vmem [resolvable:$true] %s2892_s20 }
 0x1dc   : > { %v2217_v40 = vmax.f32 %v2207_v39, 0.0  ;;  %v3818_v7 = vld [vmem:[%s4869_s10 + $0x18] sm:$0xff]   ;;  %v3820_v39 = vld [vmem:[%s4869_s10 + $0x28] sm:$0xff]   ;;  %s3831_s17 = scalar_lea.vmem %s4819_s20, 16  ;;  %p3838_p0 = scmp.lt.s32.totalorder %s4819_s20, %s3836_s25 }
 0x1dd   : > { %v2223_v41 = vpack.c.bf16 %v2216_v2, %v2216_v2  ;;  %v3821_v2 = vld [vmem:[%s4869_s10 + $0x30] sm:$0xff]   ;;  %p3832_p11 = scmp.ne.s32.totalorder %s4819_s20, %s3831_s17  ;;  %p3839_p1 = scmp.lt.s32.totalorder %s3837_s24, %s3831_s17 }
 0x1de   : > { %v2224_v42 = vpack.c.bf16 %v2217_v40, %v2217_v40  ;;  %v3822_v40 = vld [vmem:[%s4869_s10 + $0x38] sm:$0xff]  }
 0x1df   : > { %v2231_v44 = vsel %vm2229_vm6, %v2223_v41, 0  ;;  %p3833_p12 = pnand %p3832_p11, %p4012_p5  ;;  %p3840_p2 = por %p3839_p1, %p3838_p0 }
 0x1e0   : > { %3251 = vmatprep.subr.msk.bf16.mxu1 %vm2229_vm6, %v2224_v42 }
 0x1e1   : > { %2241 = vmatpush1.bf16.msra.mxu1 %v2231_v44  ;;  %p3834_p13 = pneg %p3833_p12 }
 0x1e2   : > { %3304 = vmatprep.subr.bf16.mxu1 %v3783_v43 }
 0x1e3   : > { %p3841_p3 = pnand %p3840_p2, %p3834_p13 }
 0x1e4   : > { %3252 = vmatmul.mubr.msk.bf16.vlgmr.msra.gmra.mrb[16].mxu1 %vm2225_vm7, %v2218_v45 }
 0x1e5   : > { %3305 = vmatpush3.bf16.msra.mxu1 %v3784_v46  ;;  %v2662_v46 = vld [vmem:[%s4868_s9] sm:$0x1] }
 0x1e6   : > { %3306 = vmatprep.subr.bf16.mxu1 %v3785_v47 }
 0x1e9   : > { %3307 = vmatpush3.bf16.msra.mxu1 %v3786_v48 }
 0x1ea   : > { %3308 = vmatprep.subr.bf16.mxu1 %v3787_v49 }
 0x1ed   : > { %3309 = vmatpush3.bf16.msra.mxu1 %v3788_v33 }
 0x1ee   : > { %3310 = vmatprep.subr.bf16.mxu1 %v3789_v16 }
 0x1f1   : > { %3311 = vmatpush3.bf16.msra.mxu1 %v3790_v17 }
 0x1f2   : > { %3312 = vmatprep.subr.bf16.mxu1 %v3791_v20  ;;  %v3823_v20 = vld [vmem:[%s4871_s12] sm:$0xff]  }
 0x1f5   : > { %3313 = vmatpush3.bf16.msra.mxu1 %v3792_v50 }
 0x1f6   : > { %3314 = vmatprep.subr.bf16.mxu1 %v3793_v51  ;;  %v3824_v51 = vld [vmem:[%s4871_s12 + $0x8] sm:$0xff]  }
 0x1f9   : > { %3315 = vmatpush3.bf16.msra.mxu1 %v3794_v52  ;;  %v3825_v52 = vld [vmem:[%s4871_s12 + $0x10] sm:$0xff]  }
 0x1fa   : > { %3316 = vmatprep.subr.bf16.mxu1 %v3795_v53  ;;  %v3826_v53 = vld [vmem:[%s4871_s12 + $0x18] sm:$0xff]  }
 0x1fd   : > { %3317 = vmatpush3.bf16.msra.mxu1 %v3796_v54  ;;  %v3827_v54 = vld [vmem:[%s4871_s12 + $0x20] sm:$0xff]  }
 0x1fe   : > { %3318 = vmatprep.subr.bf16.mxu1 %v3797_v34  ;;  %v3828_v34 = vld [vmem:[%s4871_s12 + $0x28] sm:$0xff]  }
 0x201   : > { %3319 = vmatpush3.bf16.msra.mxu1 %v3798_v55  ;;  %v3829_v55 = vld [vmem:[%s4871_s12 + $0x30] sm:$0xff]  }
 0x202   : > { %3362 = vmatprep.subr.bf16.mxu1 %v3896_v56 }
 0x2b7   : > { %v2270_v58 = vpop.f32.mrb[16].mxu1 }
 0x2b8   : > { %v2277_v59 = vmul.f32 0.0625, %v2270_v58  ;;  %v2272_v60 = vpop.f32.mrb[17].mxu1  ;;  %v3830_v58 = vld [vmem:[%s4871_s12 + $0x38] sm:$0xff]  }
 0x2b9   : > { %v2278_v61 = vmul.f32 0.0625, %v2272_v60  ;;  %v2274_v62 = vpop.f32.mrb[18].mxu1 }
 0x2ba   : > { %v2275_v63 = vpop.f32.mrb[19].mxu1  ;;  %v2279_v8 = vpack.c.bf16 %v2277_v59, %v2277_v59  ;;  %v2682_v59 = vld [vmem:[%s4870_s11] sm:$0x1] }
 0x2bb   : > { %v2280_v0 = vpack.c.bf16 %v2278_v61, %v2278_v61 }
 0x2bd   : > { %2442 = vmatprep.mubr.bf16.mxu1 %v2280_v0 }
 0x2be   : > { %2443 = vmatmul.mubr.bf16.vlgmr.msra.gmra.mrb[20].mxu1 %v2279_v8 }
 0x2bf   : > { %3363 = vmatpush3.bf16.msra.mxu1 %v3799_v1  ;;  %3378 = vmatprep.mubr.msk.bf16.mxu1 %vm3897_vm8, %v3896_v56 }
 0x2c0   : > { %3364 = vmatprep.subr.bf16.mxu1 %v3896_v56 }
 0x2c3   : > { %3365 = vmatpush3.bf16.msra.mxu1 %v3800_v9 }
 0x2c4   : > { %3366 = vmatprep.subr.bf16.mxu1 %v3896_v56 }
 0x2c7   : > { %3367 = vmatpush3.bf16.msra.mxu1 %v3801_v10 }
 0x2c8   : > { %3368 = vmatprep.subr.bf16.mxu1 %v3896_v56 }
 0x2cb   : > { %3369 = vmatpush3.bf16.msra.mxu1 %v3802_v11 }
 0x2cc   : > { %3370 = vmatprep.subr.bf16.mxu1 %v3896_v56 }
 0x2cf   : > { %3371 = vmatpush3.bf16.msra.mxu1 %v3803_v12 }
 0x2d0   : > { %3372 = vmatprep.subr.bf16.mxu1 %v3896_v56 }
 0x2d3   : > { %3373 = vmatpush3.bf16.msra.mxu1 %v3804_v13 }
 0x2d4   : > { %3374 = vmatprep.subr.bf16.mxu1 %v3896_v56 }
 0x2d7   : > { %3375 = vmatpush3.bf16.msra.mxu1 %v3805_v14 }
 0x2d8   : > { %3376 = vmatprep.subr.bf16.mxu1 %v3896_v56 }
 0x2db   : > { %3377 = vmatpush3.bf16.msra.mxu1 %v3806_v15 }
 0x2dc   : > { %3382 = vmatprep.subr.bf16.mxu1 %v3896_v56 }
 0x391   : > { %v3320_v18 = vpop.f32.mrb[20].mxu1 }
 0x392   : > { %v3321_v4 = vpop.f32.mrb[21].mxu1 }
 0x393   : > { %v3322_v19 = vadd.f32 %v3321_v4, %v3320_v18  ;;  %v3323_v21 = vpop.f32.mrb[22].mxu1 }
 0x394   : > { %v3324_v27 = vpop.f32.mrb[23].mxu1 }
 0x395   : > { %v2445_v22 = vadd.f32 %v3322_v19, %v2313_v3 }
 0x397   : > { %v2450_v57 = vmax.f32 %v2445_v22, 0.0 }
 0x399   : > { %v2469_v24 = vpack.c.bf16 %v2450_v57, %v2450_v57 }
 0x39b   : > { %3379 = vmatmul.mubr.bf16.vlgmr.msra.gmra.mrb[24].mxu1 %v2469_v24 }
 0x39c   : > { %3383 = vmatpush3.bf16.msra.mxu1 %v3807_v23  ;;  %3398 = vmatprep.mubr.msk.bf16.mxu1 %vm3897_vm8, %v3896_v56 }
 0x39d   : > { %3384 = vmatprep.subr.bf16.mxu1 %v3896_v56 }
 0x3a0   : > { %3385 = vmatpush3.bf16.msra.mxu1 %v3808_v25 }
 0x3a1   : > { %3386 = vmatprep.subr.bf16.mxu1 %v3896_v56 }
 0x3a4   : > { %3387 = vmatpush3.bf16.msra.mxu1 %v3809_v26 }
 0x3a5   : > { %3388 = vmatprep.subr.bf16.mxu1 %v3896_v56 }
 0x3a8   : > { %3389 = vmatpush3.bf16.msra.mxu1 %v3810_v28 }
 0x3a9   : > { %3390 = vmatprep.subr.bf16.mxu1 %v3896_v56 }
 0x3ac   : > { %3391 = vmatpush3.bf16.msra.mxu1 %v3811_v29 }
 0x3ad   : > { %3392 = vmatprep.subr.bf16.mxu1 %v3896_v56 }
 0x3b0   : > { %3393 = vmatpush3.bf16.msra.mxu1 %v3812_v5 }
 0x3b1   : > { %3394 = vmatprep.subr.bf16.mxu1 %v3896_v56 }
 0x3b4   : > { %3395 = vmatpush3.bf16.msra.mxu1 %v3813_v30 }
 0x3b5   : > { %3396 = vmatprep.subr.bf16.mxu1 %v3896_v56 }
 0x3b8   : > { %3397 = vmatpush3.bf16.msra.mxu1 %v3814_v31 }
 0x3b9   : > { %3402 = vmatprep.subr.bf16.mxu1 %v3896_v56 }
 0x3bb   : > { %3399 = vmatmul.mubr.bf16.vlgmr.msra.gmra.mrb[28].mxu1 %v2452_v32 }
 0x3bc   : > { %3418 = vmatprep.mubr.msk.bf16.mxu1 %vm3897_vm8, %v3896_v56  ;;  %3403 = vmatpush3.bf16.msra.mxu1 %v3815_v35 }
 0x3bd   : > { %3404 = vmatprep.subr.bf16.mxu1 %v3896_v56 }
 0x3c0   : > { %3405 = vmatpush3.bf16.msra.mxu1 %v3816_v36 }
 0x3c1   : > { %3406 = vmatprep.subr.bf16.mxu1 %v3896_v56 }
 0x3c4   : > { %3407 = vmatpush3.bf16.msra.mxu1 %v3817_v37 }
 0x3c5   : > { %3408 = vmatprep.subr.bf16.mxu1 %v3896_v56 }
 0x3c8   : > { %3409 = vmatpush3.bf16.msra.mxu1 %v3818_v7 }
 0x3c9   : > { %3410 = vmatprep.subr.bf16.mxu1 %v3896_v56 }
 0x3cc   : > { %3411 = vmatpush3.bf16.msra.mxu1 %v3819_v38 }
 0x3cd   : > { %3412 = vmatprep.subr.bf16.mxu1 %v3896_v56 }
 0x3d0   : > { %3413 = vmatpush3.bf16.msra.mxu1 %v3820_v39 }
 0x3d1   : > { %3414 = vmatprep.subr.bf16.mxu1 %v3896_v56 }
 0x3d4   : > { %3415 = vmatpush3.bf16.msra.mxu1 %v3821_v2 }
 0x3d5   : > { %3416 = vmatprep.subr.bf16.mxu1 %v3896_v56 }
 0x3d8   : > { %3417 = vmatpush3.bf16.msra.mxu1 %v3822_v40 }
 0x3d9   : > { %3422 = vmatprep.subr.bf16.mxu1 %v3896_v56 }
 0x46e   : > { %v2568_v41 = vpop.f32.mrb[24].mxu1 }
 0x46f   : > { %v3380_v42 = vpop.f32.mrb[25].mxu1 }
 0x470   : > { %v2571_v43 = vpop.f32.mrb[26].mxu1 }
 0x471   : > { %v3381_v44 = vpop.f32.mrb[27].mxu1 }
 0x48e   : > { %v2656_v45 = vpop.f32.mrb[28].mxu1 }
 0x48f   : > { %v2657_v47 = vadd.f32 %v2656_v45, %v2568_v41  ;;  %v3400_v48 = vpop.f32.mrb[29].mxu1 }
 0x490   : > { %v2659_v49 = vpop.f32.mrb[30].mxu1 }
 0x491   : > { %v2663_v33 = vadd.f32 %v2662_v46, %v2657_v47  ;;  %v3401_v16 = vpop.f32.mrb[31].mxu1 }
 0x493   : > { %v2664_v17 = vmax.f32 %v2663_v33, 0.0 }
 0x495   : > { %v2665_v50 = vpack.c.bf16 %v2664_v17, %v2664_v17 }
 0x497   : > { %3419 = vmatmul.mubr.bf16.vlgmr.msra.gmra.mrb[32].mxu1 %v2665_v50 }
 0x498   : > { %3423 = vmatpush3.bf16.msra.mxu1 %v3823_v20  ;;  %3438 = vmatprep.mubr.msk.bf16.mxu1 %vm3897_vm8, %v3896_v56 }
 0x499   : > { %3424 = vmatprep.subr.bf16.mxu1 %v3896_v56 }
 0x49c   : > { %3425 = vmatpush3.bf16.msra.mxu1 %v3824_v51 }
 0x49d   : > { %3426 = vmatprep.subr.bf16.mxu1 %v3896_v56 }
 0x4a0   : > { %3427 = vmatpush3.bf16.msra.mxu1 %v3825_v52 }
 0x4a1   : > { %3428 = vmatprep.subr.bf16.mxu1 %v3896_v56 }
 0x4a4   : > { %3429 = vmatpush3.bf16.msra.mxu1 %v3826_v53 }
 0x4a5   : > { %3430 = vmatprep.subr.bf16.mxu1 %v3896_v56 }
 0x4a8   : > { %3431 = vmatpush3.bf16.msra.mxu1 %v3827_v54 }
 0x4a9   : > { %3432 = vmatprep.subr.bf16.mxu1 %v3896_v56 }
 0x4ac   : > { %3433 = vmatpush3.bf16.msra.mxu1 %v3828_v34 }
 0x4ad   : > { %3434 = vmatprep.subr.bf16.mxu1 %v3896_v56 }
 0x4b0   : > { %3435 = vmatpush3.bf16.msra.mxu1 %v3829_v55 }
 0x4b1   : > { %3436 = vmatprep.subr.bf16.mxu1 %v3896_v56  ;;  %v2789_v56 = vld [vmem:[%s4872_s13] sm:$0x1] }
 0x4b4   : > { %3437 = vmatpush3.bf16.msra.mxu1 %v3830_v58 }
 0x56a   : > { %v2765_v60 = vpop.f32.mrb[32].mxu1 }
 0x56b   : > { %v2766_v61 = vadd.f32 %v2765_v60, %v2682_v59  ;;  %v3420_v62 = vpop.f32.mrb[33].mxu1 }
 0x56c   : > { %v2768_v63 = vpop.f32.mrb[34].mxu1 }
 0x56d   : > { %v2771_v0 = vmax.f32 %v2766_v61, 0.0  ;;  %v3421_v1 = vpop.f32.mrb[35].mxu1 }
 0x56f   : > { %v2772_v8 = vpack.c.bf16 %v2771_v0, %v2771_v0 }
 0x571   : > { %3439 = vmatmul.mubr.bf16.vlgmr.msra.gmra.mrb[36].mxu1 %v2772_v8 }
 0x644   : > { %v2872_v9 = vpop.f32.mrb[36].mxu1 }
 0x645   : > { %v2873_v10 = vadd.f32 %v2872_v9, %v2789_v56  ;;  %v3440_v11 = vpop.f32.mrb[37].mxu1 }
 0x646   : > { %v2875_v12 = vpop.f32.mrb[38].mxu1 }
 0x647   : > { %2878 = vst [vmem:[%s470_s15] sm:$0x1] %v2873_v10  ;;  %v3441_v13 = vpop.f32.mrb[39].mxu1 }
 0x648   : > { %3844 = shalt.err (!%p3841_p3)
}
 0x649   : > { %s3845_s26 = scalar_lea.hbm %s4817_s22, 16  ;;  %s3849_s28 = scalar_lea.hbm %s4873_s14, 32 }
 0x64a   : > { %p3846_p4 = scmp.ne.s32.totalorder %s4817_s22, %s3845_s26  ;;  %p3850_p9 = scmp.lt.u32.totalorder %s4817_s22, %s4873_s14 }
 0x64b   : > { %p3851_p10 = scmp.lt.u32.totalorder %s3849_s28, %s3845_s26  ;;  %p3853_p12 = scmp.lt.u32.totalorder %s3845_s26, %s4817_s22 }
 0x64c   : > { %p3847_p7 = pnand %p3846_p4, %p4012_p5 }
 0x64d   : > { %p3852_p11 = por %p3851_p10, %p3850_p9 }
 0x64e   : > { %p3848_p8 = pneg %p3847_p7 }
 0x64f   : > { %p3854_p13 = por %p3853_p12, %p3852_p11 }
 0x651   : > { %p3855_p0 = pnand %p3854_p13, %p3848_p8 }
 0x653   : > { %3858 = shalt.err (!%p3855_p0)
}
 0x654   : > { %3507 = dma.vmem_to_hbm [thread:$0]  (%p4012_p5), %s4819_s20, 16, %s4817_s22, %s2880_s19  }
 0x655 PF: > { %s4888_s16 = sld [smem:[#allocation7_spill]]  ;;  %s4889_s17 = sld [smem:[#allocation5_spill]] }
 0x65b   : > { %p3513_p1 = scmp.ge.s32.totalorder %s4888_s16, 2  ;;  %s2904_s25 = sand.u32 1, %s4889_s17  }
 0x65c   : > { %s2905_s24 = scalar_lea.sflag [#allocation3], %s2904_s25 }
 0x65d   : > { %p3510_p2 = pnand %p3513_p1, %p4016_p6 }
 0x65f   : > { %3876 = dma.done.wait (!%p3510_p2), %s2905_s24, 16  }
 0x660   : > { %3878 = vsyncadd (!%p3510_p2), %s2905_s24, 4294967280  ;;  %s4891_s16 = sld [smem:[#allocation8_spill]]  ;;  %s4892_s26 = sld [smem:[#allocation6_spill]] }
 0x661   : > { %s4893_s15 = sld [smem:[#allocation9_spill]]  ;;  %s4894_s29 = smov %s3885_s30 }
 0x666   : > { %p24_p3 = scmp.ge.s32.totalorder %s4891_s16, 4   ;;  %s4895_s30 = smov %s4892_s26 }
 0x668   :  { %26 = sbr.rel (!%p24_p3) target bundleno = 3 (0x3), region = 122 }
 0x66f   :  { %2909 = vsyncpa [#allocation3], 1 }
 0x670   :  { %2911 = vsyncpa [#allocation3 + $0x1], 1 }

</bundles_post_ra>
